<compile_context>
chip_gen: v7x
topology: tpu7x:2x2x1
jax: 0.10.0
libtpu: 0.0.40
codegen_flags: <defaults>
</compile_context>

<pallas_src>
import functools

import jax
import jax.numpy as jnp
from jax import lax
from jax.experimental import pallas as pl
from jax.experimental.pallas import tpu as pltpu

_LN_EPS = 1e-5  # PyTorch nn.LayerNorm default


def _conv3gram_kernel(x_ref, taps_ref, wd_ref, params_ref, out_ref, xs_ref):
    bb, D, T = x_ref.shape
    N = bb * T

    # ---- Pack the batch sub-block onto the lane axis: (bb, D, T) -> (D, N).
    # Pure lane-tile-aligned copies; each iteration's value dies immediately,
    # all heavy compute below is batch-fused with no loop.
    for bi in range(bb):
        xs_ref[:, bi * T:(bi + 1) * T] = x_ref[bi]

    # bf16 matmul operand; the f32 slab is NOT kept live (re-loaded later for
    # the residual).
    xb = xs_ref[...].astype(jnp.bfloat16)                      # (D, N)

    # ---- Loop-invariant weights (constant index_map -> VMEM-resident).
    taps = taps_ref[...]          # (3D, D) bf16: rows = [tap@t-1 | tap@t | tap@t+1]
    wd = wd_ref[...]              # (D, D)  bf16 dense weight
    b_conv = params_ref[0]        # (D, 1) f32
    g1 = params_ref[1]
    be1 = params_ref[2]
    b_d = params_ref[3]
    g2 = params_ref[4]
    be2 = params_ref[5]

    # ---- Sequence-edge keep-masks, built once per grid step on a (1, N) row.
    lane = lax.broadcasted_iota(jnp.int32, (1, N), 1)
    is_first = functools.reduce(
        jnp.logical_or, [lane == bi * T for bi in range(bb)])
    is_last = functools.reduce(
        jnp.logical_or, [lane == (bi + 1) * T - 1 for bi in range(bb)])
    keep_prev = jnp.where(is_first, 0.0, 1.0).astype(jnp.float32)   # (1, N)
    keep_next = jnp.where(is_last, 0.0, 1.0).astype(jnp.float32)    # (1, N)

    inv_d = 1.0 / D

    def layernorm(v, g, b):
        # One-pass LayerNorm over the channel axis (axis 0 of the (D, N) slab).
        s1 = jnp.sum(v, axis=0, keepdims=True)
        s2 = jnp.sum(v * v, axis=0, keepdims=True)
        m = s1 * inv_d
        var = s2 * inv_d - m * m
        return (v - m) * lax.rsqrt(var + _LN_EPS) * g + b

    # ---- Conv1d(k=3, stride=1, padding=1): ONE (3D, D) x (D, N) MXU matmul;
    # the time shifts are rolls of the RESULT row blocks, masked at sequence
    # boundaries (roll/mask commutes through the matmul).
    y3 = jnp.dot(taps, xb, preferred_element_type=jnp.float32)      # (3D, N)
    y = (pltpu.roll(y3[0:D], shift=1, axis=1) * keep_prev           # x[t-1] tap
         + y3[D:2 * D]                                              # x[t]   tap
         + pltpu.roll(y3[2 * D:3 * D], shift=N - 1, axis=1) * keep_next  # x[t+1]
         + b_conv)                                                  # (D, N)

    # ---- LayerNorm over hidden dim, then ReLU.
    h = jnp.maximum(layernorm(y, g1, be1), 0.0)

    # ---- ResidualConnect: dense -> dropout (identity, eval) -> LN(dense + x).
    d = jnp.dot(wd, h.astype(jnp.bfloat16),
                preferred_element_type=jnp.float32) + b_d           # (D, N)
    # TODO(synk): nn.Dropout(0.2) is stochastic; eval-mode identity here.
    z = layernorm(d + xs_ref[...], g2, be2)    # residual re-loads the f32 x

    # ---- Unpack (D, N) -> (bb, D, T) output block (lane-dense 128-wide tiles).
    for bi in range(bb):
        out_ref[bi] = z[:, bi * T:(bi + 1) * T].astype(out_ref.dtype)


def _pick_block_batch(B, D, T):
    """Batch sub-block per grid step.

    Budget: per sequence we pay ~2 double-buffered f32 blocks (x in + out) plus
    ~8 (D,T)-equivalent f32 slab temporaries (packed x, y3 counts as 3, y, h,
    d, z); keep that under ~24 MiB so the whole step sits comfortably inside
    the 48 MiB vmem_limit on every generation (v7x only has 64 MiB physical).
    v7x megacore: keep the number of 'parallel' grid steps >= 2 (ideally even)
    so both TensorCores get work (e.g. bb=1 for B=2).
    """
    budget = 24 * 1024 * 1024
    per_seq = D * T * 4 * (2 * 2 + 8)
    cap = max(1, min(8, budget // per_seq))
    divisors = [d for d in range(1, min(B, cap) + 1) if B % d == 0]
    even = [d for d in divisors if (B // d) >= 2 and (B // d) % 2 == 0]
    ge2 = [d for d in divisors if (B // d) >= 2]
    pool = even or ge2 or divisors
    return max(pool)


@jax.jit
def conv1d_3gram_forward(x, w_conv, b_conv, ln1_g, ln1_b,
                         w_dense, b_dense, ln2_g, ln2_b):
    """x: (B, D, T) float32 (PyTorch NCT).  Returns (B, D, T) float32.

    w_conv:  (D, D, 3)   PyTorch Conv1d weight (out, in, k)
    w_dense: (D, D)      PyTorch Linear weight (out, in)
    biases / LN params:  (D,)
    """
    B, D, T = x.shape
    bb = _pick_block_batch(B, D, T)
    grid = (B // bb,)
    N = bb * T

    # One-time weight reshuffles (outside the kernel):
    #  - conv taps concatenated on the M axis: (3*D, D) bf16, rows are the
    #    k=0 (t-1), k=1 (t), k=2 (t+1) taps.
    taps = (jnp.transpose(w_conv, (2, 0, 1))
            .reshape(3 * D, D).astype(jnp.bfloat16))
    wd = w_dense.astype(jnp.bfloat16)
    #  - per-channel f32 params packed into a single (6, D, 1) slab.
    params = jnp.stack(
        [b_conv, ln1_g, ln1_b, b_dense, ln2_g, ln2_b], axis=0
    ).astype(jnp.float32)[:, :, None]

    grid_spec = pltpu.PrefetchScalarGridSpec(
        num_scalar_prefetch=0,
        grid=grid,
        in_specs=[
            pl.BlockSpec((bb, D, T), lambda i: (i, 0, 0)),   # x (native NCT)
            pl.BlockSpec((3 * D, D), lambda i: (0, 0)),      # conv taps (resident)
            pl.BlockSpec((D, D), lambda i: (0, 0)),          # dense weight (resident)
            pl.BlockSpec((6, D, 1), lambda i: (0, 0, 0)),    # packed channel params
        ],
        out_specs=pl.BlockSpec((bb, D, T), lambda i: (i, 0, 0)),
        scratch_shapes=[pltpu.VMEM((D, N), jnp.float32)],    # packed-x slab
    )
    return pl.pallas_call(
        _conv3gram_kernel,
        out_shape=jax.ShapeDtypeStruct((B, D, T), jnp.float32),
        grid_spec=grid_spec,
        compiler_params=pltpu.CompilerParams(
            dimension_semantics=("parallel",),
            vmem_limit_bytes=48 * 1024 * 1024),
    )(x.astype(jnp.float32), taps, wd, params)


def _reference(x, w_conv, b_conv, g1, be1, w_dense, b_dense, g2, be2,
               *, matmul_dtype=jnp.float32):
    """Pure-JAX mirror of PyTorch Conv1d_3gram.forward (eval mode).

    matmul_dtype=bfloat16 reproduces the kernel's deliberate bf16-MXU /
    f32-accumulate precision; matmul_dtype=float32 is the full-f32 semantics.
    """
    f32 = jnp.float32
    hp = lax.Precision.HIGHEST

    def ln(v, g, b):
        m = jnp.mean(v, axis=-1, keepdims=True)
        c = v - m
        var = jnp.mean(c * c, axis=-1, keepdims=True)
        return c / jnp.sqrt(var + _LN_EPS) * g + b

    B, D, T = x.shape
    xp = jnp.pad(x, ((0, 0), (0, 0), (1, 1))).astype(matmul_dtype)  # (B,D,T+2)
    wc = w_conv.astype(matmul_dtype)
    y = sum(
        jnp.einsum("oi,bit->bot", wc[:, :, k], xp[:, :, k:k + T],
                   preferred_element_type=f32, precision=hp)
        for k in range(3)
    ) + b_conv[None, :, None].astype(f32)                           # (B, D, T)
    yt = jnp.transpose(y, (0, 2, 1))                                # (B, T, D)
    h = jnp.maximum(ln(yt, g1, be1), 0.0)                           # LN + ReLU
    d = jnp.einsum("btd,od->bto", h.astype(matmul_dtype),
                   w_dense.astype(matmul_dtype),
                   preferred_element_type=f32, precision=hp) + b_dense
    z = ln(d + jnp.transpose(x, (0, 2, 1)).astype(f32), g2, be2)    # residual+LN
    return jnp.transpose(z, (0, 2, 1))                              # (B, D, T)


if __name__ == "__main__":
    # Module config: hidden_size=256, seq_len=128.  Inputs are NCT (B, D, T).
    D, T = 256, 128
    key = jax.random.PRNGKey(0)
    ks = jax.random.split(key, 9)
    w_conv = jax.random.normal(ks[1], (D, D, 3), jnp.float32) / jnp.sqrt(3.0 * D)
    b_conv = 0.1 * jax.random.normal(ks[2], (D,), jnp.float32)
    ln1_g = 1.0 + 0.1 * jax.random.normal(ks[3], (D,), jnp.float32)
    ln1_b = 0.1 * jax.random.normal(ks[4], (D,), jnp.float32)
    w_dense = jax.random.normal(ks[5], (D, D), jnp.float32) / jnp.sqrt(1.0 * D)
    b_dense = 0.1 * jax.random.normal(ks[6], (D,), jnp.float32)
    ln2_g = 1.0 + 0.1 * jax.random.normal(ks[7], (D,), jnp.float32)
    ln2_b = 0.1 * jax.random.normal(ks[8], (D,), jnp.float32)

    # B=2 -> bb=1, grid=(2,)  (both v7x TensorCores busy, N=128 path)
    # B=4 -> bb=2, grid=(2,)  (lane-packed slab path, N=256 matmuls)
    for B in (2, 4):
        x = jax.random.normal(jax.random.fold_in(ks[0], B), (B, D, T),
                              jnp.float32)
        args = (x, w_conv, b_conv, ln1_g, ln1_b,
                w_dense, b_dense, ln2_g, ln2_b)

        out = jax.block_until_ready(conv1d_3gram_forward(*args))
        assert out.shape == (B, D, T)

        # (a) precision-matched check: reference with the same bf16-MXU /
        #     f32-accumulate matmuls -> validates the kernel logic tightly.
        ref_m = _reference(*args, matmul_dtype=jnp.bfloat16)
        err_m = float(jnp.max(jnp.abs(out - ref_m)))
        assert jnp.allclose(out, ref_m, atol=3e-3, rtol=3e-3), (
            f"precision-matched mismatch (B={B}), max abs err = {err_m}")

        # (b) full-f32 module semantics: bounds the deliberate bf16 drift.
        ref_f = _reference(*args, matmul_dtype=jnp.float32)
        err_f = float(jnp.max(jnp.abs(out - ref_f)))
        assert jnp.allclose(out, ref_f, atol=6e-2, rtol=6e-2), (
            f"bf16-vs-f32 drift too large (B={B}), max abs err = {err_f}")

    print("KERNEL_OK")
</pallas_src>

<mosaic_0001>
module attributes {stable_mosaic.version = 11 : i64} {
  func.func @_conv3gram_kernel(%arg0: i32, %arg1: memref<1x256x128xf32, #tpu.memory_space<vmem>>, %arg2: memref<768x256xbf16, #tpu.memory_space<vmem>>, %arg3: memref<256x256xbf16, #tpu.memory_space<vmem>>, %arg4: memref<6x256x1xf32, #tpu.memory_space<vmem>>, %arg5: memref<1x256x128xf32, #tpu.memory_space<vmem>>, %arg6: memref<256x128xf32, #tpu.memory_space<vmem>>) attributes {dimension_semantics = [#tpu.dimension_semantics<parallel>], iteration_bounds = array<i64: 2>, scalar_prefetch = 0 : i64, scratch_operands = 1 : i64, tpu.core_type = #tpu.core_type<tc>, window_params = [{transform_indices = @transform_0, window_bounds = array<i64: 1, 256, 128>}, {pipeline_mode = #tpu.pipeline_mode<synchronous>, transform_indices = @transform_1, window_bounds = array<i64: 768, 256>}, {pipeline_mode = #tpu.pipeline_mode<synchronous>, transform_indices = @transform_2, window_bounds = array<i64: 256, 256>}, {pipeline_mode = #tpu.pipeline_mode<synchronous>, transform_indices = @transform_3, window_bounds = array<i64: 6, 256, 1>}, {transform_indices = @transform_4, window_bounds = array<i64: 1, 256, 128>}]} {
    %c0 = arith.constant 0 : index
    %c0_0 = arith.constant 0 : index
    %c0_1 = arith.constant 0 : index
    %0 = vector.load %arg1[%c0, %c0_0, %c0_1] : memref<1x256x128xf32, #tpu.memory_space<vmem>>, vector<1x256x128xf32>
    %1 = vector.shape_cast %0 : vector<1x256x128xf32> to vector<256x128xf32>
    %c0_2 = arith.constant 0 : index
    %c0_3 = arith.constant 0 : index
    %2 = vector.load %arg6[%c0_2, %c0_3] : memref<256x128xf32, #tpu.memory_space<vmem>>, vector<256x128xf32>
    tpu.vector_store %arg6[%c0_2, %c0_3], %1 {strides = array<i32>} : memref<256x128xf32, #tpu.memory_space<vmem>>, vector<256x128xf32>,
    %c0_4 = arith.constant 0 : index
    %c0_5 = arith.constant 0 : index
    %3 = vector.load %arg6[%c0_4, %c0_5] : memref<256x128xf32, #tpu.memory_space<vmem>>, vector<256x128xf32>
    %4 = arith.truncf %3 : vector<256x128xf32> to vector<256x128xbf16>
    %c0_6 = arith.constant 0 : index
    %c0_7 = arith.constant 0 : index
    %5 = vector.load %arg2[%c0_6, %c0_7] : memref<768x256xbf16, #tpu.memory_space<vmem>>, vector<768x256xbf16>
    %c0_8 = arith.constant 0 : index
    %c0_9 = arith.constant 0 : index
    %6 = vector.load %arg3[%c0_8, %c0_9] : memref<256x256xbf16, #tpu.memory_space<vmem>>, vector<256x256xbf16>
    %c0_10 = arith.constant 0 : index
    %c0_11 = arith.constant 0 : index
    %c0_12 = arith.constant 0 : index
    %7 = vector.load %arg4[%c0_10, %c0_11, %c0_12] : memref<6x256x1xf32, #tpu.memory_space<vmem>>, vector<1x256x1xf32>
    %8 = vector.shape_cast %7 : vector<1x256x1xf32> to vector<256x1xf32>
    %c1 = arith.constant 1 : index
    %c0_13 = arith.constant 0 : index
    %c0_14 = arith.constant 0 : index
    %9 = vector.load %arg4[%c1, %c0_13, %c0_14] : memref<6x256x1xf32, #tpu.memory_space<vmem>>, vector<1x256x1xf32>
    %10 = vector.shape_cast %9 : vector<1x256x1xf32> to vector<256x1xf32>
    %c2 = arith.constant 2 : index
    %c0_15 = arith.constant 0 : index
    %c0_16 = arith.constant 0 : index
    %11 = vector.load %arg4[%c2, %c0_15, %c0_16] : memref<6x256x1xf32, #tpu.memory_space<vmem>>, vector<1x256x1xf32>
    %12 = vector.shape_cast %11 : vector<1x256x1xf32> to vector<256x1xf32>
    %c3 = arith.constant 3 : index
    %c0_17 = arith.constant 0 : index
    %c0_18 = arith.constant 0 : index
    %13 = vector.load %arg4[%c3, %c0_17, %c0_18] : memref<6x256x1xf32, #tpu.memory_space<vmem>>, vector<1x256x1xf32>
    %14 = vector.shape_cast %13 : vector<1x256x1xf32> to vector<256x1xf32>
    %c4 = arith.constant 4 : index
    %c0_19 = arith.constant 0 : index
    %c0_20 = arith.constant 0 : index
    %15 = vector.load %arg4[%c4, %c0_19, %c0_20] : memref<6x256x1xf32, #tpu.memory_space<vmem>>, vector<1x256x1xf32>
    %16 = vector.shape_cast %15 : vector<1x256x1xf32> to vector<256x1xf32>
    %c5 = arith.constant 5 : index
    %c0_21 = arith.constant 0 : index
    %c0_22 = arith.constant 0 : index
    %17 = vector.load %arg4[%c5, %c0_21, %c0_22] : memref<6x256x1xf32, #tpu.memory_space<vmem>>, vector<1x256x1xf32>
    %18 = vector.shape_cast %17 : vector<1x256x1xf32> to vector<256x1xf32>
    %19 = tpu.iota {dimensions = array<i32: 1>} : vector<1x128xi32>
    %c0_i32 = arith.constant 0 : i32
    %20 = vector.broadcast %c0_i32 : i32 to vector<1x128xi32>
    %21 = arith.cmpi eq, %19, %20 : vector<1x128xi32>
    %c127_i32 = arith.constant 127 : i32
    %22 = vector.broadcast %c127_i32 : i32 to vector<1x128xi32>
    %23 = arith.cmpi eq, %19, %22 : vector<1x128xi32>
    %cst = arith.constant 0.000000e+00 : f32
    %cst_23 = arith.constant 1.000000e+00 : f32
    %24 = vector.broadcast %cst : f32 to vector<1x128xf32>
    %25 = vector.broadcast %cst_23 : f32 to vector<1x128xf32>
    %26 = arith.select %21, %24, %25 : vector<1x128xi1>, vector<1x128xf32>
    %cst_24 = arith.constant 0.000000e+00 : f32
    %cst_25 = arith.constant 1.000000e+00 : f32
    %27 = vector.broadcast %cst_24 : f32 to vector<1x128xf32>
    %28 = vector.broadcast %cst_25 : f32 to vector<1x128xf32>
    %29 = arith.select %23, %27, %28 : vector<1x128xi1>, vector<1x128xf32>
    %cst_26 = arith.constant dense<0.000000e+00> : vector<768x128xf32>
    %30 = tpu.matmul %5, %4, %cst_26 {dimension_numbers = #tpu.dot_dimension_numbers<[1], [0], [0], [1], [0, 0, 1, 1], [], []>} : vector<768x256xbf16>, vector<256x128xbf16>, vector<768x128xf32> -> vector<768x128xf32>
    %31 = vector.extract_strided_slice %30 {offsets = [0, 0], sizes = [256, 128], strides = [1, 1]} : vector<768x128xf32> to vector<256x128xf32>
    %c1_i32 = arith.constant 1 : i32
    %32 = tpu.dynamic_rotate %31 by %c1_i32 dim 1 : vector<256x128xf32>, i32 -> vector<256x128xf32>
    %33 = vector.broadcast %26 : vector<1x128xf32> to vector<256x128xf32>
    %34 = arith.mulf %32, %33 : vector<256x128xf32>
    %35 = vector.extract_strided_slice %30 {offsets = [256, 0], sizes = [256, 128], strides = [1, 1]} : vector<768x128xf32> to vector<256x128xf32>
    %36 = arith.addf %34, %35 : vector<256x128xf32>
    %37 = vector.extract_strided_slice %30 {offsets = [512, 0], sizes = [256, 128], strides = [1, 1]} : vector<768x128xf32> to vector<256x128xf32>
    %c127_i32_27 = arith.constant 127 : i32
    %38 = tpu.dynamic_rotate %37 by %c127_i32_27 dim 1 : vector<256x128xf32>, i32 -> vector<256x128xf32>
    %39 = vector.broadcast %29 : vector<1x128xf32> to vector<256x128xf32>
    %40 = arith.mulf %38, %39 : vector<256x128xf32>
    %41 = arith.addf %36, %40 : vector<256x128xf32>
    %42 = vector.broadcast %8 : vector<256x1xf32> to vector<256x128xf32>
    %43 = arith.addf %41, %42 : vector<256x128xf32>
    %cst_28 = arith.constant dense<0.000000e+00> : vector<128xf32>
    %44 = vector.multi_reduction <add>, %43, %cst_28 [0] : vector<256x128xf32> to vector<128xf32>
    %45 = vector.shape_cast %44 : vector<128xf32> to vector<1x128xf32>
    %46 = arith.mulf %43, %43 : vector<256x128xf32>
    %cst_29 = arith.constant dense<0.000000e+00> : vector<128xf32>
    %47 = vector.multi_reduction <add>, %46, %cst_29 [0] : vector<256x128xf32> to vector<128xf32>
    %48 = vector.shape_cast %47 : vector<128xf32> to vector<1x128xf32>
    %cst_30 = arith.constant 3.906250e-03 : f32
    %49 = vector.broadcast %cst_30 : f32 to vector<1x128xf32>
    %50 = arith.mulf %45, %49 : vector<1x128xf32>
    %cst_31 = arith.constant 3.906250e-03 : f32
    %51 = vector.broadcast %cst_31 : f32 to vector<1x128xf32>
    %52 = arith.mulf %48, %51 : vector<1x128xf32>
    %53 = arith.mulf %50, %50 : vector<1x128xf32>
    %54 = arith.subf %52, %53 : vector<1x128xf32>
    %55 = vector.broadcast %50 : vector<1x128xf32> to vector<256x128xf32>
    %56 = arith.subf %43, %55 : vector<256x128xf32>
    %cst_32 = arith.constant 9.99999974E-6 : f32
    %57 = vector.broadcast %cst_32 : f32 to vector<1x128xf32>
    %58 = arith.addf %54, %57 : vector<1x128xf32>
    %59 = math.rsqrt %58 : vector<1x128xf32>
    %60 = vector.broadcast %59 : vector<1x128xf32> to vector<256x128xf32>
    %61 = arith.mulf %56, %60 : vector<256x128xf32>
    %62 = vector.broadcast %10 : vector<256x1xf32> to vector<256x128xf32>
    %63 = arith.mulf %61, %62 : vector<256x128xf32>
    %64 = vector.broadcast %12 : vector<256x1xf32> to vector<256x128xf32>
    %65 = arith.addf %63, %64 : vector<256x128xf32>
    %cst_33 = arith.constant 0.000000e+00 : f32
    %66 = vector.broadcast %cst_33 : f32 to vector<256x128xf32>
    %67 = arith.maximumf %65, %66 : vector<256x128xf32>
    %68 = arith.truncf %67 : vector<256x128xf32> to vector<256x128xbf16>
    %cst_34 = arith.constant dense<0.000000e+00> : vector<256x128xf32>
    %69 = tpu.matmul %6, %68, %cst_34 {dimension_numbers = #tpu.dot_dimension_numbers<[1], [0], [0], [1], [0, 0, 1, 1], [], []>} : vector<256x256xbf16>, vector<256x128xbf16>, vector<256x128xf32> -> vector<256x128xf32>
    %70 = vector.broadcast %14 : vector<256x1xf32> to vector<256x128xf32>
    %71 = arith.addf %69, %70 : vector<256x128xf32>
    %c0_35 = arith.constant 0 : index
    %c0_36 = arith.constant 0 : index
    %72 = vector.load %arg6[%c0_35, %c0_36] : memref<256x128xf32, #tpu.memory_space<vmem>>, vector<256x128xf32>
    %73 = arith.addf %71, %72 : vector<256x128xf32>
    %cst_37 = arith.constant dense<0.000000e+00> : vector<128xf32>
    %74 = vector.multi_reduction <add>, %73, %cst_37 [0] : vector<256x128xf32> to vector<128xf32>
    %75 = vector.shape_cast %74 : vector<128xf32> to vector<1x128xf32>
    %76 = arith.mulf %73, %73 : vector<256x128xf32>
    %cst_38 = arith.constant dense<0.000000e+00> : vector<128xf32>
    %77 = vector.multi_reduction <add>, %76, %cst_38 [0] : vector<256x128xf32> to vector<128xf32>
    %78 = vector.shape_cast %77 : vector<128xf32> to vector<1x128xf32>
    %cst_39 = arith.constant 3.906250e-03 : f32
    %79 = vector.broadcast %cst_39 : f32 to vector<1x128xf32>
    %80 = arith.mulf %75, %79 : vector<1x128xf32>
    %cst_40 = arith.constant 3.906250e-03 : f32
    %81 = vector.broadcast %cst_40 : f32 to vector<1x128xf32>
    %82 = arith.mulf %78, %81 : vector<1x128xf32>
    %83 = arith.mulf %80, %80 : vector<1x128xf32>
    %84 = arith.subf %82, %83 : vector<1x128xf32>
    %85 = vector.broadcast %80 : vector<1x128xf32> to vector<256x128xf32>
    %86 = arith.subf %73, %85 : vector<256x128xf32>
    %cst_41 = arith.constant 9.99999974E-6 : f32
    %87 = vector.broadcast %cst_41 : f32 to vector<1x128xf32>
    %88 = arith.addf %84, %87 : vector<1x128xf32>
    %89 = math.rsqrt %88 : vector<1x128xf32>
    %90 = vector.broadcast %89 : vector<1x128xf32> to vector<256x128xf32>
    %91 = arith.mulf %86, %90 : vector<256x128xf32>
    %92 = vector.broadcast %16 : vector<256x1xf32> to vector<256x128xf32>
    %93 = arith.mulf %91, %92 : vector<256x128xf32>
    %94 = vector.broadcast %18 : vector<256x1xf32> to vector<256x128xf32>
    %95 = arith.addf %93, %94 : vector<256x128xf32>
    %c0_42 = arith.constant 0 : index
    %c0_43 = arith.constant 0 : index
    %c0_44 = arith.constant 0 : index
    %96 = vector.load %arg5[%c0_42, %c0_43, %c0_44] : memref<1x256x128xf32, #tpu.memory_space<vmem>>, vector<1x256x128xf32>
    %97 = vector.shape_cast %96 : vector<1x256x128xf32> to vector<256x128xf32>
    %98 = vector.shape_cast %95 : vector<256x128xf32> to vector<1x256x128xf32>
    tpu.vector_store %arg5[%c0_42, %c0_43, %c0_44], %98 {strides = array<i32>} : memref<1x256x128xf32, #tpu.memory_space<vmem>>, vector<1x256x128xf32>,
    return
  }
  func.func @transform_0(%arg0: i32) -> (i32, i32, i32) {
    %c0_i32 = arith.constant 0 : i32
    %c0_i32_0 = arith.constant 0 : i32
    %c0_i32_1 = arith.constant 0 : i32
    return %arg0, %c0_i32, %c0_i32_0 : i32, i32, i32
  }
  func.func @transform_1(%arg0: i32) -> (i32, i32) {
    %c0_i32 = arith.constant 0 : i32
    %c0_i32_0 = arith.constant 0 : i32
    %c0_i32_1 = arith.constant 0 : i32
    return %c0_i32, %c0_i32_0 : i32, i32
  }
  func.func @transform_2(%arg0: i32) -> (i32, i32) {
    %c0_i32 = arith.constant 0 : i32
    %c0_i32_0 = arith.constant 0 : i32
    %c0_i32_1 = arith.constant 0 : i32
    return %c0_i32, %c0_i32_0 : i32, i32
  }
  func.func @transform_3(%arg0: i32) -> (i32, i32, i32) {
    %c0_i32 = arith.constant 0 : i32
    %c0_i32_0 = arith.constant 0 : i32
    %c0_i32_1 = arith.constant 0 : i32
    %c0_i32_2 = arith.constant 0 : i32
    return %c0_i32, %c0_i32_0, %c0_i32_1 : i32, i32, i32
  }
  func.func @transform_4(%arg0: i32) -> (i32, i32, i32) {
    %c0_i32 = arith.constant 0 : i32
    %c0_i32_0 = arith.constant 0 : i32
    %c0_i32_1 = arith.constant 0 : i32
    return %arg0, %c0_i32, %c0_i32_0 : i32, i32, i32
  }
}

</mosaic_0001>

<bundles_post_ra>
// kernel: conv1d_3gram_forward.1
= control target key start
LH: loop header
LB: loop body
LE: loop exit
PB: predicated region body
PF: predicated region fallthrough
CT: control target
= control target key end

     0   :  { %9 = vsyncpa [#allocation4], 0  ;;  %s7072_s0 = inlined_call_operand.vmem [shape: f32[2,256,128], index: 0, kind: input, shape index: {}]   ;;  %s7073_s1 = inlined_call_operand.vmem [shape: bf16[768,256], index: 1, kind: input, shape index: {}]   ;;  %s7074_s2 = inlined_call_operand.vmem [shape: bf16[256,256], index: 2, kind: input, shape index: {}]   ;;  %s7075_s3 = inlined_call_operand.vmem [shape: f32[6,256,1], index: 3, kind: input, shape index: {}]   ;;  %s7076_s4 = inlined_call_operand.hbm [shape: f32[2,256,128], index: 4, kind: output, shape index: {}]  }
   0x1   :  { %11 = vsyncpa [#allocation4 + $0x1], 0  ;;  %s4591_s15 = smov 0   ;;  %s4593_s16 = smov 0  }
   0x2   :  { %s4595_s17 = smov 0   ;;  %s4597_s18 = smov 0  }
   0x3 LB: > { %s4612_s19 = sadd.s32 4294967295, %s4557_s18   ;;  %s3774_s20 = sadd.s32 4294967294, %s4557_s18   ;;  %s4557_s18 = sphi %s4597_s18, %s7278_s18   ;;  %s4553_s17 = sphi %s4595_s17, %s7277_s17   ;;  %s4549_s16 = sphi %s4593_s16, %s7276_s16   ;;  %s4545_s15 = sphi %s4591_s15, %s7275_s15  }
   0x4   : > { %s4616_s21 = sadd.s32 1, %s4557_s18   ;;  %s113_s22 = sadd.s32 1, %s4553_s17 }
   0x5   : > { %s110_s23 = ssub.s32 %s4557_s18, %s4616_s21  ;;  %p123_p0 = scmp.ne.s32.totalorder %s4553_s17, %s4549_s16 }
   0x6   : > { %p111_p1 = scmp.eq.s32.totalorder %s110_s23, 0  ;;  %p124_p2 = scmp.eq.s32.totalorder %s4612_s19, 1 }
   0x7   : > { %p129_p3 = scmp.ne.s32.totalorder %s4549_s16, %s4545_s15  ;;  %p130_p4 = scmp.eq.s32.totalorder %s3774_s20, 1 }
   0x8   : > { %s4627_s24 = scalar_select %p111_p1, %s4553_s17, %s113_s22  }
   0x9   : > { %p4629_p5 = por %p124_p2, %p123_p0  ;;  %p4633_p6 = por %p130_p4, %p129_p3 }
   0xa   : > { %p3777_p7 = scmp.ge.s32.totalorder %s4557_s18, 1  ;;  %p165_p8 = scmp.lt.s32.totalorder %s4557_s18, 3 }
   0xc   : > { %p166_p9 = pnand %p3777_p7, %p165_p8 }
   0xe   : > { %169 = sbr.rel (%p166_p9) target bundleno = 1076 (0x434), region = 36 }
  0x15   : > { %p191_p10 = scmp.lt.s32.totalorder %s4612_s19, 1  ;;  %v437_v0 = vld [vmem:[%s7075_s3] sm:$0xff]  ;;  %v438_v1 = vld [vmem:[%s7075_s3 + $0x8] sm:$0xff]  ;;  %v4559_v2 = vmov 0   ;;  %v440_v3 = vld [vmem:[%s7075_s3 + $0x18] sm:$0xff]  ;;  %s4560_s22 = smov 1  }
  0x16   : > { %1120 = vmatprep.subr.bf16.mxu0 %v4559_v2  ;;  %4188 = vmatprep.subr.bf16.mxu1 %v4559_v2  ;;  %v439_v4 = vld [vmem:[%s7075_s3 + $0x10] sm:$0xff]  ;;  %v442_v10 = vld [vmem:[%s7075_s3 + $0x28] sm:$0xff]  ;;  %v441_v11 = vld [vmem:[%s7075_s3 + $0x20] sm:$0xff]  ;;  %s4561_s30 = smov 127   ;;  %s4075_s10 = sshll.u32 %s4612_s19, 12 }
  0x17   : > { %s192_s5 = scalar_select %p191_p10, %s4612_s19, 1  ;;  %4265 = vset.pattern.permute.xlu0 %v4559_v2  ;;  %4266 = vset.pattern.permute.xlu1 %v4559_v2  ;;  %v444_v15 = vld [vmem:[%s7075_s3 + $0x38] sm:$0xff]  ;;  %v443_v16 = vld [vmem:[%s7075_s3 + $0x30] sm:$0xff]  ;;  %v446_v20 = vld [vmem:[%s7075_s3 + $0x48] sm:$0xff] }
  0x18   : > { %1795 = vperm.xlu0 %4265, %v437_v0   ;;  %1800 = vperm.xlu1 %4266, %v438_v1   ;;  %v445_v21 = vld [vmem:[%s7075_s3 + $0x40] sm:$0xff]  ;;  %v448_v26 = vld [vmem:[%s7075_s3 + $0x58] sm:$0xff]  ;;  %v447_v27 = vld [vmem:[%s7075_s3 + $0x50] sm:$0xff]  ;;  %s7011_s12 = scalar_lea.hbm %s7076_s4, %s4075_s10  ;;  %s4563_s23 = smov [#allocation3]  }
  0x19   : > { %s4074_s6 = sshll.u32 %s192_s5, 8  ;;  %v4269_v24 = vld [vmem:[%s7073_s1 + $0x4] ss:$8 sps:$4 sm:$0xff]   ;;  %v452_v37 = vld [vmem:[%s7075_s3 + $0x78] sm:$0xff]  ;;  %v451_v38 = vld [vmem:[%s7075_s3 + $0x70] sm:$0xff]  ;;  %s4499_s27 = sshll.u32 %s4563_s23, 4  ;;  %s4500_s27 = int_to_ptr.vmem [resolvable:$false] %s4499_s27 }
  0x1a   : > { %s4660_s13 = scalar_lea.vmem %s7072_s0, %s4074_s6  ;;  %1152 = vmatprep.mubr.bf16.mxu0 %v4269_v24  ;;  %v4272_v28 = vld [vmem:[%s7073_s1 + $0x204] ss:$8 sps:$4 sm:$0xff]   ;;  %v456_v47 = vld [vmem:[%s7075_s3 + $0x98] sm:$0xff]  ;;  %v455_v48 = vld [vmem:[%s7075_s3 + $0x90] sm:$0xff]  ;;  %s4501_s28 = scalar_lea.vmem %s4500_s27, 8192 }
  0x1b   : > { %v197_v5 = vld [vmem:[%s4660_s13] sm:$0xff]  ;;  %v198_v6 = vld [vmem:[%s4660_s13 + $0x8] sm:$0xff]  ;;  %v199_v7 = vld [vmem:[%s4660_s13 + $0x10] sm:$0xff]  ;;  %1408 = vmatprep.mubr.bf16.mxu1 %v4272_v28 }
  0x1c   : > { %v293_v8 = vpack.c.bf16 %v198_v6, %v197_v5  ;;  %v200_v9 = vld [vmem:[%s4660_s13 + $0x18] sm:$0xff]  ;;  %1810 = vperm.xlu0 %4265, %v440_v3   ;;  %1805 = vperm.xlu1 %4266, %v439_v4   ;;  %v201_v13 = vld [vmem:[%s4660_s13 + $0x20] sm:$0xff]  ;;  %v202_v14 = vld [vmem:[%s4660_s13 + $0x28] sm:$0xff] }
  0x1d   : > { %v294_v12 = vpack.c.bf16 %v200_v9, %v199_v7  ;;  %v295_v17 = vpack.c.bf16 %v202_v14, %v201_v13  ;;  %v203_v18 = vld [vmem:[%s4660_s13 + $0x30] sm:$0xff]  ;;  %v204_v19 = vld [vmem:[%s4660_s13 + $0x38] sm:$0xff]  ;;  %v205_v23 = vld [vmem:[%s4660_s13 + $0x40] sm:$0xff] }
  0x1e   : > { %1121 = vmatpush1.bf16.msra.mxu0 %v293_v8  ;;  %4204 = vmatpush1.bf16.msra.mxu1 %v293_v8  ;;  %v296_v22 = vpack.c.bf16 %v204_v19, %v203_v18  ;;  %v206_v25 = vld [vmem:[%s4660_s13 + $0x48] sm:$0xff]  ;;  %v207_v30 = vld [vmem:[%s4660_s13 + $0x50] sm:$0xff]  ;;  %v208_v31 = vld [vmem:[%s4660_s13 + $0x58] sm:$0xff] }
  0x1f   : > { %1122 = vmatprep.subr.bf16.mxu0 %v4559_v2  ;;  %4189 = vmatprep.subr.bf16.mxu1 %v4559_v2  ;;  %v297_v29 = vpack.c.bf16 %v206_v25, %v205_v23  ;;  %v450_v32 = vld [vmem:[%s7075_s3 + $0x68] sm:$0xff]  ;;  %v449_v33 = vld [vmem:[%s7075_s3 + $0x60] sm:$0xff]  ;;  %v298_v34 = vpack.c.bf16 %v208_v31, %v207_v30  ;;  %v211_v40 = vld [vmem:[%s4660_s13 + $0x70] sm:$0xff] }
  0x20   : > { %1820 = vperm.xlu0 %4265, %v442_v10   ;;  %1815 = vperm.xlu1 %4266, %v441_v11   ;;  %v209_v35 = vld [vmem:[%s4660_s13 + $0x60] sm:$0xff]  ;;  %v210_v36 = vld [vmem:[%s4660_s13 + $0x68] sm:$0xff]  ;;  %v212_v41 = vld [vmem:[%s4660_s13 + $0x78] sm:$0xff] }
  0x21   : > { %v299_v39 = vpack.c.bf16 %v210_v36, %v209_v35  ;;  %v454_v42 = vld [vmem:[%s7075_s3 + $0x88] sm:$0xff]  ;;  %v453_v43 = vld [vmem:[%s7075_s3 + $0x80] sm:$0xff]  ;;  %v300_v44 = vpack.c.bf16 %v212_v41, %v211_v40  ;;  %v215_v50 = vld [vmem:[%s4660_s13 + $0x90] sm:$0xff] }
  0x22   : > { %1123 = vmatpush1.bf16.msra.mxu0 %v294_v12  ;;  %4205 = vmatpush1.bf16.msra.mxu1 %v294_v12  ;;  %v213_v45 = vld [vmem:[%s4660_s13 + $0x80] sm:$0xff]  ;;  %v214_v46 = vld [vmem:[%s4660_s13 + $0x88] sm:$0xff]  ;;  %v216_v51 = vld [vmem:[%s4660_s13 + $0x98] sm:$0xff] }
  0x23   : > { %1124 = vmatprep.subr.bf16.mxu0 %v4559_v2  ;;  %4190 = vmatprep.subr.bf16.mxu1 %v4559_v2  ;;  %v301_v49 = vpack.c.bf16 %v214_v46, %v213_v45  ;;  %v458_v52 = vld [vmem:[%s7075_s3 + $0xa8] sm:$0xff]  ;;  %v457_v53 = vld [vmem:[%s7075_s3 + $0xa0] sm:$0xff]  ;;  %v302_v54 = vpack.c.bf16 %v216_v51, %v215_v50  ;;  %v460_v57 = vld [vmem:[%s7075_s3 + $0xb8] sm:$0xff] }
  0x24   : > { %1830 = vperm.xlu0 %4265, %v444_v15   ;;  %1825 = vperm.xlu1 %4266, %v443_v16   ;;  %v217_v55 = vld [vmem:[%s4660_s13 + $0xa0] sm:$0xff]  ;;  %v218_v56 = vld [vmem:[%s4660_s13 + $0xa8] sm:$0xff]  ;;  %v459_v58 = vld [vmem:[%s7075_s3 + $0xb0] sm:$0xff] }
  0x25   : > { %v303_v59 = vpack.c.bf16 %v218_v56, %v217_v55  ;;  %v219_v60 = vld [vmem:[%s4660_s13 + $0xb0] sm:$0xff]  ;;  %v220_v61 = vld [vmem:[%s4660_s13 + $0xb8] sm:$0xff]  ;;  %v462_v62 = vld [vmem:[%s7075_s3 + $0xc8] sm:$0xff] }
  0x26   : > { %1125 = vmatpush1.bf16.msra.mxu0 %v295_v17  ;;  %4206 = vmatpush1.bf16.msra.mxu1 %v295_v17  ;;  %v461_v63 = vld [vmem:[%s7075_s3 + $0xc0] sm:$0xff]  ;;  %v304_v0 = vpack.c.bf16 %v220_v61, %v219_v60  ;;  %v222_v3 = vld [vmem:[%s4660_s13 + $0xc8] sm:$0xff]  ;;  %v464_v4 = vld [vmem:[%s7075_s3 + $0xd8] sm:$0xff] }
  0x27   : > { %1126 = vmatprep.subr.bf16.mxu0 %v4559_v2  ;;  %4191 = vmatprep.subr.bf16.mxu1 %v4559_v2  ;;  %v221_v1 = vld [vmem:[%s4660_s13 + $0xc0] sm:$0xff]  ;;  %v463_v5 = vld [vmem:[%s7075_s3 + $0xd0] sm:$0xff]  ;;  %v224_v8 = vld [vmem:[%s4660_s13 + $0xd8] sm:$0xff] }
  0x28   : > { %1840 = vperm.xlu0 %4265, %v446_v20   ;;  %1835 = vperm.xlu1 %4266, %v445_v21   ;;  %v305_v6 = vpack.c.bf16 %v222_v3, %v221_v1  ;;  %v223_v7 = vld [vmem:[%s4660_s13 + $0xd0] sm:$0xff]  ;;  %v466_v9 = vld [vmem:[%s7075_s3 + $0xe8] sm:$0xff]  ;;  %v465_v10 = vld [vmem:[%s7075_s3 + $0xe0] sm:$0xff] }
  0x29   : > { %v306_v11 = vpack.c.bf16 %v224_v8, %v223_v7  ;;  %v225_v12 = vld [vmem:[%s4660_s13 + $0xe0] sm:$0xff]  ;;  %v226_v13 = vld [vmem:[%s4660_s13 + $0xe8] sm:$0xff]  ;;  %v468_v14 = vld [vmem:[%s7075_s3 + $0xf8] sm:$0xff] }
  0x2a   : > { %1127 = vmatpush1.bf16.msra.mxu0 %v296_v22  ;;  %4207 = vmatpush1.bf16.msra.mxu1 %v296_v22  ;;  %v467_v15 = vld [vmem:[%s7075_s3 + $0xf0] sm:$0xff]  ;;  %v307_v16 = vpack.c.bf16 %v226_v13, %v225_v12  ;;  %v228_v18 = vld [vmem:[%s4660_s13 + $0xf8] sm:$0xff]  ;;  %v3782_v19 = vld [vmem:[%s7075_s3 + $0x108] sm:$0xff] }
  0x2b   : > { %1128 = vmatprep.subr.bf16.mxu0 %v4559_v2  ;;  %4192 = vmatprep.subr.bf16.mxu1 %v4559_v2  ;;  %v227_v17 = vld [vmem:[%s4660_s13 + $0xf0] sm:$0xff]  ;;  %v3781_v20 = vld [vmem:[%s7075_s3 + $0x100] sm:$0xff]  ;;  %v3784_v24 = vld [vmem:[%s7075_s3 + $0x118] sm:$0xff] }
  0x2c   : > { %1850 = vperm.xlu0 %4265, %v448_v26   ;;  %1845 = vperm.xlu1 %4266, %v447_v27   ;;  %v308_v21 = vpack.c.bf16 %v228_v18, %v227_v17  ;;  %v4267_v22 = vld [vmem:[%s7073_s1] ss:$8 sps:$4 sm:$0xff]   ;;  %v3783_v25 = vld [vmem:[%s7075_s3 + $0x110] sm:$0xff]  ;;  %v4279_v31 = vld [vmem:[%s7073_s1 + $0x24] ss:$8 sps:$4 sm:$0xff]  }
  0x2d   : > { %v4270_v23 = vld [vmem:[%s7073_s1 + $0x200] ss:$8 sps:$4 sm:$0xff]   ;;  %v4276_v26 = vld [vmem:[%s7073_s1 + $0x214] ss:$8 sps:$4 sm:$0xff]   ;;  %v4278_v30 = vld [vmem:[%s7073_s1 + $0x210] ss:$8 sps:$4 sm:$0xff]  }
  0x2e   : > { %1129 = vmatpush1.bf16.msra.mxu0 %v297_v29  ;;  %4208 = vmatpush1.bf16.msra.mxu1 %v297_v29  ;;  %v3786_v27 = vld [vmem:[%s7075_s3 + $0x128] sm:$0xff]  ;;  %v3785_v28 = vld [vmem:[%s7075_s3 + $0x120] sm:$0xff]  ;;  %v4275_v29 = vld [vmem:[%s7073_s1 + $0x10] ss:$8 sps:$4 sm:$0xff]  }
  0x2f   : > { %1130 = vmatprep.subr.bf16.mxu0 %v4559_v2  ;;  %4193 = vmatprep.subr.bf16.mxu1 %v4559_v2  ;;  %v3790_v35 = vld [vmem:[%s7075_s3 + $0x148] sm:$0xff]  ;;  %v3789_v36 = vld [vmem:[%s7075_s3 + $0x140] sm:$0xff]  ;;  %v3791_v40 = vld [vmem:[%s7075_s3 + $0x150] sm:$0xff] }
  0x30   : > { %1860 = vperm.xlu0 %4265, %v450_v32   ;;  %1855 = vperm.xlu1 %4266, %v449_v33   ;;  %v4282_v32 = vld [vmem:[%s7073_s1 + $0x224] ss:$8 sps:$4 sm:$0xff]   ;;  %v3788_v33 = vld [vmem:[%s7075_s3 + $0x138] sm:$0xff]  ;;  %v3799_v56 = vld [vmem:[%s7075_s3 + $0x190] sm:$0xff] }
  0x31   : > { %v4285_v41 = vld [vmem:[%s7073_s1 + $0x34] ss:$8 sps:$4 sm:$0xff]   ;;  %v4287_v45 = vld [vmem:[%s7073_s1 + $0x30] ss:$8 sps:$4 sm:$0xff]   ;;  %v4294_v50 = vld [vmem:[%s7073_s1 + $0x244] ss:$8 sps:$4 sm:$0xff]  }
  0x32   : > { %1131 = vmatpush1.bf16.msra.mxu0 %v298_v34  ;;  %4209 = vmatpush1.bf16.msra.mxu1 %v298_v34  ;;  %v3787_v34 = vld [vmem:[%s7075_s3 + $0x130] sm:$0xff]  ;;  %v3798_v51 = vld [vmem:[%s7075_s3 + $0x188] sm:$0xff]  ;;  %v3800_v55 = vld [vmem:[%s7075_s3 + $0x198] sm:$0xff] }
  0x33   : > { %1132 = vmatprep.subr.bf16.mxu0 %v4559_v2  ;;  %4194 = vmatprep.subr.bf16.mxu1 %v4559_v2  ;;  %v4290_v46 = vld [vmem:[%s7073_s1 + $0x230] ss:$8 sps:$4 sm:$0xff]   ;;  %v3801_v60 = vld [vmem:[%s7075_s3 + $0x1a0] sm:$0xff]  ;;  %v3810_v12 = vld [vmem:[%s7075_s3 + $0x1e8] sm:$0xff] }
  0x34   : > { %1870 = vperm.xlu0 %4265, %v452_v37   ;;  %1865 = vperm.xlu1 %4266, %v451_v38   ;;  %v4281_v37 = vld [vmem:[%s7073_s1 + $0x20] ss:$8 sps:$4 sm:$0xff]   ;;  %v4299_v61 = vld [vmem:[%s7073_s1 + $0x50] ss:$8 sps:$4 sm:$0xff]   ;;  %v4303_v1 = vld [vmem:[%s7073_s1 + $0x64] ss:$8 sps:$4 sm:$0xff]  }
  0x35   : > { %v4284_v38 = vld [vmem:[%s7073_s1 + $0x220] ss:$8 sps:$4 sm:$0xff]   ;;  %v4306_v3 = vld [vmem:[%s7073_s1 + $0x264] ss:$8 sps:$4 sm:$0xff]   ;;  %v3808_v8 = vld [vmem:[%s7075_s3 + $0x1d8] sm:$0xff] }
  0x36   : > { %1133 = vmatpush1.bf16.msra.mxu0 %v299_v39  ;;  %4210 = vmatpush1.bf16.msra.mxu1 %v299_v39  ;;  %v3792_v39 = vld [vmem:[%s7075_s3 + $0x158] sm:$0xff]  ;;  %v4308_v7 = vld [vmem:[%s7073_s1 + $0x260] ss:$8 sps:$4 sm:$0xff]   ;;  %v4318_v17 = vld [vmem:[%s7073_s1 + $0x284] ss:$8 sps:$4 sm:$0xff]  }
  0x37   : > { %1134 = vmatprep.subr.bf16.mxu0 %v4559_v2  ;;  %4195 = vmatprep.subr.bf16.mxu1 %v4559_v2  ;;  %v3809_v13 = vld [vmem:[%s7075_s3 + $0x1e0] sm:$0xff] }
  0x38   : > { %1880 = vperm.xlu0 %4265, %v454_v42   ;;  %1875 = vperm.xlu1 %4266, %v453_v43   ;;  %v4288_v42 = vld [vmem:[%s7073_s1 + $0x234] ss:$8 sps:$4 sm:$0xff]   ;;  %v3794_v43 = vld [vmem:[%s7075_s3 + $0x168] sm:$0xff] }
  0x39   : > { %v4317_v18 = vld [vmem:[%s7073_s1 + $0x80] ss:$8 sps:$4 sm:$0xff]  }
  0x3a   : > { %1135 = vmatpush1.bf16.msra.mxu0 %v300_v44  ;;  %4211 = vmatpush1.bf16.msra.mxu1 %v300_v44  ;;  %v3793_v44 = vld [vmem:[%s7075_s3 + $0x160] sm:$0xff] }
  0x3b   : > { %1136 = vmatprep.subr.bf16.mxu0 %v4559_v2  ;;  %4196 = vmatprep.subr.bf16.mxu1 %v4559_v2 }
  0x3c   : > { %1890 = vperm.xlu0 %4265, %v456_v47   ;;  %1885 = vperm.xlu1 %4266, %v455_v48   ;;  %v3796_v47 = vld [vmem:[%s7075_s3 + $0x178] sm:$0xff]  ;;  %v3795_v48 = vld [vmem:[%s7075_s3 + $0x170] sm:$0xff] }
  0x3e   : > { %1137 = vmatpush1.bf16.msra.mxu0 %v301_v49  ;;  %4212 = vmatpush1.bf16.msra.mxu1 %v301_v49  ;;  %v4291_v49 = vld [vmem:[%s7073_s1 + $0x44] ss:$8 sps:$4 sm:$0xff]  }
  0x3f   : > { %1138 = vmatprep.subr.bf16.mxu0 %v4559_v2  ;;  %4197 = vmatprep.subr.bf16.mxu1 %v4559_v2 }
  0x40   : > { %1900 = vperm.xlu0 %4265, %v458_v52   ;;  %1895 = vperm.xlu1 %4266, %v457_v53   ;;  %v3797_v52 = vld [vmem:[%s7075_s3 + $0x180] sm:$0xff] }
  0x41   : > { %v4293_v53 = vld [vmem:[%s7073_s1 + $0x40] ss:$8 sps:$4 sm:$0xff]  }
  0x42   : > { %1139 = vmatpush1.bf16.msra.mxu0 %v302_v54  ;;  %4213 = vmatpush1.bf16.msra.mxu1 %v302_v54  ;;  %v4296_v54 = vld [vmem:[%s7073_s1 + $0x240] ss:$8 sps:$4 sm:$0xff]  }
  0x43   : > { %1140 = vmatprep.subr.bf16.mxu0 %v4559_v2  ;;  %4198 = vmatprep.subr.bf16.mxu1 %v4559_v2 }
  0x44   : > { %1910 = vperm.xlu0 %4265, %v460_v57   ;;  %1905 = vperm.xlu1 %4266, %v459_v58   ;;  %v4297_v57 = vld [vmem:[%s7073_s1 + $0x54] ss:$8 sps:$4 sm:$0xff]  }
  0x45   : > { %v4300_v58 = vld [vmem:[%s7073_s1 + $0x254] ss:$8 sps:$4 sm:$0xff]  }
  0x46   : > { %1141 = vmatpush1.bf16.msra.mxu0 %v303_v59  ;;  %4214 = vmatpush1.bf16.msra.mxu1 %v303_v59  ;;  %v3802_v59 = vld [vmem:[%s7075_s3 + $0x1a8] sm:$0xff] }
  0x47   : > { %1142 = vmatprep.subr.bf16.mxu0 %v4559_v2  ;;  %4199 = vmatprep.subr.bf16.mxu1 %v4559_v2 }
  0x48   : > { %1920 = vperm.xlu0 %4265, %v462_v62   ;;  %1915 = vperm.xlu1 %4266, %v461_v63   ;;  %v4302_v62 = vld [vmem:[%s7073_s1 + $0x250] ss:$8 sps:$4 sm:$0xff]  }
  0x49   : > { %v3804_v63 = vld [vmem:[%s7075_s3 + $0x1b8] sm:$0xff] }
  0x4a   : > { %1143 = vmatpush1.bf16.msra.mxu0 %v304_v0  ;;  %4215 = vmatpush1.bf16.msra.mxu1 %v304_v0  ;;  %v3803_v0 = vld [vmem:[%s7075_s3 + $0x1b0] sm:$0xff] }
  0x4b   : > { %1144 = vmatprep.subr.bf16.mxu0 %v4559_v2  ;;  %4200 = vmatprep.subr.bf16.mxu1 %v4559_v2 }
  0x4c   : > { %1930 = vperm.xlu0 %4265, %v464_v4   ;;  %1925 = vperm.xlu1 %4266, %v463_v5   ;;  %v3806_v4 = vld [vmem:[%s7075_s3 + $0x1c8] sm:$0xff]  ;;  %v3805_v5 = vld [vmem:[%s7075_s3 + $0x1c0] sm:$0xff] }
  0x4e   : > { %1145 = vmatpush1.bf16.msra.mxu0 %v305_v6  ;;  %4216 = vmatpush1.bf16.msra.mxu1 %v305_v6  ;;  %v4305_v6 = vld [vmem:[%s7073_s1 + $0x60] ss:$8 sps:$4 sm:$0xff]  }
  0x4f   : > { %1146 = vmatprep.subr.bf16.mxu0 %v4559_v2  ;;  %4201 = vmatprep.subr.bf16.mxu1 %v4559_v2 }
  0x50   : > { %1940 = vperm.xlu0 %4265, %v466_v9   ;;  %1935 = vperm.xlu1 %4266, %v465_v10   ;;  %v3807_v9 = vld [vmem:[%s7075_s3 + $0x1d0] sm:$0xff] }
  0x51   : > { %v4309_v10 = vld [vmem:[%s7073_s1 + $0x74] ss:$8 sps:$4 sm:$0xff]  }
  0x52   : > { %1147 = vmatpush1.bf16.msra.mxu0 %v306_v11  ;;  %4217 = vmatpush1.bf16.msra.mxu1 %v306_v11  ;;  %v4312_v11 = vld [vmem:[%s7073_s1 + $0x274] ss:$8 sps:$4 sm:$0xff]  }
  0x53   : > { %1148 = vmatprep.subr.bf16.mxu0 %v4559_v2  ;;  %4202 = vmatprep.subr.bf16.mxu1 %v4559_v2 }
  0x54   : > { %1950 = vperm.xlu0 %4265, %v468_v14   ;;  %1945 = vperm.xlu1 %4266, %v467_v15   ;;  %v4311_v14 = vld [vmem:[%s7073_s1 + $0x70] ss:$8 sps:$4 sm:$0xff]  }
  0x55   : > { %v4314_v15 = vld [vmem:[%s7073_s1 + $0x270] ss:$8 sps:$4 sm:$0xff]  }
  0x56   : > { %1149 = vmatpush1.bf16.msra.mxu0 %v307_v16  ;;  %4218 = vmatpush1.bf16.msra.mxu1 %v307_v16  ;;  %v4315_v16 = vld [vmem:[%s7073_s1 + $0x84] ss:$8 sps:$4 sm:$0xff]  }
  0x57   : > { %1150 = vmatprep.subr.bf16.mxu0 %v4559_v2  ;;  %4203 = vmatprep.subr.bf16.mxu1 %v4559_v2  ;;  %v4273_v2 = vld [vmem:[%s7073_s1 + $0x14] ss:$8 sps:$4 sm:$0xff]  }
  0x58   : > { %2168 = vperm.xlu0 %4265, %v3782_v19   ;;  %2163 = vperm.xlu1 %4266, %v3781_v20   ;;  %v4320_v19 = vld [vmem:[%s7073_s1 + $0x280] ss:$8 sps:$4 sm:$0xff]   ;;  %v4321_v20 = vld [vmem:[%s7073_s1 + $0x94] ss:$8 sps:$4 sm:$0xff]  }
  0x5a   : > { %1151 = vmatpush1.bf16.msra.mxu0 %v308_v21  ;;  %4219 = vmatpush1.bf16.msra.mxu1 %v308_v21  ;;  %v4324_v21 = vld [vmem:[%s7073_s1 + $0x294] ss:$8 sps:$4 sm:$0xff]  }
  0x5c   : > { %2178 = vperm.xlu0 %4265, %v3784_v24   ;;  %2173 = vperm.xlu1 %4266, %v3783_v25   ;;  %v4327_v24 = vld [vmem:[%s7073_s1 + $0xa4] ss:$8 sps:$4 sm:$0xff]  }
  0x5d   : > { %1153 = vmatmul.mubr.bf16.vlgmr.msra.gmra.mrb[0].mxu0 %v4267_v22  ;;  %1409 = vmatmul.mubr.bf16.vlgmr.msra.gmra.mrb[0].mxu1 %v4270_v23  ;;  %v4323_v22 = vld [vmem:[%s7073_s1 + $0x90] ss:$8 sps:$4 sm:$0xff]   ;;  %v4330_v25 = vld [vmem:[%s7073_s1 + $0x2a4] ss:$8 sps:$4 sm:$0xff]  }
  0x5e   : > { %1160 = vmatprep.mubr.bf16.mxu0 %v4273_v2  ;;  %1416 = vmatprep.mubr.bf16.mxu1 %v4276_v26  ;;  %v4326_v23 = vld [vmem:[%s7073_s1 + $0x290] ss:$8 sps:$4 sm:$0xff]   ;;  %v4329_v2 = vld [vmem:[%s7073_s1 + $0xa0] ss:$8 sps:$4 sm:$0xff]  }
  0x5f   : > { %v4332_v26 = vld [vmem:[%s7073_s1 + $0x2a0] ss:$8 sps:$4 sm:$0xff]  }
  0x60   : > { %2188 = vperm.xlu0 %4265, %v3786_v27   ;;  %2183 = vperm.xlu1 %4266, %v3785_v28   ;;  %v4333_v27 = vld [vmem:[%s7073_s1 + $0xb4] ss:$8 sps:$4 sm:$0xff]  }
  0x61   : > { %v4336_v28 = vld [vmem:[%s7073_s1 + $0x2b4] ss:$8 sps:$4 sm:$0xff]  }
  0x64   : > { %2198 = vperm.xlu0 %4265, %v3788_v33   ;;  %2193 = vperm.xlu1 %4266, %v3787_v34   ;;  %v4341_v33 = vld [vmem:[%s7073_s1 + $0xc0] ss:$8 sps:$4 sm:$0xff]  }
  0x65   : > { %1161 = vmatmul.mubr.bf16.gmra.mrb[4].mxu0 %v4275_v29  ;;  %1417 = vmatmul.mubr.bf16.gmra.mrb[4].mxu1 %v4278_v30  ;;  %v4335_v29 = vld [vmem:[%s7073_s1 + $0xb0] ss:$8 sps:$4 sm:$0xff]   ;;  %v4344_v34 = vld [vmem:[%s7073_s1 + $0x2c0] ss:$8 sps:$4 sm:$0xff]  }
  0x66   : > { %1168 = vmatprep.mubr.bf16.mxu0 %v4279_v31  ;;  %1424 = vmatprep.mubr.bf16.mxu1 %v4282_v32  ;;  %v4338_v30 = vld [vmem:[%s7073_s1 + $0x2b0] ss:$8 sps:$4 sm:$0xff]   ;;  %v4339_v31 = vld [vmem:[%s7073_s1 + $0xc4] ss:$8 sps:$4 sm:$0xff]  }
  0x67   : > { %v4342_v32 = vld [vmem:[%s7073_s1 + $0x2c4] ss:$8 sps:$4 sm:$0xff]  }
  0x68   : > { %2208 = vperm.xlu0 %4265, %v3790_v35   ;;  %2203 = vperm.xlu1 %4266, %v3789_v36   ;;  %v4345_v35 = vld [vmem:[%s7073_s1 + $0xd4] ss:$8 sps:$4 sm:$0xff]  }
  0x69   : > { %v4348_v36 = vld [vmem:[%s7073_s1 + $0x2d4] ss:$8 sps:$4 sm:$0xff]  }
  0x6c   : > { %2218 = vperm.xlu0 %4265, %v3792_v39   ;;  %2213 = vperm.xlu1 %4266, %v3791_v40   ;;  %v4351_v39 = vld [vmem:[%s7073_s1 + $0xe4] ss:$8 sps:$4 sm:$0xff]  }
  0x6d   : > { %1169 = vmatmul.mubr.bf16.gmra.mrb[8].mxu0 %v4281_v37  ;;  %1425 = vmatmul.mubr.bf16.gmra.mrb[8].mxu1 %v4284_v38  ;;  %v4347_v37 = vld [vmem:[%s7073_s1 + $0xd0] ss:$8 sps:$4 sm:$0xff]   ;;  %v4354_v40 = vld [vmem:[%s7073_s1 + $0x2e4] ss:$8 sps:$4 sm:$0xff]  }
  0x6e   : > { %1176 = vmatprep.mubr.bf16.mxu0 %v4285_v41  ;;  %1432 = vmatprep.mubr.bf16.mxu1 %v4288_v42  ;;  %v4350_v38 = vld [vmem:[%s7073_s1 + $0x2d0] ss:$8 sps:$4 sm:$0xff]   ;;  %v4353_v41 = vld [vmem:[%s7073_s1 + $0xe0] ss:$8 sps:$4 sm:$0xff]  }
  0x6f   : > { %v4356_v42 = vld [vmem:[%s7073_s1 + $0x2e0] ss:$8 sps:$4 sm:$0xff]  }
  0x70   : > { %2228 = vperm.xlu0 %4265, %v3794_v43   ;;  %2223 = vperm.xlu1 %4266, %v3793_v44   ;;  %v4357_v43 = vld [vmem:[%s7073_s1 + $0xf4] ss:$8 sps:$4 sm:$0xff]  }
  0x71   : > { %v4360_v44 = vld [vmem:[%s7073_s1 + $0x2f4] ss:$8 sps:$4 sm:$0xff]  }
  0x74   : > { %2238 = vperm.xlu0 %4265, %v3796_v47   ;;  %2233 = vperm.xlu1 %4266, %v3795_v48   ;;  %v4359_v47 = vld [vmem:[%s7073_s1 + $0xf0] ss:$8 sps:$4 sm:$0xff]  }
  0x75   : > { %1177 = vmatmul.mubr.bf16.gmra.mrb[12].mxu0 %v4287_v45  ;;  %1433 = vmatmul.mubr.bf16.gmra.mrb[12].mxu1 %v4290_v46  ;;  %v4362_v48 = vld [vmem:[%s7073_s1 + $0x2f0] ss:$8 sps:$4 sm:$0xff]  }
  0x76   : > { %1184 = vmatprep.mubr.bf16.mxu0 %v4291_v49  ;;  %1440 = vmatprep.mubr.bf16.mxu1 %v4294_v50  ;;  %v4363_v49 = vld [vmem:[%s7073_s1 + $0x104] ss:$8 sps:$4 sm:$0xff]  }
  0x78   : > { %2248 = vperm.xlu0 %4265, %v3798_v51   ;;  %2243 = vperm.xlu1 %4266, %v3797_v52   ;;  %v4365_v52 = vld [vmem:[%s7073_s1 + $0x100] ss:$8 sps:$4 sm:$0xff]  }
  0x7c   : > { %2258 = vperm.xlu0 %4265, %v3800_v55   ;;  %2253 = vperm.xlu1 %4266, %v3799_v56  }
  0x7d   : > { %1185 = vmatmul.mubr.bf16.gmra.mrb[16].mxu0 %v4293_v53  ;;  %1441 = vmatmul.mubr.bf16.gmra.mrb[16].mxu1 %v4296_v54  ;;  %v4366_v53 = vld [vmem:[%s7073_s1 + $0x114] ss:$8 sps:$4 sm:$0xff]  }
  0x7e   : > { %1192 = vmatprep.mubr.bf16.mxu0 %v4297_v57  ;;  %1448 = vmatprep.mubr.bf16.mxu1 %v4300_v58  ;;  %v4368_v58 = vld [vmem:[%s7073_s1 + $0x110] ss:$8 sps:$4 sm:$0xff]  }
  0x80   : > { %2268 = vperm.xlu0 %4265, %v3802_v59   ;;  %2263 = vperm.xlu1 %4266, %v3801_v60   ;;  %v4369_v59 = vld [vmem:[%s7073_s1 + $0x124] ss:$8 sps:$4 sm:$0xff]  }
  0x84   : > { %2278 = vperm.xlu0 %4265, %v3804_v63   ;;  %2273 = vperm.xlu1 %4266, %v3803_v0   ;;  %v4372_v63 = vld [vmem:[%s7073_s1 + $0x134] ss:$8 sps:$4 sm:$0xff]  }
  0x85   : > { %1193 = vmatmul.mubr.bf16.gmra.mrb[20].mxu0 %v4299_v61  ;;  %1449 = vmatmul.mubr.bf16.gmra.mrb[20].mxu1 %v4302_v62  ;;  %v4371_v62 = vld [vmem:[%s7073_s1 + $0x120] ss:$8 sps:$4 sm:$0xff]  }
  0x86   : > { %1200 = vmatprep.mubr.bf16.mxu0 %v4303_v1  ;;  %1456 = vmatprep.mubr.bf16.mxu1 %v4306_v3  ;;  %v4374_v3 = vld [vmem:[%s7073_s1 + $0x130] ss:$8 sps:$4 sm:$0xff]  }
  0x88   : > { %2288 = vperm.xlu0 %4265, %v3806_v4   ;;  %2283 = vperm.xlu1 %4266, %v3805_v5   ;;  %v4375_v4 = vld [vmem:[%s7073_s1 + $0x144] ss:$8 sps:$4 sm:$0xff]  }
  0x8c   : > { %2298 = vperm.xlu0 %4265, %v3808_v8   ;;  %2293 = vperm.xlu1 %4266, %v3807_v9   ;;  %v4377_v9 = vld [vmem:[%s7073_s1 + $0x140] ss:$8 sps:$4 sm:$0xff]  }
  0x8d   : > { %1201 = vmatmul.mubr.bf16.gmra.mrb[24].mxu0 %v4305_v6  ;;  %1457 = vmatmul.mubr.bf16.gmra.mrb[24].mxu1 %v4308_v7 }
  0x8e   : > { %1208 = vmatprep.mubr.bf16.mxu0 %v4309_v10  ;;  %1464 = vmatprep.mubr.bf16.mxu1 %v4312_v11  ;;  %v4378_v10 = vld [vmem:[%s7073_s1 + $0x154] ss:$8 sps:$4 sm:$0xff]  }
  0x90   : > { %2308 = vperm.xlu0 %4265, %v3810_v12   ;;  %2303 = vperm.xlu1 %4266, %v3809_v13   ;;  %v4380_v13 = vld [vmem:[%s7073_s1 + $0x150] ss:$8 sps:$4 sm:$0xff]  }
  0x95   : > { %1209 = vmatmul.mubr.bf16.gmra.mrb[28].mxu0 %v4311_v14  ;;  %1465 = vmatmul.mubr.bf16.gmra.mrb[28].mxu1 %v4314_v15  ;;  %v4381_v14 = vld [vmem:[%s7073_s1 + $0x164] ss:$8 sps:$4 sm:$0xff]  }
  0x96   : > { %1216 = vmatprep.mubr.bf16.mxu0 %v4315_v16  ;;  %1472 = vmatprep.mubr.bf16.mxu1 %v4318_v17  ;;  %v4383_v17 = vld [vmem:[%s7073_s1 + $0x160] ss:$8 sps:$4 sm:$0xff]  }
  0x97   : > { %v5084_v45 = vpop.permute.xlu0 %1795  ;;  %v5086_v46 = vpop.permute.xlu1 %1800 }
  0x9b   : > { %v5097_v50 = vpop.permute.xlu0 %1810  ;;  %v5099_v51 = vpop.permute.xlu1 %1805 }
  0x9d   : > { %1217 = vmatmul.mubr.bf16.gmra.mrb[32].mxu0 %v4317_v18  ;;  %1473 = vmatmul.mubr.bf16.gmra.mrb[32].mxu1 %v4320_v19  ;;  %v4384_v18 = vld [vmem:[%s7073_s1 + $0x174] ss:$8 sps:$4 sm:$0xff]  }
  0x9e   : > { %1224 = vmatprep.mubr.bf16.mxu0 %v4321_v20  ;;  %1480 = vmatprep.mubr.bf16.mxu1 %v4324_v21 }
  0x9f   : > { %v5107_v54 = vpop.permute.xlu0 %1820  ;;  %v5109_v55 = vpop.permute.xlu1 %1815 }
  0xa3   : > { %v5111_v56 = vpop.permute.xlu0 %1830  ;;  %v5113_v57 = vpop.permute.xlu1 %1825 }
  0xa5   : > { %1225 = vmatmul.mubr.bf16.gmra.mrb[36].mxu0 %v4323_v22  ;;  %1481 = vmatmul.mubr.bf16.gmra.mrb[36].mxu1 %v4326_v23  ;;  %v4386_v23 = vld [vmem:[%s7073_s1 + $0x170] ss:$8 sps:$4 sm:$0xff]  }
  0xa6   : > { %1232 = vmatprep.mubr.bf16.mxu0 %v4327_v24  ;;  %1488 = vmatprep.mubr.bf16.mxu1 %v4330_v25  ;;  %v4387_v24 = vld [vmem:[%s7073_s1 + $0x184] ss:$8 sps:$4 sm:$0xff]  }
  0xa7   : > { %v5121_v60 = vpop.permute.xlu0 %1840  ;;  %v5123_v61 = vpop.permute.xlu1 %1835 }
  0xab   : > { %v5131_v0 = vpop.permute.xlu0 %1850  ;;  %v5133_v1 = vpop.permute.xlu1 %1845 }
  0xad   : > { %1233 = vmatmul.mubr.bf16.gmra.mrb[40].mxu0 %v4329_v2  ;;  %1489 = vmatmul.mubr.bf16.gmra.mrb[40].mxu1 %v4332_v26  ;;  %v4389_v26 = vld [vmem:[%s7073_s1 + $0x180] ss:$8 sps:$4 sm:$0xff]  }
  0xae   : > { %1240 = vmatprep.mubr.bf16.mxu0 %v4333_v27  ;;  %1496 = vmatprep.mubr.bf16.mxu1 %v4336_v28  ;;  %v4390_v27 = vld [vmem:[%s7073_s1 + $0x194] ss:$8 sps:$4 sm:$0xff]  }
  0xaf   : > { %v5141_v5 = vpop.permute.xlu0 %1860  ;;  %v5143_v6 = vpop.permute.xlu1 %1855 }
  0xb3   : > { %v5145_v7 = vpop.permute.xlu0 %1870  ;;  %v5147_v8 = vpop.permute.xlu1 %1865 }
  0xb5   : > { %1241 = vmatmul.mubr.bf16.gmra.mrb[44].mxu0 %v4335_v29  ;;  %1497 = vmatmul.mubr.bf16.gmra.mrb[44].mxu1 %v4338_v30  ;;  %v4392_v30 = vld [vmem:[%s7073_s1 + $0x190] ss:$8 sps:$4 sm:$0xff]  }
  0xb6   : > { %1248 = vmatprep.mubr.bf16.mxu0 %v4339_v31  ;;  %1504 = vmatprep.mubr.bf16.mxu1 %v4342_v32  ;;  %v4393_v31 = vld [vmem:[%s7073_s1 + $0x1a4] ss:$8 sps:$4 sm:$0xff]  }
  0xb7   : > { %v5155_v11 = vpop.permute.xlu0 %1880  ;;  %v5157_v12 = vpop.permute.xlu1 %1875 }
  0xbb   : > { %v5165_v15 = vpop.permute.xlu0 %1890  ;;  %v5167_v16 = vpop.permute.xlu1 %1885 }
  0xbd   : > { %1249 = vmatmul.mubr.bf16.gmra.mrb[48].mxu0 %v4341_v33  ;;  %1505 = vmatmul.mubr.bf16.gmra.mrb[48].mxu1 %v4344_v34 }
  0xbe   : > { %1256 = vmatprep.mubr.bf16.mxu0 %v4345_v35  ;;  %1512 = vmatprep.mubr.bf16.mxu1 %v4348_v36  ;;  %v4395_v36 = vld [vmem:[%s7073_s1 + $0x1a0] ss:$8 sps:$4 sm:$0xff]  }
  0xbf   : > { %v5175_v19 = vpop.permute.xlu0 %1900  ;;  %v5177_v20 = vpop.permute.xlu1 %1895 }
  0xc3   : > { %v5179_v21 = vpop.permute.xlu0 %1910  ;;  %v5181_v22 = vpop.permute.xlu1 %1905 }
  0xc5   : > { %1257 = vmatmul.mubr.bf16.gmra.mrb[52].mxu0 %v4347_v37  ;;  %1513 = vmatmul.mubr.bf16.gmra.mrb[52].mxu1 %v4350_v38  ;;  %v4396_v37 = vld [vmem:[%s7073_s1 + $0x1b4] ss:$8 sps:$4 sm:$0xff]  }
  0xc6   : > { %1264 = vmatprep.mubr.bf16.mxu0 %v4351_v39  ;;  %1520 = vmatprep.mubr.bf16.mxu1 %v4354_v40 }
  0xc7   : > { %v5189_v25 = vpop.permute.xlu0 %1920  ;;  %v5191_v2 = vpop.permute.xlu1 %1915 }
  0xcb   : > { %v5199_v28 = vpop.permute.xlu0 %1930  ;;  %v5201_v29 = vpop.permute.xlu1 %1925 }
  0xcd   : > { %1265 = vmatmul.mubr.bf16.gmra.mrb[56].mxu0 %v4353_v41  ;;  %1521 = vmatmul.mubr.bf16.gmra.mrb[56].mxu1 %v4356_v42 }
  0xce   : > { %1272 = vmatprep.mubr.bf16.mxu0 %v4357_v43  ;;  %1528 = vmatprep.mubr.bf16.mxu1 %v4360_v44  ;;  %v4398_v44 = vld [vmem:[%s7073_s1 + $0x1b0] ss:$8 sps:$4 sm:$0xff]  }
  0xcf   : > { %v5209_v32 = vpop.permute.xlu0 %1940  ;;  %v5211_v33 = vpop.permute.xlu1 %1935 }
  0xd3   : > { %v5213_v34 = vpop.permute.xlu0 %1950  ;;  %v5215_v35 = vpop.permute.xlu1 %1945 }
  0xd5   : > { %1273 = vmatmul.mubr.bf16.gmra.mrb[60].mxu0 %v4359_v47  ;;  %1529 = vmatmul.mubr.bf16.gmra.mrb[60].mxu1 %v4362_v48 }
  0xd6   : > { %1280 = vmatprep.mubr.bf16.mxu0 %v4363_v49  ;;  %v4399_v49 = vld [vmem:[%s7073_s1 + $0x1c4] ss:$8 sps:$4 sm:$0xff]  }
  0xd7   : > { %v5223_v38 = vpop.permute.xlu0 %2168  ;;  %v5225_v39 = vpop.permute.xlu1 %2163 }
  0xd8   : > { %7082 = vst [vmem:[#allocation6_spill] sm:$0xff] %v5225_v39 }
  0xdd   : > { %1281 = vmatmul.mubr.bf16.gmra.mrb[64].mxu0 %v4365_v52 }
  0xde   : > { %1288 = vmatprep.mubr.bf16.mxu0 %v4366_v53 }
  0xe5   : > { %1289 = vmatmul.mubr.bf16.gmra.mrb[68].mxu0 %v4368_v58  ;;  %v5236_v58 = vpop.permute.xlu0 %2178 }
  0xe6   : > { %1296 = vmatprep.mubr.bf16.mxu0 %v4369_v59  ;;  %7083 = vst [vmem:[#allocation7_spill] sm:$0xff] %v5236_v58  ;;  %v5238_v59 = vpop.permute.xlu1 %2173 }
  0xe7   : > { %7084 = vst [vmem:[#allocation8_spill] sm:$0xff] %v5238_v59 }
  0xed   : > { %1297 = vmatmul.mubr.bf16.gmra.mrb[72].mxu0 %v4371_v62 }
  0xee   : > { %1304 = vmatprep.mubr.bf16.mxu0 %v4372_v63 }
  0xf5   : > { %1305 = vmatmul.mubr.bf16.gmra.mrb[76].mxu0 %v4374_v3 }
  0xf6   : > { %1312 = vmatprep.mubr.bf16.mxu0 %v4375_v4  ;;  %v4401_v4 = vld [vmem:[%s7073_s1 + $0x1c0] ss:$8 sps:$4 sm:$0xff]  }
  0xfd   : > { %1313 = vmatmul.mubr.bf16.gmra.mrb[80].mxu0 %v4377_v9 }
  0xfe   : > { %1320 = vmatprep.mubr.bf16.mxu0 %v4378_v10 }
 0x105   : > { %1321 = vmatmul.mubr.bf16.gmra.mrb[84].mxu0 %v4380_v13 }
 0x106   : > { %1328 = vmatprep.mubr.bf16.mxu0 %v4381_v14  ;;  %v4402_v14 = vld [vmem:[%s7073_s1 + $0x1d4] ss:$8 sps:$4 sm:$0xff]  }
 0x10d   : > { %1329 = vmatmul.mubr.bf16.gmra.mrb[88].mxu0 %v4383_v17 }
 0x10e   : > { %1336 = vmatprep.mubr.bf16.mxu0 %v4384_v18 }
 0x115   : > { %1337 = vmatmul.mubr.bf16.gmra.mrb[92].mxu0 %v4386_v23  ;;  %v5250_v23 = vpop.permute.xlu0 %2188 }
 0x116   : > { %1344 = vmatprep.mubr.bf16.mxu0 %v4387_v24  ;;  %7085 = vst [vmem:[#allocation9_spill] sm:$0xff] %v5250_v23  ;;  %v5252_v24 = vpop.permute.xlu1 %2183 }
 0x117   : > { %7086 = vst [vmem:[#allocation10_spill] sm:$0xff] %v5252_v24 }
 0x11d   : > { %1345 = vmatmul.mubr.bf16.gmra.mrb[96].mxu0 %v4389_v26 }
 0x11e   : > { %1352 = vmatprep.mubr.bf16.mxu0 %v4390_v27 }
 0x125   : > { %1353 = vmatmul.mubr.bf16.gmra.mrb[100].mxu0 %v4392_v30 }
 0x126   : > { %1360 = vmatprep.mubr.bf16.mxu0 %v4393_v31  ;;  %v4404_v31 = vld [vmem:[%s7073_s1 + $0x1d0] ss:$8 sps:$4 sm:$0xff]  }
 0x12d   : > { %1361 = vmatmul.mubr.bf16.gmra.mrb[104].mxu0 %v4395_v36 }
 0x12e   : > { %1368 = vmatprep.mubr.bf16.mxu0 %v4396_v37 }
 0x130   : > { %v1154_v40 = vpop.f32.mrb[0].mxu0  ;;  %v1410_v41 = vpop.f32.mrb[0].mxu1 }
 0x131   : > { %1537 = vrot.lane.b32.xlu0 %v1154_v40, %s4560_s22  ;;  %v1156_v42 = vpop.f32.mrb[1].mxu0  ;;  %v1412_v43 = vpop.f32.mrb[1].mxu1 }
 0x132   : > { %v1157_v47 = vpop.f32.mrb[2].mxu0  ;;  %v1413_v48 = vpop.f32.mrb[2].mxu1 }
 0x133   : > { %v1159_v52 = vpop.f32.mrb[3].mxu0  ;;  %1667 = vrot.lane.b32.xlu1 %v1413_v48, %s4561_s30  ;;  %v1415_v53 = vpop.f32.mrb[3].mxu1 }
 0x134   : > { %v4407_v53 = vld [vmem:[%s7073_s1 + $0x1e0] ss:$8 sps:$4 sm:$0xff]  }
 0x135   : > { %1369 = vmatmul.mubr.bf16.gmra.mrb[108].mxu0 %v4398_v44  ;;  %1665 = vrot.lane.b32.xlu0 %v1410_v41, %s4561_s30  ;;  %v4405_v41 = vld [vmem:[%s7073_s1 + $0x1e4] ss:$8 sps:$4 sm:$0xff]   ;;  %v5264_v44 = vpop.permute.xlu0 %2198 }
 0x136   : > { %1376 = vmatprep.mubr.bf16.mxu0 %v4399_v49  ;;  %7087 = vst [vmem:[#allocation11_spill] sm:$0xff] %v5264_v44 }
 0x138   : > { %v1162_v62 = vpop.f32.mrb[4].mxu0  ;;  %v1418_v63 = vpop.f32.mrb[4].mxu1 }
 0x139   : > { %1539 = vrot.lane.b32.xlu0 %v1157_v47, %s4560_s22  ;;  %1541 = vrot.lane.b32.xlu1 %v1162_v62, %s4560_s22  ;;  %v1164_v3 = vpop.f32.mrb[5].mxu0  ;;  %v1420_v9 = vpop.f32.mrb[5].mxu1 }
 0x13a   : > { %v1165_v10 = vpop.f32.mrb[6].mxu0  ;;  %v1421_v13 = vpop.f32.mrb[6].mxu1 }
 0x13b   : > { %v1167_v17 = vpop.f32.mrb[7].mxu0  ;;  %v1423_v18 = vpop.f32.mrb[7].mxu1 }
 0x13c   : > { %v5266_v47 = vpop.permute.xlu1 %2193 }
 0x13d   : > { %1377 = vmatmul.mubr.bf16.gmra.mrb[112].mxu0 %v4401_v4  ;;  %1669 = vrot.lane.b32.xlu0 %v1418_v63, %s4561_s30  ;;  %7088 = vst [vmem:[#allocation12_spill] sm:$0xff] %v5266_v47  ;;  %v4408_v4 = vld [vmem:[%s7073_s1 + $0x1f4] ss:$8 sps:$4 sm:$0xff]   ;;  %v3817_v47 = vld [vmem:[%s7075_s3 + $0x220] sm:$0xff] }
 0x13e   : > { %1543 = vrot.lane.b32.xlu1 %v1165_v10, %s4560_s22  ;;  %1384 = vmatprep.mubr.bf16.mxu0 %v4402_v14 }
 0x140   : > { %v1170_v26 = vpop.f32.mrb[8].mxu0  ;;  %v1426_v27 = vpop.f32.mrb[8].mxu1 }
 0x141   : > { %1545 = vrot.lane.b32.xlu0 %v1170_v26, %s4560_s22  ;;  %v1172_v30 = vpop.f32.mrb[9].mxu0  ;;  %v1428_v36 = vpop.f32.mrb[9].mxu1 }
 0x142   : > { %1671 = vrot.lane.b32.xlu1 %v1421_v13, %s4561_s30  ;;  %v1173_v37 = vpop.f32.mrb[10].mxu0  ;;  %v1429_v40 = vpop.f32.mrb[10].mxu1 }
 0x143   : > { %v1175_v42 = vpop.f32.mrb[11].mxu0  ;;  %v1431_v43 = vpop.f32.mrb[11].mxu1 }
 0x144   : > { %v5278_v13 = vpop.permute.xlu0 %2208  ;;  %v5280_v14 = vpop.permute.xlu1 %2203 }
 0x145   : > { %1385 = vmatmul.mubr.bf16.gmra.mrb[116].mxu0 %v4404_v31  ;;  %1673 = vrot.lane.b32.xlu0 %v1426_v27, %s4561_s30  ;;  %7089 = vst [vmem:[#allocation13_spill] sm:$0xff] %v5278_v13  ;;  %7090 = vst [vmem:[#allocation14_spill] sm:$0xff] %v5280_v14  ;;  %v4410_v27 = vld [vmem:[%s7073_s1 + $0x1f0] ss:$8 sps:$4 sm:$0xff]  }
 0x146   : > { %1547 = vrot.lane.b32.xlu1 %v1173_v37, %s4560_s22  ;;  %1392 = vmatprep.mubr.bf16.mxu0 %v4405_v41 }
 0x148   : > { %v1178_v48 = vpop.f32.mrb[12].mxu0  ;;  %v1434_v49 = vpop.f32.mrb[12].mxu1 }
 0x149   : > { %1549 = vrot.lane.b32.xlu0 %v1178_v48, %s4560_s22  ;;  %v1180_v52 = vpop.f32.mrb[13].mxu0  ;;  %v1436_v62 = vpop.f32.mrb[13].mxu1 }
 0x14a   : > { %1675 = vrot.lane.b32.xlu1 %v1429_v40, %s4561_s30  ;;  %v1181_v63 = vpop.f32.mrb[14].mxu0  ;;  %v1437_v3 = vpop.f32.mrb[14].mxu1 }
 0x14b   : > { %v1183_v9 = vpop.f32.mrb[15].mxu0  ;;  %v1439_v10 = vpop.f32.mrb[15].mxu1 }
 0x14c   : > { %v5289_v41 = vpop.permute.xlu0 %2218  ;;  %v5291_v42 = vpop.permute.xlu1 %2213 }
 0x14d   : > { %1393 = vmatmul.mubr.bf16.gmra.mrb[120].mxu0 %v4407_v53  ;;  %1677 = vrot.lane.b32.xlu0 %v1434_v49, %s4561_s30  ;;  %7091 = vst [vmem:[#allocation15_spill] sm:$0xff] %v5289_v41  ;;  %7092 = vst [vmem:[#allocation16_spill] sm:$0xff] %v5291_v42 }
 0x14e   : > { %1551 = vrot.lane.b32.xlu1 %v1181_v63, %s4560_s22  ;;  %1400 = vmatprep.mubr.bf16.mxu0 %v4408_v4 }
 0x150   : > { %v1186_v17 = vpop.f32.mrb[16].mxu0  ;;  %v1442_v18 = vpop.f32.mrb[16].mxu1 }
 0x151   : > { %1553 = vrot.lane.b32.xlu0 %v1186_v17, %s4560_s22  ;;  %v1188_v26 = vpop.f32.mrb[17].mxu0  ;;  %v1444_v30 = vpop.f32.mrb[17].mxu1 }
 0x152   : > { %1679 = vrot.lane.b32.xlu1 %v1437_v3, %s4561_s30  ;;  %v1189_v31 = vpop.f32.mrb[18].mxu0  ;;  %v1445_v36 = vpop.f32.mrb[18].mxu1 }
 0x153   : > { %v1191_v37 = vpop.f32.mrb[19].mxu0  ;;  %v1447_v40 = vpop.f32.mrb[19].mxu1 }
 0x154   : > { %v5297_v4 = vpop.permute.xlu0 %2228  ;;  %v5299_v9 = vpop.permute.xlu1 %2223 }
 0x155   : > { %1401 = vmatmul.mubr.bf16.gmra.mrb[124].mxu0 %v4410_v27  ;;  %1681 = vrot.lane.b32.xlu0 %v1442_v18, %s4561_s30  ;;  %7093 = vst [vmem:[#allocation17_spill] sm:$0xff] %v5297_v4  ;;  %7094 = vst [vmem:[#allocation18_spill] sm:$0xff] %v5299_v9 }
 0x156   : > { %1555 = vrot.lane.b32.xlu1 %v1189_v31, %s4560_s22 }
 0x158   : > { %v1194_v43 = vpop.f32.mrb[20].mxu0  ;;  %v1450_v48 = vpop.f32.mrb[20].mxu1 }
 0x159   : > { %1557 = vrot.lane.b32.xlu0 %v1194_v43, %s4560_s22  ;;  %v1196_v49 = vpop.f32.mrb[21].mxu0  ;;  %v1452_v52 = vpop.f32.mrb[21].mxu1 }
 0x15a   : > { %1683 = vrot.lane.b32.xlu1 %v1445_v36, %s4561_s30  ;;  %v1197_v53 = vpop.f32.mrb[22].mxu0  ;;  %v1453_v62 = vpop.f32.mrb[22].mxu1 }
 0x15b   : > { %v1199_v63 = vpop.f32.mrb[23].mxu0  ;;  %v1455_v3 = vpop.f32.mrb[23].mxu1 }
 0x15c   : > { %v5305_v37 = vpop.permute.xlu0 %2238  ;;  %v5307_v40 = vpop.permute.xlu1 %2233 }
 0x15d   : > { %1685 = vrot.lane.b32.xlu0 %v1450_v48, %s4561_s30  ;;  %7095 = vst [vmem:[#allocation19_spill] sm:$0xff] %v5305_v37  ;;  %7096 = vst [vmem:[#allocation20_spill] sm:$0xff] %v5307_v40 }
 0x15e   : > { %1559 = vrot.lane.b32.xlu1 %v1197_v53, %s4560_s22 }
 0x160   : > { %v1202_v10 = vpop.f32.mrb[24].mxu0  ;;  %v1458_v17 = vpop.f32.mrb[24].mxu1 }
 0x161   : > { %1561 = vrot.lane.b32.xlu0 %v1202_v10, %s4560_s22  ;;  %v1204_v18 = vpop.f32.mrb[25].mxu0  ;;  %v1460_v26 = vpop.f32.mrb[25].mxu1 }
 0x162   : > { %1687 = vrot.lane.b32.xlu1 %v1453_v62, %s4561_s30  ;;  %v1205_v27 = vpop.f32.mrb[26].mxu0  ;;  %v1461_v30 = vpop.f32.mrb[26].mxu1 }
 0x163   : > { %v1207_v31 = vpop.f32.mrb[27].mxu0  ;;  %v1463_v36 = vpop.f32.mrb[27].mxu1 }
 0x164   : > { %v5313_v10 = vpop.permute.xlu0 %2248 }
 0x165   : > { %1689 = vrot.lane.b32.xlu0 %v1458_v17, %s4561_s30  ;;  %7097 = vst [vmem:[#allocation21_spill] sm:$0xff] %v5313_v10  ;;  %v5315_v17 = vpop.permute.xlu1 %2243  ;;  %v3811_v10 = vld [vmem:[%s7075_s3 + $0x1f0] sm:$0xff] }
 0x166   : > { %1563 = vrot.lane.b32.xlu1 %v1205_v27, %s4560_s22  ;;  %7098 = vst [vmem:[#allocation22_spill] sm:$0xff] %v5315_v17 }
 0x168   : > { %v1210_v43 = vpop.f32.mrb[28].mxu0  ;;  %v1466_v48 = vpop.f32.mrb[28].mxu1 }
 0x169   : > { %1565 = vrot.lane.b32.xlu0 %v1210_v43, %s4560_s22  ;;  %v1212_v49 = vpop.f32.mrb[29].mxu0  ;;  %v1468_v52 = vpop.f32.mrb[29].mxu1 }
 0x16a   : > { %1691 = vrot.lane.b32.xlu1 %v1461_v30, %s4561_s30  ;;  %v1213_v53 = vpop.f32.mrb[30].mxu0  ;;  %v1469_v62 = vpop.f32.mrb[30].mxu1 }
 0x16b   : > { %v1215_v63 = vpop.f32.mrb[31].mxu0  ;;  %v1471_v3 = vpop.f32.mrb[31].mxu1 }
 0x16c   : > { %v5323_v52 = vpop.permute.xlu1 %2253 }
 0x16d   : > { %1693 = vrot.lane.b32.xlu0 %v1466_v48, %s4561_s30  ;;  %v5321_v48 = vpop.permute.xlu0 %2258  ;;  %7100 = vst [vmem:[#allocation24_spill] sm:$0xff] %v5323_v52 }
 0x16e   : > { %1567 = vrot.lane.b32.xlu1 %v1213_v53, %s4560_s22  ;;  %7099 = vst [vmem:[#allocation23_spill] sm:$0xff] %v5321_v48 }
 0x170   : > { %v1218_v18 = vpop.f32.mrb[32].mxu0  ;;  %v1474_v26 = vpop.f32.mrb[32].mxu1 }
 0x171   : > { %1569 = vrot.lane.b32.xlu0 %v1218_v18, %s4560_s22  ;;  %v1220_v27 = vpop.f32.mrb[33].mxu0  ;;  %v1476_v31 = vpop.f32.mrb[33].mxu1 }
 0x172   : > { %1695 = vrot.lane.b32.xlu1 %v1469_v62, %s4561_s30  ;;  %v1221_v30 = vpop.f32.mrb[34].mxu0  ;;  %v1477_v36 = vpop.f32.mrb[34].mxu1 }
 0x173   : > { %v1223_v43 = vpop.f32.mrb[35].mxu0  ;;  %v1479_v49 = vpop.f32.mrb[35].mxu1 }
 0x175   : > { %1697 = vrot.lane.b32.xlu0 %v1474_v26, %s4561_s30  ;;  %v5329_v26 = vpop.permute.xlu0 %2268 }
 0x176   : > { %1571 = vrot.lane.b32.xlu1 %v1221_v30, %s4560_s22  ;;  %7101 = vst [vmem:[#allocation25_spill] sm:$0xff] %v5329_v26  ;;  %v5331_v30 = vpop.permute.xlu1 %2263 }
 0x177   : > { %7102 = vst [vmem:[#allocation26_spill] sm:$0xff] %v5331_v30 }
 0x178   : > { %v1226_v53 = vpop.f32.mrb[36].mxu0  ;;  %v1482_v63 = vpop.f32.mrb[36].mxu1 }
 0x179   : > { %1573 = vrot.lane.b32.xlu0 %v1226_v53, %s4560_s22  ;;  %v1228_v3 = vpop.f32.mrb[37].mxu0  ;;  %v1484_v18 = vpop.f32.mrb[37].mxu1 }
 0x17a   : > { %1699 = vrot.lane.b32.xlu1 %v1477_v36, %s4561_s30  ;;  %v1229_v62 = vpop.f32.mrb[38].mxu0  ;;  %v1485_v27 = vpop.f32.mrb[38].mxu1 }
 0x17b   : > { %v1231_v31 = vpop.f32.mrb[39].mxu0  ;;  %v1487_v43 = vpop.f32.mrb[39].mxu1 }
 0x17d   : > { %1701 = vrot.lane.b32.xlu0 %v1482_v63, %s4561_s30  ;;  %v5337_v63 = vpop.permute.xlu0 %2278 }
 0x17e   : > { %1575 = vrot.lane.b32.xlu1 %v1229_v62, %s4560_s22  ;;  %7103 = vst [vmem:[#allocation27_spill] sm:$0xff] %v5337_v63  ;;  %v5339_v62 = vpop.permute.xlu1 %2273 }
 0x17f   : > { %7104 = vst [vmem:[#allocation28_spill] sm:$0xff] %v5339_v62 }
 0x180   : > { %v1234_v49 = vpop.f32.mrb[40].mxu0  ;;  %v1490_v40 = vpop.f32.mrb[40].mxu1 }
 0x181   : > { %1577 = vrot.lane.b32.xlu0 %v1234_v49, %s4560_s22  ;;  %v1236_v53 = vpop.f32.mrb[41].mxu0  ;;  %v1492_v3 = vpop.f32.mrb[41].mxu1 }
 0x182   : > { %1703 = vrot.lane.b32.xlu1 %v1485_v27, %s4561_s30  ;;  %v1237_v36 = vpop.f32.mrb[42].mxu0  ;;  %v1493_v18 = vpop.f32.mrb[42].mxu1 }
 0x183   : > { %v1239_v31 = vpop.f32.mrb[43].mxu0  ;;  %v1495_v43 = vpop.f32.mrb[43].mxu1 }
 0x185   : > { %1705 = vrot.lane.b32.xlu0 %v1490_v40, %s4561_s30  ;;  %v5345_v40 = vpop.permute.xlu0 %2288 }
 0x186   : > { %1579 = vrot.lane.b32.xlu1 %v1237_v36, %s4560_s22  ;;  %7105 = vst [vmem:[#allocation29_spill] sm:$0xff] %v5345_v40  ;;  %v5347_v36 = vpop.permute.xlu1 %2283 }
 0x187   : > { %7106 = vst [vmem:[#allocation30_spill] sm:$0xff] %v5347_v36 }
 0x188   : > { %v1242_v37 = vpop.f32.mrb[44].mxu0  ;;  %v1498_v9 = vpop.f32.mrb[44].mxu1 }
 0x189   : > { %1581 = vrot.lane.b32.xlu0 %v1242_v37, %s4560_s22  ;;  %v1244_v49 = vpop.f32.mrb[45].mxu0  ;;  %v1500_v53 = vpop.f32.mrb[45].mxu1 }
 0x18a   : > { %1707 = vrot.lane.b32.xlu1 %v1493_v18, %s4561_s30  ;;  %v1245_v27 = vpop.f32.mrb[46].mxu0  ;;  %v1501_v3 = vpop.f32.mrb[46].mxu1 }
 0x18b   : > { %v1247_v31 = vpop.f32.mrb[47].mxu0  ;;  %v1503_v43 = vpop.f32.mrb[47].mxu1 }
 0x18d   : > { %1709 = vrot.lane.b32.xlu0 %v1498_v9, %s4561_s30  ;;  %v5353_v9 = vpop.permute.xlu0 %2298 }
 0x18e   : > { %1583 = vrot.lane.b32.xlu1 %v1245_v27, %s4560_s22  ;;  %7107 = vst [vmem:[#allocation31_spill] sm:$0xff] %v5353_v9  ;;  %v5355_v27 = vpop.permute.xlu1 %2293 }
 0x18f   : > { %7108 = vst [vmem:[#allocation32_spill] sm:$0xff] %v5355_v27 }
 0x190   : > { %v1250_v4 = vpop.f32.mrb[48].mxu0  ;;  %v1506_v42 = vpop.f32.mrb[48].mxu1 }
 0x191   : > { %1585 = vrot.lane.b32.xlu0 %v1250_v4, %s4560_s22  ;;  %v1252_v37 = vpop.f32.mrb[49].mxu0  ;;  %v1508_v49 = vpop.f32.mrb[49].mxu1 }
 0x192   : > { %1711 = vrot.lane.b32.xlu1 %v1501_v3, %s4561_s30  ;;  %v1253_v18 = vpop.f32.mrb[50].mxu0  ;;  %v1509_v53 = vpop.f32.mrb[50].mxu1 }
 0x193   : > { %v1255_v31 = vpop.f32.mrb[51].mxu0  ;;  %v1511_v43 = vpop.f32.mrb[51].mxu1 }
 0x195   : > { %1713 = vrot.lane.b32.xlu0 %v1506_v42, %s4561_s30  ;;  %v5361_v42 = vpop.permute.xlu0 %2308 }
 0x196   : > { %1587 = vrot.lane.b32.xlu1 %v1253_v18, %s4560_s22  ;;  %7109 = vst [vmem:[#allocation33_spill] sm:$0xff] %v5361_v42  ;;  %v5363_v18 = vpop.permute.xlu1 %2303 }
 0x197   : > { %7110 = vst [vmem:[#allocation34_spill] sm:$0xff] %v5363_v18 }
 0x198   : > { %v1258_v41 = vpop.f32.mrb[52].mxu0  ;;  %v1514_v14 = vpop.f32.mrb[52].mxu1 }
 0x199   : > { %1589 = vrot.lane.b32.xlu0 %v1258_v41, %s4560_s22  ;;  %v1260_v4 = vpop.f32.mrb[53].mxu0  ;;  %v1516_v37 = vpop.f32.mrb[53].mxu1 }
 0x19a   : > { %1715 = vrot.lane.b32.xlu1 %v1509_v53, %s4561_s30  ;;  %v1261_v3 = vpop.f32.mrb[54].mxu0  ;;  %v1517_v49 = vpop.f32.mrb[54].mxu1  ;;  %v634_v4 = vlaneseq }
 0x19b   : > { %v1263_v31 = vpop.f32.mrb[55].mxu0  ;;  %v1519_v43 = vpop.f32.mrb[55].mxu1 }
 0x19c   : > { %v635_v13 = vand.u32 127, %v634_v4  ;;  %v4562_v4 = vmov 1.0  }
 0x19d   : > { %1717 = vrot.lane.b32.xlu0 %v1514_v14, %s4561_s30 }
 0x19e   : > { %1591 = vrot.lane.b32.xlu1 %v1261_v3, %s4560_s22  ;;  %vm636_vm0 = vcmp.eq.s32.totalorder %v635_v13, 0  ;;  %vm637_vm1 = vcmp.eq.s32.totalorder %v635_v13, 127 }
 0x19f   : > { %v5371_v40 = vsel %vm636_vm0, 0.0, %v4562_v4 }
 0x1a0   : > { %v1266_v27 = vpop.f32.mrb[56].mxu0  ;;  %v1522_v9 = vpop.f32.mrb[56].mxu1 }
 0x1a1   : > { %1593 = vrot.lane.b32.xlu0 %v1266_v27, %s4560_s22  ;;  %v1268_v41 = vpop.f32.mrb[57].mxu0  ;;  %v1524_v37 = vpop.f32.mrb[57].mxu1 }
 0x1a2   : > { %1719 = vrot.lane.b32.xlu1 %v1517_v49, %s4561_s30  ;;  %v1269_v53 = vpop.f32.mrb[58].mxu0  ;;  %v1525_v31 = vpop.f32.mrb[58].mxu1 }
 0x1a3   : > { %v1538_v43 = vpop.permute.xlu0 %1537  ;;  %v1271_v36 = vpop.f32.mrb[59].mxu0 }
 0x1a4   : > { %v1527_v14 = vpop.f32.mrb[59].mxu1 }
 0x1a5   : > { %1721 = vrot.lane.b32.xlu0 %v1522_v9, %s4561_s30  ;;  %v1668_v3 = vpop.permute.xlu1 %1667 }
 0x1a6   : > { %1595 = vrot.lane.b32.xlu1 %v1269_v53, %s4560_s22 }
 0x1a7   : > { %v1666_v18 = vpop.permute.xlu0 %1665 }
 0x1a8   : > { %v1274_v42 = vpop.f32.mrb[60].mxu0  ;;  %v1530_v63 = vpop.f32.mrb[60].mxu1 }
 0x1a9   : > { %1597 = vrot.lane.b32.xlu0 %v1274_v42, %s4560_s22  ;;  %v1276_v27 = vpop.f32.mrb[61].mxu0  ;;  %v1532_v41 = vpop.f32.mrb[61].mxu1  ;;  %v3812_v42 = vld [vmem:[%s7075_s3 + $0x1f8] sm:$0xff] }
 0x1aa   : > { %1723 = vrot.lane.b32.xlu1 %v1525_v31, %s4561_s30  ;;  %v1277_v49 = vpop.f32.mrb[62].mxu0  ;;  %v1533_v37 = vpop.f32.mrb[62].mxu1  ;;  %v1601_v31 = vmul.f32 %v1538_v43, %v5371_v40  ;;  %v5379_v41 = vsel %vm637_vm1, 0.0, %v4562_v4 }
 0x1ab   : > { %v1540_v36 = vpop.permute.xlu0 %1539  ;;  %v1542_v14 = vpop.permute.xlu1 %1541 }
 0x1ac   : > { %v1279_v9 = vpop.f32.mrb[63].mxu0  ;;  %v1535_v53 = vpop.f32.mrb[63].mxu1  ;;  %v1602_v48 = vmul.f32 %v1540_v36, %v5371_v40  ;;  %v1603_v30 = vmul.f32 %v1542_v14, %v5371_v40 }
 0x1ad   : > { %1725 = vrot.lane.b32.xlu0 %v1530_v63, %s4561_s30  ;;  %v1730_v53 = vmul.f32 %v1668_v3, %v5379_v41  ;;  %v3813_v3 = vld [vmem:[%s7075_s3 + $0x200] sm:$0xff] }
 0x1ae   : > { %1599 = vrot.lane.b32.xlu1 %v1277_v49, %s4560_s22  ;;  %v3814_v49 = vld [vmem:[%s7075_s3 + $0x208] sm:$0xff] }
 0x1af   : > { %v1670_v27 = vpop.permute.xlu0 %1669 }
 0x1b0   : > { %v1544_v26 = vpop.permute.xlu1 %1543  ;;  %v1282_v44 = vpop.f32.mrb[64].mxu0  ;;  %v1731_v17 = vmul.f32 %v1670_v27, %v5379_v41  ;;  %v3819_v27 = vld [vmem:[%s7075_s3 + $0x230] sm:$0xff] }
 0x1b1   : > { %v1633_v9 = vadd.f32 %v1601_v31, %v1282_v44  ;;  %2318 = vperm.xlu0 %4265, %v3812_v42   ;;  %v1284_v13 = vpop.f32.mrb[65].mxu0  ;;  %v1604_v14 = vmul.f32 %v1544_v26, %v5371_v40 }
 0x1b2   : > { %1727 = vrot.lane.b32.xlu1 %v1533_v37, %s4561_s30  ;;  %v1285_v63 = vpop.f32.mrb[66].mxu0  ;;  %v3816_v37 = vld [vmem:[%s7075_s3 + $0x218] sm:$0xff] }
 0x1b3   : > { %v1634_v43 = vadd.f32 %v1602_v48, %v1285_v63  ;;  %v1546_v62 = vpop.permute.xlu0 %1545  ;;  %v1287_v4 = vpop.f32.mrb[67].mxu0 }
 0x1b4   : > { %v1672_v36 = vpop.permute.xlu1 %1671 }
 0x1b5   : > { %v1762_v44 = vadd.f32 %v1730_v53, %v1634_v43  ;;  %2360 = vperm.xlu0 %4265, %v3814_v49   ;;  %v3818_v49 = vld [vmem:[%s7075_s3 + $0x228] sm:$0xff]  ;;  %v3815_v43 = vld [vmem:[%s7075_s3 + $0x210] sm:$0xff] }
 0x1b6   : > { %2313 = vperm.xlu1 %4266, %v3811_v10  }
 0x1b7   : > { %v1674_v42 = vpop.permute.xlu0 %1673 }
 0x1b8   : > { %v1548_v48 = vpop.permute.xlu1 %1547  ;;  %v1290_v31 = vpop.f32.mrb[68].mxu0 }
 0x1b9   : > { %2370 = vperm.xlu0 %4265, %v3816_v37   ;;  %v1292_v13 = vpop.f32.mrb[69].mxu0  ;;  %v3829_v37 = vld [vmem:[%s7075_s3 + $0x280] sm:$0xff] }
 0x1ba   : > { %2355 = vperm.xlu1 %4266, %v3813_v3   ;;  %v1293_v63 = vpop.f32.mrb[70].mxu0  ;;  %v1635_v3 = vadd.f32 %v1603_v30, %v1290_v31  ;;  %v3831_v30 = vld [vmem:[%s7075_s3 + $0x290] sm:$0xff]  ;;  %v1605_v31 = vmul.f32 %v1546_v62, %v5371_v40  ;;  %v1606_v62 = vmul.f32 %v1548_v48, %v5371_v40 }
 0x1bb   : > { %v1550_v10 = vpop.permute.xlu0 %1549  ;;  %v1295_v53 = vpop.f32.mrb[71].mxu0  ;;  %v1636_v39 = vadd.f32 %v1604_v14, %v1293_v63 }
 0x1bc   : > { %v1676_v4 = vpop.permute.xlu1 %1675  ;;  %v1729_v53 = vmul.f32 %v1666_v18, %v5379_v41  ;;  %v1763_v23 = vadd.f32 %v1731_v17, %v1635_v3  ;;  %v1733_v17 = vmul.f32 %v1674_v42, %v5379_v41 }
 0x1bd   : > { %2380 = vperm.xlu0 %4265, %v3818_v49  }
 0x1be   : > { %2365 = vperm.xlu1 %4266, %v3815_v43   ;;  %v1761_v43 = vadd.f32 %v1729_v53, %v1633_v9  ;;  %v5432_v63 = vadd.f32 %v5099_v51, %v1763_v23  ;;  %v1607_v51 = vmul.f32 %v1550_v10, %v5371_v40  ;;  %v3835_v23 = vld [vmem:[%s7075_s3 + $0x2b0] sm:$0xff]  ;;  %v3832_v10 = vld [vmem:[%s7075_s3 + $0x298] sm:$0xff] }
 0x1bf   : > { %v1678_v13 = vpop.permute.xlu0 %1677 }
 0x1c0   : > { %v1552_v52 = vpop.permute.xlu1 %1551  ;;  %v1298_v24 = vpop.f32.mrb[72].mxu0  ;;  %v5424_v53 = vadd.f32 %v5084_v45, %v1761_v43 }
 0x1c1   : > { %2435 = vperm.xlu0 %4265, %v3829_v37   ;;  %v1300_v49 = vpop.f32.mrb[73].mxu0  ;;  %v5420_v37 = vadd.f32 %v5086_v46, %v1762_v44  ;;  %v1637_v9 = vadd.f32 %v1605_v31, %v1298_v24  ;;  %v3830_v24 = vld [vmem:[%s7075_s3 + $0x288] sm:$0xff]  ;;  %v1734_v31 = vmul.f32 %v1676_v4, %v5379_v41  ;;  %v1608_v4 = vmul.f32 %v1552_v52, %v5371_v40 }
 0x1c2   : > { %2375 = vperm.xlu1 %4266, %v3817_v47   ;;  %v1301_v59 = vpop.f32.mrb[74].mxu0  ;;  %v1732_v47 = vmul.f32 %v1672_v36, %v5379_v41  ;;  %v2022_v48 = vmul.f32 %v5424_v53, %v5424_v53 }
 0x1c3   : > { %v1554_v18 = vpop.permute.xlu0 %1553  ;;  %v1303_v58 = vpop.f32.mrb[75].mxu0  ;;  %v2023_v3 = vmul.f32 %v5420_v37, %v5420_v37  ;;  %v1765_v14 = vadd.f32 %v1733_v17, %v1637_v9  ;;  %v1638_v49 = vadd.f32 %v1606_v62, %v1301_v59  ;;  %v1985_v43 = vadd.f32 %v5420_v37, %v5424_v53 }
 0x1c4   : > { %v1680_v26 = vpop.permute.xlu1 %1679  ;;  %v3833_v58 = vld [vmem:[%s7075_s3 + $0x2a0] sm:$0xff]  ;;  %v1764_v46 = vadd.f32 %v1732_v47, %v1636_v39 }
 0x1c5   : > { %2445 = vperm.xlu0 %4265, %v3831_v30   ;;  %v2024_v30 = vmul.f32 %v5432_v63, %v5432_v63  ;;  %v2054_v17 = vadd.f32 %v2023_v3, %v2022_v48  ;;  %v1986_v62 = vadd.f32 %v1985_v43, %v5432_v63 }
 0x1c6   : > { %2385 = vperm.xlu1 %4266, %v3819_v27   ;;  %v5450_v59 = vadd.f32 %v5097_v50, %v1764_v46  ;;  %v1735_v50 = vmul.f32 %v1678_v13, %v5379_v41  ;;  %v3820_v46 = vld [vmem:[%s7075_s3 + $0x238] sm:$0xff] }
 0x1c7   : > { %v1682_v44 = vpop.permute.xlu0 %1681 }
 0x1c8   : > { %v1556_v45 = vpop.permute.xlu1 %1555  ;;  %v1306_v36 = vpop.f32.mrb[76].mxu0 }
 0x1c9   : > { %2455 = vperm.xlu0 %4265, %v3833_v58   ;;  %v1308_v42 = vpop.f32.mrb[77].mxu0  ;;  %v1639_v9 = vadd.f32 %v1607_v51, %v1306_v36  ;;  %v2025_v36 = vmul.f32 %v5450_v59, %v5450_v59  ;;  %v1987_v51 = vadd.f32 %v1986_v62, %v5450_v59 }
 0x1ca   : > { %2440 = vperm.xlu1 %4266, %v3830_v24   ;;  %v1309_v39 = vpop.f32.mrb[78].mxu0  ;;  %v5458_v24 = vadd.f32 %v5109_v55, %v1765_v14  ;;  %v1766_v42 = vadd.f32 %v1734_v31, %v1638_v49  ;;  %v3834_v55 = vld [vmem:[%s7075_s3 + $0x2a8] sm:$0xff]  ;;  %v1609_v14 = vmul.f32 %v1554_v18, %v5371_v40  ;;  %v1736_v31 = vmul.f32 %v1680_v26, %v5379_v41 }
 0x1cb   : > { %v1558_v27 = vpop.permute.xlu0 %1557  ;;  %v1311_v47 = vpop.f32.mrb[79].mxu0  ;;  %v1767_v49 = vadd.f32 %v1735_v50, %v1639_v9  ;;  %v1640_v13 = vadd.f32 %v1608_v4, %v1309_v39  ;;  %v3838_v18 = vld [vmem:[%s7075_s3 + $0x2c8] sm:$0xff]  ;;  %v1610_v26 = vmul.f32 %v1556_v45, %v5371_v40 }
 0x1cc   : > { %v1684_v58 = vpop.permute.xlu1 %1683  ;;  %v2055_v47 = vadd.f32 %v2054_v17, %v2024_v30  ;;  %v5475_v43 = vadd.f32 %v5107_v54, %v1766_v42  ;;  %v1988_v9 = vadd.f32 %v1987_v51, %v5458_v24  ;;  %v3836_v54 = vld [vmem:[%s7075_s3 + $0x2b8] sm:$0xff]  ;;  %v1737_v42 = vmul.f32 %v1682_v44, %v5379_v41  ;;  %v3822_v51 = vld [vmem:[%s7075_s3 + $0x248] sm:$0xff] }
 0x1cd   : > { %2465 = vperm.xlu0 %4265, %v3835_v23   ;;  %v2026_v23 = vmul.f32 %v5458_v24, %v5458_v24  ;;  %v5488_v4 = vadd.f32 %v5113_v57, %v1767_v49  ;;  %v1611_v45 = vmul.f32 %v1558_v27, %v5371_v40  ;;  %v3837_v49 = vld [vmem:[%s7075_s3 + $0x2c0] sm:$0xff] }
 0x1ce   : > { %2450 = vperm.xlu1 %4266, %v3832_v10   ;;  %v2056_v39 = vadd.f32 %v2055_v47, %v2025_v36  ;;  %v2027_v47 = vmul.f32 %v5475_v43, %v5475_v43  ;;  %v1989_v44 = vadd.f32 %v1988_v9, %v5475_v43 }
 0x1cf   : > { %v1686_v3 = vpop.permute.xlu0 %1685 }
 0x1d0   : > { %v1560_v48 = vpop.permute.xlu1 %1559  ;;  %v1314_v52 = vpop.f32.mrb[80].mxu0  ;;  %v1739_v9 = vmul.f32 %v1686_v3, %v5379_v41 }
 0x1d1   : > { %2390 = vperm.xlu0 %4265, %v3820_v46   ;;  %v1316_v30 = vpop.f32.mrb[81].mxu0  ;;  %v1641_v10 = vadd.f32 %v1609_v14, %v1314_v52  ;;  %v1768_v46 = vadd.f32 %v1736_v31, %v1640_v13  ;;  %v2057_v14 = vadd.f32 %v2056_v39, %v2026_v23  ;;  %v2028_v13 = vmul.f32 %v5488_v4, %v5488_v4 }
 0x1d2   : > { %2460 = vperm.xlu1 %4266, %v3834_v55   ;;  %v1317_v17 = vpop.f32.mrb[82].mxu0  ;;  %v1738_v30 = vmul.f32 %v1684_v58, %v5379_v41  ;;  %v3840_v58 = vld [vmem:[%s7075_s3 + $0x2d8] sm:$0xff] }
 0x1d3   : > { %v1562_v62 = vpop.permute.xlu0 %1561  ;;  %v1319_v50 = vpop.f32.mrb[83].mxu0  ;;  %v1769_v36 = vadd.f32 %v1737_v42, %v1641_v10  ;;  %v1642_v52 = vadd.f32 %v1610_v26, %v1317_v17  ;;  %v5503_v23 = vadd.f32 %v5111_v56, %v1768_v46  ;;  %v2058_v17 = vadd.f32 %v2057_v14, %v2027_v47  ;;  %v3821_v14 = vld [vmem:[%s7075_s3 + $0x240] sm:$0xff] }
 0x1d4   : > { %v1688_v55 = vpop.permute.xlu1 %1687  ;;  %v1612_v50 = vmul.f32 %v1560_v48, %v5371_v40 }
 0x1d5   : > { %2480 = vperm.xlu0 %4265, %v3838_v18   ;;  %v1990_v18 = vadd.f32 %v1989_v44, %v5488_v4  ;;  %v1770_v42 = vadd.f32 %v1738_v30, %v1642_v52  ;;  %v2059_v47 = vadd.f32 %v2058_v17, %v2028_v13  ;;  %v2029_v3 = vmul.f32 %v5503_v23, %v5503_v23 }
 0x1d6   : > { %2470 = vperm.xlu1 %4266, %v3836_v54   ;;  %v5510_v54 = vadd.f32 %v5123_v61, %v1769_v36 }
 0x1d7   : > { %v1690_v57 = vpop.permute.xlu0 %1689  ;;  %v1991_v52 = vadd.f32 %v1990_v18, %v5503_v23  ;;  %v5524_v44 = vadd.f32 %v5121_v60, %v1770_v42  ;;  %v2060_v17 = vadd.f32 %v2059_v47, %v2029_v3  ;;  %v1613_v18 = vmul.f32 %v1562_v62, %v5371_v40 }
 0x1d8   : > { %v1564_v31 = vpop.permute.xlu1 %1563  ;;  %v1322_v10 = vpop.f32.mrb[84].mxu0 }
 0x1d9   : > { %v1643_v39 = vadd.f32 %v1611_v45, %v1322_v10  ;;  %2400 = vperm.xlu0 %4265, %v3822_v51   ;;  %v1324_v27 = vpop.f32.mrb[85].mxu0  ;;  %v2030_v51 = vmul.f32 %v5510_v54, %v5510_v54  ;;  %v1740_v45 = vmul.f32 %v1688_v55, %v5379_v41  ;;  %v1992_v13 = vadd.f32 %v1991_v52, %v5510_v54  ;;  %v3839_v10 = vld [vmem:[%s7075_s3 + $0x2d0] sm:$0xff] }
 0x1da   : > { %2475 = vperm.xlu1 %4266, %v3837_v49   ;;  %v1325_v56 = vpop.f32.mrb[86].mxu0  ;;  %v3824_v49 = vld [vmem:[%s7075_s3 + $0x258] sm:$0xff] }
 0x1db   : > { %v1566_v26 = vpop.permute.xlu0 %1565  ;;  %v1327_v46 = vpop.f32.mrb[87].mxu0  ;;  %v1771_v48 = vadd.f32 %v1739_v9, %v1643_v39  ;;  %v1644_v61 = vadd.f32 %v1612_v50, %v1325_v56  ;;  %v1614_v9 = vmul.f32 %v1564_v31, %v5371_v40  ;;  %v2061_v42 = vadd.f32 %v2060_v17, %v2030_v51 }
 0x1dc   : > { %v1692_v36 = vpop.permute.xlu1 %1691  ;;  %v2031_v56 = vmul.f32 %v5524_v44, %v5524_v44  ;;  %v1993_v62 = vadd.f32 %v1992_v13, %v5524_v44 }
 0x1dd   : > { %2490 = vperm.xlu0 %4265, %v3840_v58   ;;  %v5536_v60 = vadd.f32 %v5133_v1, %v1771_v48  ;;  %v1772_v39 = vadd.f32 %v1740_v45, %v1644_v61  ;;  %v1741_v58 = vmul.f32 %v1690_v57, %v5379_v41  ;;  %v3842_v1 = vld [vmem:[%s7075_s3 + $0x2e8] sm:$0xff]  ;;  %v3823_v48 = vld [vmem:[%s7075_s3 + $0x250] sm:$0xff]  ;;  %v1742_v52 = vmul.f32 %v1692_v36, %v5379_v41  ;;  %v3841_v36 = vld [vmem:[%s7075_s3 + $0x2e0] sm:$0xff] }
 0x1de   : > { %2395 = vperm.xlu1 %4266, %v3821_v14  }
 0x1df   : > { %v1694_v30 = vpop.permute.xlu0 %1693  ;;  %v2032_v61 = vmul.f32 %v5536_v60, %v5536_v60  ;;  %v5552_v57 = vadd.f32 %v5131_v0, %v1772_v39  ;;  %v1994_v13 = vadd.f32 %v1993_v62, %v5536_v60  ;;  %v1615_v0 = vmul.f32 %v1566_v26, %v5371_v40 }
 0x1e0   : > { %v1568_v55 = vpop.permute.xlu1 %1567  ;;  %v1330_v27 = vpop.f32.mrb[88].mxu0 }
 0x1e1   : > { %2410 = vperm.xlu0 %4265, %v3824_v49   ;;  %v1332_v50 = vpop.f32.mrb[89].mxu0  ;;  %v1645_v46 = vadd.f32 %v1613_v18, %v1330_v27  ;;  %v2062_v49 = vadd.f32 %v2061_v42, %v2031_v56  ;;  %v3826_v18 = vld [vmem:[%s7075_s3 + $0x268] sm:$0xff]  ;;  %v1743_v42 = vmul.f32 %v1694_v30, %v5379_v41  ;;  %v1616_v56 = vmul.f32 %v1568_v55, %v5371_v40 }
 0x1e2   : > { %2485 = vperm.xlu1 %4266, %v3839_v10   ;;  %v1333_v14 = vpop.f32.mrb[90].mxu0  ;;  %v1995_v26 = vadd.f32 %v1994_v13, %v5552_v57 }
 0x1e3   : > { %v1646_v47 = vadd.f32 %v1614_v9, %v1333_v14  ;;  %v1570_v3 = vpop.permute.xlu0 %1569  ;;  %v1335_v31 = vpop.f32.mrb[91].mxu0  ;;  %v1773_v51 = vadd.f32 %v1741_v58, %v1645_v46  ;;  %v2063_v27 = vadd.f32 %v2062_v49, %v2032_v61  ;;  %v2033_v9 = vmul.f32 %v5552_v57, %v5552_v57 }
 0x1e4   : > { %v1696_v45 = vpop.permute.xlu1 %1695 }
 0x1e5   : > { %2500 = vperm.xlu0 %4265, %v3842_v1   ;;  %v5557_v10 = vadd.f32 %v5143_v6, %v1773_v51  ;;  %v1774_v17 = vadd.f32 %v1742_v52, %v1646_v47  ;;  %v3844_v47 = vld [vmem:[%s7075_s3 + $0x2f8] sm:$0xff]  ;;  %v1744_v30 = vmul.f32 %v1696_v45, %v5379_v41  ;;  %v3825_v52 = vld [vmem:[%s7075_s3 + $0x260] sm:$0xff]  ;;  %v2064_v51 = vadd.f32 %v2063_v27, %v2033_v9  ;;  %v3843_v27 = vld [vmem:[%s7075_s3 + $0x2f0] sm:$0xff] }
 0x1e6   : > { %2405 = vperm.xlu1 %4266, %v3823_v48  }
 0x1e7   : > { %7111 = vst [vmem:[#allocation35_spill] sm:$0xff] %v5557_v10  ;;  %v1698_v39 = vpop.permute.xlu0 %1697  ;;  %v2034_v14 = vmul.f32 %v5557_v10, %v5557_v10  ;;  %v5574_v1 = vadd.f32 %v5141_v5, %v1774_v17  ;;  %v1996_v5 = vadd.f32 %v1995_v26, %v5557_v10  ;;  %v7119_v10 = vld [vmem:[#allocation8_spill] sm:$0xff] }
 0x1e8   : > { %v1572_v50 = vpop.permute.xlu1 %1571  ;;  %v1338_v6 = vpop.f32.mrb[92].mxu0 }
 0x1e9   : > { %v1647_v58 = vadd.f32 %v1615_v0, %v1338_v6  ;;  %2420 = vperm.xlu0 %4265, %v3826_v18   ;;  %v1340_v46 = vpop.f32.mrb[93].mxu0  ;;  %7112 = vst [vmem:[#allocation36_spill] sm:$0xff] %v5574_v1  ;;  %v2065_v18 = vadd.f32 %v2064_v51, %v2034_v14  ;;  %v2035_v45 = vmul.f32 %v5574_v1, %v5574_v1  ;;  %v3828_v0 = vld [vmem:[%s7075_s3 + $0x278] sm:$0xff] }
 0x1ea   : > { %2495 = vperm.xlu1 %4266, %v3841_v36   ;;  %v1341_v62 = vpop.f32.mrb[94].mxu0  ;;  %v1997_v9 = vadd.f32 %v1996_v5, %v5574_v1  ;;  %v1618_v46 = vmul.f32 %v1572_v50, %v5371_v40  ;;  %v3827_v50 = vld [vmem:[%s7075_s3 + $0x270] sm:$0xff] }
 0x1eb   : > { %v1775_v55 = vadd.f32 %v1743_v42, %v1647_v58  ;;  %v1648_v31 = vadd.f32 %v1616_v56, %v1341_v62  ;;  %v1574_v48 = vpop.permute.xlu0 %1573  ;;  %v1343_v61 = vpop.f32.mrb[95].mxu0  ;;  %v2066_v14 = vadd.f32 %v2065_v18, %v2035_v45  ;;  %v1745_v62 = vmul.f32 %v1698_v39, %v5379_v41 }
 0x1ec   : > { %v1700_v49 = vpop.permute.xlu1 %1699 }
 0x1ed   : > { %v5585_v13 = vadd.f32 %v5147_v8, %v1775_v55  ;;  %v1776_v17 = vadd.f32 %v1744_v30, %v1648_v31  ;;  %2510 = vperm.xlu0 %4265, %v3844_v47   ;;  %v1617_v8 = vmul.f32 %v1570_v3, %v5371_v40  ;;  %v3846_v55 = vld [vmem:[%s7075_s3 + $0x308] sm:$0xff] }
 0x1ee   : > { %2415 = vperm.xlu1 %4266, %v3825_v52  }
 0x1ef   : > { %v1702_v36 = vpop.permute.xlu0 %1701  ;;  %v2036_v6 = vmul.f32 %v5585_v13, %v5585_v13  ;;  %v5600_v42 = vadd.f32 %v5145_v7, %v1776_v17  ;;  %v1998_v47 = vadd.f32 %v1997_v9, %v5585_v13  ;;  %v1746_v7 = vmul.f32 %v1700_v49, %v5379_v41  ;;  %v3848_v49 = vld [vmem:[%s7075_s3 + $0x318] sm:$0xff] }
 0x1f0   : > { %v1576_v56 = vpop.permute.xlu1 %1575  ;;  %v1346_v58 = vpop.f32.mrb[96].mxu0 }
 0x1f1   : > { %2430 = vperm.xlu0 %4265, %v3828_v0   ;;  %v1348_v26 = vpop.f32.mrb[97].mxu0  ;;  %v1649_v30 = vadd.f32 %v1617_v8, %v1346_v58  ;;  %v2067_v51 = vadd.f32 %v2066_v14, %v2036_v6  ;;  %v2037_v39 = vmul.f32 %v5600_v42, %v5600_v42  ;;  %v1999_v45 = vadd.f32 %v1998_v47, %v5600_v42  ;;  %v3845_v6 = vld [vmem:[%s7075_s3 + $0x300] sm:$0xff] }
 0x1f2   : > { %2505 = vperm.xlu1 %4266, %v3843_v27   ;;  %v1349_v3 = vpop.f32.mrb[98].mxu0  ;;  %v1619_v27 = vmul.f32 %v1574_v48, %v5371_v40  ;;  %v1620_v48 = vmul.f32 %v1576_v56, %v5371_v40 }
 0x1f3   : > { %v1650_v31 = vadd.f32 %v1618_v46, %v1349_v3  ;;  %v1578_v61 = vpop.permute.xlu0 %1577  ;;  %v1351_v52 = vpop.f32.mrb[99].mxu0  ;;  %v1777_v5 = vadd.f32 %v1745_v62, %v1649_v30  ;;  %v2068_v58 = vadd.f32 %v2067_v51, %v2037_v39  ;;  %v1747_v62 = vmul.f32 %v1702_v36, %v5379_v41  ;;  %v3847_v39 = vld [vmem:[%s7075_s3 + $0x310] sm:$0xff] }
 0x1f4   : > { %v1704_v17 = vpop.permute.xlu1 %1703 }
 0x1f5   : > { %v1778_v18 = vadd.f32 %v1746_v7, %v1650_v31  ;;  %2600 = vperm.xlu0 %4265, %v3846_v55   ;;  %v5616_v0 = vadd.f32 %v5157_v12, %v1777_v5  ;;  %v3850_v31 = vld [vmem:[%s7075_s3 + $0x328] sm:$0xff]  ;;  %v1748_v52 = vmul.f32 %v1704_v17, %v5379_v41  ;;  %v3852_v17 = vld [vmem:[%s7075_s3 + $0x338] sm:$0xff] }
 0x1f6   : > { %2425 = vperm.xlu1 %4266, %v3827_v50  }
 0x1f7   : > { %v5623_v9 = vadd.f32 %v5155_v11, %v1778_v18  ;;  %v1706_v8 = vpop.permute.xlu0 %1705  ;;  %v2000_v46 = vadd.f32 %v1999_v45, %v5616_v0  ;;  %v2038_v12 = vmul.f32 %v5616_v0, %v5616_v0 }
 0x1f8   : > { %v1580_v26 = vpop.permute.xlu1 %1579  ;;  %v1354_v14 = vpop.f32.mrb[100].mxu0 }
 0x1f9   : > { %v2039_v11 = vmul.f32 %v5623_v9, %v5623_v9  ;;  %v1651_v47 = vadd.f32 %v1619_v27, %v1354_v14  ;;  %2610 = vperm.xlu0 %4265, %v3848_v49   ;;  %v1356_v30 = vpop.f32.mrb[101].mxu0  ;;  %v2069_v3 = vadd.f32 %v2068_v58, %v2038_v12  ;;  %v2001_v55 = vadd.f32 %v2000_v46, %v5623_v9 }
 0x1fa   : > { %2595 = vperm.xlu1 %4266, %v3845_v6   ;;  %v1357_v7 = vpop.f32.mrb[102].mxu0  ;;  %v1621_v12 = vmul.f32 %v1578_v61, %v5371_v40  ;;  %v3854_v61 = vld [vmem:[%s7075_s3 + $0x348] sm:$0xff] }
 0x1fb   : > { %v1779_v36 = vadd.f32 %v1747_v62, %v1651_v47  ;;  %v1652_v50 = vadd.f32 %v1620_v48, %v1357_v7  ;;  %v1582_v56 = vpop.permute.xlu0 %1581  ;;  %v1359_v51 = vpop.f32.mrb[103].mxu0  ;;  %v2070_v5 = vadd.f32 %v2069_v3, %v2039_v11  ;;  %v1622_v48 = vmul.f32 %v1580_v26, %v5371_v40 }
 0x1fc   : > { %v1708_v18 = vpop.permute.xlu1 %1707  ;;  %v1749_v3 = vmul.f32 %v1706_v8, %v5379_v41  ;;  %v3851_v51 = vld [vmem:[%s7075_s3 + $0x330] sm:$0xff] }
 0x1fd   : > { %v5644_v45 = vadd.f32 %v5167_v16, %v1779_v36  ;;  %v1780_v49 = vadd.f32 %v1748_v52, %v1652_v50  ;;  %2620 = vperm.xlu0 %4265, %v3850_v31   ;;  %v3849_v16 = vld [vmem:[%s7075_s3 + $0x320] sm:$0xff]  ;;  %v1750_v26 = vmul.f32 %v1708_v18, %v5379_v41  ;;  %v3856_v18 = vld [vmem:[%s7075_s3 + $0x358] sm:$0xff] }
 0x1fe   : > { %2605 = vperm.xlu1 %4266, %v3847_v39  }
 0x1ff   : > { %v2002_v27 = vadd.f32 %v2001_v55, %v5644_v45  ;;  %v2040_v6 = vmul.f32 %v5644_v45, %v5644_v45  ;;  %v5653_v58 = vadd.f32 %v5165_v15, %v1780_v49  ;;  %v1710_v46 = vpop.permute.xlu0 %1709  ;;  %v4413_v49 = vld [vmem:[%s7074_s2 + $0x4] ss:$8 sps:$4 sm:$0xff]  }
 0x200   : > { %v1584_v14 = vpop.permute.xlu1 %1583  ;;  %v1362_v62 = vpop.f32.mrb[104].mxu0  ;;  %2945 = vmatprep.mubr.bf16.mxu1 %v4413_v49 }
 0x201   : > { %v2071_v11 = vadd.f32 %v2070_v5, %v2040_v6  ;;  %v2003_v47 = vadd.f32 %v2002_v27, %v5653_v58  ;;  %v2041_v30 = vmul.f32 %v5653_v58, %v5653_v58  ;;  %2630 = vperm.xlu0 %4265, %v3852_v17   ;;  %v1364_v15 = vpop.f32.mrb[105].mxu0  ;;  %v1653_v55 = vadd.f32 %v1621_v12, %v1362_v62  ;;  %v3853_v12 = vld [vmem:[%s7075_s3 + $0x340] sm:$0xff] }
 0x202   : > { %2615 = vperm.xlu1 %4266, %v3849_v16   ;;  %v1365_v7 = vpop.f32.mrb[106].mxu0  ;;  %v1623_v27 = vmul.f32 %v1582_v56, %v5371_v40  ;;  %v1624_v56 = vmul.f32 %v1584_v14, %v5371_v40 }
 0x203   : > { %v2072_v31 = vadd.f32 %v2071_v11, %v2041_v30  ;;  %v1654_v52 = vadd.f32 %v1622_v48, %v1365_v7  ;;  %v1586_v36 = vpop.permute.xlu0 %1585  ;;  %v1367_v50 = vpop.f32.mrb[107].mxu0  ;;  %v1781_v39 = vadd.f32 %v1749_v3, %v1653_v55  ;;  %v1751_v30 = vmul.f32 %v1710_v46, %v5379_v41 }
 0x204   : > { %v1712_v5 = vpop.permute.xlu1 %1711 }
 0x205   : > { %v1782_v8 = vadd.f32 %v1750_v26, %v1654_v52  ;;  %2640 = vperm.xlu0 %4265, %v3854_v61   ;;  %v5675_v17 = vadd.f32 %v5177_v20, %v1781_v39  ;;  %v3858_v61 = vld [vmem:[%s7075_s3 + $0x368] sm:$0xff]  ;;  %v1752_v26 = vmul.f32 %v1712_v5, %v5379_v41  ;;  %v3860_v5 = vld [vmem:[%s7075_s3 + $0x378] sm:$0xff] }
 0x206   : > { %2625 = vperm.xlu1 %4266, %v3851_v51   ;;  %v3855_v51 = vld [vmem:[%s7075_s3 + $0x350] sm:$0xff] }
 0x207   : > { %v5682_v6 = vadd.f32 %v5175_v19, %v1782_v8  ;;  %v1714_v16 = vpop.permute.xlu0 %1713  ;;  %v2004_v62 = vadd.f32 %v2003_v47, %v5675_v17  ;;  %v2042_v20 = vmul.f32 %v5675_v17, %v5675_v17 }
 0x208   : > { %v1588_v48 = vpop.permute.xlu1 %1587  ;;  %v1370_v11 = vpop.f32.mrb[108].mxu0 }
 0x209   : > { %v2043_v19 = vmul.f32 %v5682_v6, %v5682_v6  ;;  %v1655_v15 = vadd.f32 %v1623_v27, %v1370_v11  ;;  %2650 = vperm.xlu0 %4265, %v3856_v18   ;;  %v1372_v3 = vpop.f32.mrb[109].mxu0  ;;  %v2073_v55 = vadd.f32 %v2072_v31, %v2042_v20  ;;  %v2005_v7 = vadd.f32 %v2004_v62, %v5682_v6 }
 0x20a   : > { %2635 = vperm.xlu1 %4266, %v3853_v12   ;;  %v1373_v47 = vpop.f32.mrb[110].mxu0  ;;  %v1625_v20 = vmul.f32 %v1586_v36, %v5371_v40  ;;  %v3862_v36 = vld [vmem:[%s7075_s3 + $0x388] sm:$0xff] }
 0x20b   : > { %v1783_v46 = vadd.f32 %v1751_v30, %v1655_v15  ;;  %v1656_v52 = vadd.f32 %v1624_v56, %v1373_v47  ;;  %v1590_v14 = vpop.permute.xlu0 %1589  ;;  %v1375_v50 = vpop.f32.mrb[111].mxu0  ;;  %v2074_v39 = vadd.f32 %v2073_v55, %v2043_v19  ;;  %v1626_v56 = vmul.f32 %v1588_v48, %v5371_v40 }
 0x20c   : > { %v1716_v31 = vpop.permute.xlu1 %1715  ;;  %v1753_v55 = vmul.f32 %v1714_v16, %v5379_v41 }
 0x20d   : > { %v5703_v8 = vadd.f32 %v5181_v22, %v1783_v46  ;;  %v1784_v49 = vadd.f32 %v1752_v26, %v1656_v52  ;;  %2660 = vperm.xlu0 %4265, %v3858_v61   ;;  %v3857_v22 = vld [vmem:[%s7075_s3 + $0x360] sm:$0xff]  ;;  %v1754_v48 = vmul.f32 %v1716_v31, %v5379_v41  ;;  %v3859_v52 = vld [vmem:[%s7075_s3 + $0x370] sm:$0xff]  ;;  %v1627_v31 = vmul.f32 %v1590_v14, %v5371_v40 }
 0x20e   : > { %2645 = vperm.xlu1 %4266, %v3855_v51  }
 0x20f   : > { %v2006_v18 = vadd.f32 %v2005_v7, %v5703_v8  ;;  %v2044_v27 = vmul.f32 %v5703_v8, %v5703_v8  ;;  %v5712_v12 = vadd.f32 %v5179_v21, %v1784_v49  ;;  %v1718_v62 = vpop.permute.xlu0 %1717 }
 0x210   : > { %v1592_v11 = vpop.permute.xlu1 %1591  ;;  %v1378_v30 = vpop.f32.mrb[112].mxu0 }
 0x211   : > { %v2075_v19 = vadd.f32 %v2074_v39, %v2044_v27  ;;  %v2007_v15 = vadd.f32 %v2006_v18, %v5712_v12  ;;  %v2045_v3 = vmul.f32 %v5712_v12, %v5712_v12  ;;  %2670 = vperm.xlu0 %4265, %v3860_v5   ;;  %v1380_v21 = vpop.f32.mrb[113].mxu0  ;;  %v1657_v7 = vadd.f32 %v1625_v20, %v1378_v30  ;;  %v3864_v5 = vld [vmem:[%s7075_s3 + $0x398] sm:$0xff]  ;;  %v3861_v27 = vld [vmem:[%s7075_s3 + $0x380] sm:$0xff] }
 0x212   : > { %2655 = vperm.xlu1 %4266, %v3857_v22   ;;  %v1381_v47 = vpop.f32.mrb[114].mxu0 }
 0x213   : > { %v2076_v61 = vadd.f32 %v2075_v19, %v2045_v3  ;;  %v1658_v26 = vadd.f32 %v1626_v56, %v1381_v47  ;;  %v1383_v46 = vpop.f32.mrb[115].mxu0  ;;  %v1785_v50 = vadd.f32 %v1753_v55, %v1657_v7  ;;  %v1594_v39 = vpop.permute.xlu0 %1593  ;;  %v1755_v56 = vmul.f32 %v1718_v62, %v5379_v41  ;;  %v3866_v47 = vld [vmem:[%s7075_s3 + $0x3a8] sm:$0xff] }
 0x214   : > { %v1720_v51 = vpop.permute.xlu1 %1719  ;;  %v1628_v19 = vmul.f32 %v1592_v11, %v5371_v40 }
 0x215   : > { %v1786_v16 = vadd.f32 %v1754_v48, %v1658_v26  ;;  %2680 = vperm.xlu0 %4265, %v3862_v36   ;;  %v5731_v49 = vadd.f32 %v5191_v2, %v1785_v50  ;;  %v1756_v62 = vmul.f32 %v1720_v51, %v5379_v41  ;;  %v3863_v26 = vld [vmem:[%s7075_s3 + $0x390] sm:$0xff] }
 0x216   : > { %2665 = vperm.xlu1 %4266, %v3859_v52  }
 0x217   : > { %v5738_v18 = vadd.f32 %v5189_v25, %v1786_v16  ;;  %v2008_v22 = vadd.f32 %v2007_v15, %v5731_v49  ;;  %v2046_v2 = vmul.f32 %v5731_v49, %v5731_v49  ;;  %v1722_v7 = vpop.permute.xlu0 %1721  ;;  %v3868_v16 = vld [vmem:[%s7075_s3 + $0x3b8] sm:$0xff] }
 0x218   : > { %v1596_v20 = vpop.permute.xlu1 %1595  ;;  %v1386_v30 = vpop.f32.mrb[116].mxu0 }
 0x219   : > { %v2047_v14 = vmul.f32 %v5738_v18, %v5738_v18  ;;  %v1659_v25 = vadd.f32 %v1627_v31, %v1386_v30  ;;  %2690 = vperm.xlu0 %4265, %v3864_v5   ;;  %v1388_v3 = vpop.f32.mrb[117].mxu0  ;;  %v2077_v21 = vadd.f32 %v2076_v61, %v2046_v2  ;;  %v2009_v55 = vadd.f32 %v2008_v22, %v5738_v18 }
 0x21a   : > { %2675 = vperm.xlu1 %4266, %v3861_v27   ;;  %v1389_v15 = vpop.f32.mrb[118].mxu0  ;;  %v1629_v27 = vmul.f32 %v1594_v39, %v5371_v40  ;;  %v1630_v30 = vmul.f32 %v1596_v20, %v5371_v40  ;;  %v3870_v39 = vld [vmem:[%s7075_s3 + $0x3c8] sm:$0xff] }
 0x21b   : > { %v1787_v36 = vadd.f32 %v1755_v56, %v1659_v25  ;;  %v1660_v11 = vadd.f32 %v1628_v19, %v1389_v15  ;;  %v1391_v48 = vpop.f32.mrb[119].mxu0  ;;  %v2078_v46 = vadd.f32 %v2077_v21, %v2047_v14  ;;  %v1598_v22 = vpop.permute.xlu0 %1597 }
 0x21c   : > { %v1724_v61 = vpop.permute.xlu1 %1723 }
 0x21d   : > { %v5759_v52 = vadd.f32 %v5201_v29, %v1787_v36  ;;  %v1788_v50 = vadd.f32 %v1756_v62, %v1660_v11  ;;  %2700 = vperm.xlu0 %4265, %v3866_v47   ;;  %v3865_v29 = vld [vmem:[%s7075_s3 + $0x3a0] sm:$0xff]  ;;  %v1758_v20 = vmul.f32 %v1724_v61, %v5379_v41  ;;  %v3867_v36 = vld [vmem:[%s7075_s3 + $0x3b0] sm:$0xff]  ;;  %v1631_v61 = vmul.f32 %v1598_v22, %v5371_v40 }
 0x21e   : > { %2685 = vperm.xlu1 %4266, %v3863_v26  }
 0x21f   : > { %v2010_v51 = vadd.f32 %v2009_v55, %v5759_v52  ;;  %v2048_v5 = vmul.f32 %v5759_v52, %v5759_v52  ;;  %v5768_v31 = vadd.f32 %v5199_v28, %v1788_v50  ;;  %v1757_v28 = vmul.f32 %v1722_v7, %v5379_v41  ;;  %v1726_v26 = vpop.permute.xlu0 %1725 }
 0x220   : > { %v1394_v2 = vpop.f32.mrb[120].mxu0  ;;  %v1600_v3 = vpop.permute.xlu1 %1599  ;;  %v1759_v22 = vmul.f32 %v1726_v26, %v5379_v41 }
 0x221   : > { %v2079_v56 = vadd.f32 %v2078_v46, %v2048_v5  ;;  %v2011_v19 = vadd.f32 %v2010_v51, %v5768_v31  ;;  %v2049_v14 = vmul.f32 %v5768_v31, %v5768_v31  ;;  %2710 = vperm.xlu0 %4265, %v3868_v16   ;;  %v1396_v25 = vpop.f32.mrb[121].mxu0  ;;  %v1661_v21 = vadd.f32 %v1629_v27, %v1394_v2  ;;  %v3872_v46 = vld [vmem:[%s7075_s3 + $0x3d8] sm:$0xff]  ;;  %v3869_v16 = vld [vmem:[%s7075_s3 + $0x3c0] sm:$0xff] }
 0x222   : > { %2695 = vperm.xlu1 %4266, %v3865_v29   ;;  %v1397_v55 = vpop.f32.mrb[122].mxu0  ;;  %v1632_v27 = vmul.f32 %v1600_v3, %v5371_v40  ;;  %v3874_v25 = vld [vmem:[%s7075_s3 + $0x3e8] sm:$0xff] }
 0x223   : > { %v2080_v15 = vadd.f32 %v2079_v56, %v2049_v14  ;;  %v1662_v47 = vadd.f32 %v1630_v30, %v1397_v55  ;;  %v1399_v62 = vpop.f32.mrb[123].mxu0  ;;  %v1789_v11 = vadd.f32 %v1757_v28, %v1661_v21  ;;  %v3871_v55 = vld [vmem:[%s7075_s3 + $0x3d0] sm:$0xff] }
 0x224   : > { %v1728_v5 = vpop.permute.xlu1 %1727 }
 0x225   : > { %v1790_v48 = vadd.f32 %v1758_v20, %v1662_v47  ;;  %2720 = vperm.xlu0 %4265, %v3870_v39   ;;  %v5787_v7 = vadd.f32 %v5211_v33, %v1789_v11  ;;  %v1760_v28 = vmul.f32 %v1728_v5, %v5379_v41  ;;  %v3876_v47 = vld [vmem:[%s7075_s3 + $0x3f8] sm:$0xff] }
 0x226   : > { %2705 = vperm.xlu1 %4266, %v3867_v36  }
 0x227   : > { %7113 = vst [vmem:[#allocation37_spill] sm:$0xff] %v5787_v7  ;;  %v5794_v50 = vadd.f32 %v5209_v32, %v1790_v48  ;;  %v2012_v51 = vadd.f32 %v2011_v19, %v5787_v7  ;;  %v2050_v33 = vmul.f32 %v5787_v7, %v5787_v7 }
 0x228   : > { %v1402_v29 = vpop.f32.mrb[124].mxu0 }
 0x229   : > { %v2051_v2 = vmul.f32 %v5794_v50, %v5794_v50  ;;  %v1663_v32 = vadd.f32 %v1631_v61, %v1402_v29  ;;  %2730 = vperm.xlu0 %4265, %v3872_v46   ;;  %v1404_v30 = vpop.f32.mrb[125].mxu0  ;;  %v2081_v56 = vadd.f32 %v2080_v15, %v2050_v33  ;;  %v2013_v14 = vadd.f32 %v2012_v51, %v5794_v50  ;;  %v3878_v61 = vld [vmem:[%s7075_s3 + $0x408] sm:$0xff]  ;;  %v3875_v51 = vld [vmem:[%s7075_s3 + $0x3f0] sm:$0xff] }
 0x22a   : > { %2715 = vperm.xlu1 %4266, %v3869_v16   ;;  %v1405_v19 = vpop.f32.mrb[126].mxu0  ;;  %v3877_v30 = vld [vmem:[%s7075_s3 + $0x400] sm:$0xff] }
 0x22b   : > { %v1791_v40 = vadd.f32 %v1759_v22, %v1663_v32  ;;  %v1664_v3 = vadd.f32 %v1632_v27, %v1405_v19  ;;  %v1407_v21 = vpop.f32.mrb[127].mxu0  ;;  %v2082_v39 = vadd.f32 %v2081_v56, %v2051_v2  ;;  %v3880_v2 = vld [vmem:[%s7075_s3 + $0x418] sm:$0xff] }
 0x22c   : > { %v3879_v21 = vld [vmem:[%s7075_s3 + $0x410] sm:$0xff] }
 0x22d   : > { %v5815_v15 = vadd.f32 %v5215_v35, %v1791_v40  ;;  %v1792_v20 = vadd.f32 %v1760_v28, %v1664_v3  ;;  %2740 = vperm.xlu0 %4265, %v3874_v25   ;;  %v3873_v35 = vld [vmem:[%s7075_s3 + $0x3e0] sm:$0xff]  ;;  %v3882_v28 = vld [vmem:[%s7075_s3 + $0x428] sm:$0xff] }
 0x22e   : > { %2725 = vperm.xlu1 %4266, %v3871_v55  }
 0x22f   : > { %v2014_v41 = vadd.f32 %v2013_v14, %v5815_v15  ;;  %v2052_v62 = vmul.f32 %v5815_v15, %v5815_v15  ;;  %v5824_v36 = vadd.f32 %v5213_v34, %v1792_v20 }
 0x230   : > { %v5829_v11 = vpop.permute.xlu0 %2318 }
 0x231   : > { %v2083_v48 = vadd.f32 %v2082_v39, %v2052_v62  ;;  %v2015_v26 = vadd.f32 %v2014_v41, %v5824_v36  ;;  %v2053_v46 = vmul.f32 %v5824_v36, %v5824_v36  ;;  %2750 = vperm.xlu0 %4265, %v3876_v47   ;;  %v3884_v41 = vld [vmem:[%s7075_s3 + $0x438] sm:$0xff] }
 0x232   : > { %2735 = vperm.xlu1 %4266, %v3873_v35  }
 0x233   : > { %v2016_v34 = vrot.slane %v2015_v26, 4  ;;  %v2084_v16 = vadd.f32 %v2083_v48, %v2053_v46  ;;  %v3881_v48 = vld [vmem:[%s7075_s3 + $0x420] sm:$0xff] }
 0x234   : > { %v5840_v33 = vpop.permute.xlu0 %2360 }
 0x235   : > { %v2017_v5 = vadd.f32 %v2016_v34, %v2015_v26  ;;  %v2085_v29 = vrot.slane %v2084_v16, 4  ;;  %v5842_v27 = vpop.permute.xlu1 %2313  ;;  %3289 = vperm.xlu0 %4265, %v3878_v61  }
 0x236   : > { %7114 = vst [vmem:[#allocation38_spill] sm:$0xff] %v5842_v27  ;;  %2745 = vperm.xlu1 %4266, %v3875_v51  }
 0x237   : > { %v2018_v22 = vrot.slane %v2017_v5, 2  ;;  %v2086_v32 = vadd.f32 %v2085_v29, %v2084_v16 }
 0x238   : > { %v5850_v56 = vpop.permute.xlu0 %2370 }
 0x239   : > { %v2019_v14 = vadd.f32 %v2018_v22, %v2017_v5  ;;  %v2087_v19 = vrot.slane %v2086_v32, 2  ;;  %v5852_v25 = vpop.permute.xlu1 %2355  ;;  %3299 = vperm.xlu0 %4265, %v3880_v2   ;;  %v3886_v5 = vld [vmem:[%s7075_s3 + $0x448] sm:$0xff]  ;;  %v3883_v22 = vld [vmem:[%s7075_s3 + $0x430] sm:$0xff] }
 0x23a   : > { %3284 = vperm.xlu1 %4266, %v3877_v30  }
 0x23b   : > { %v2020_v40 = vrot.slane %v2019_v14, 1  ;;  %v2088_v3 = vadd.f32 %v2087_v19, %v2086_v32  ;;  %v7118_v32 = vld [vmem:[#allocation9_spill] sm:$0xff] }
 0x23c   : > { %v5860_v55 = vpop.permute.xlu0 %2380 }
 0x23d   : > { %v2021_v39 = vadd.f32 %v2020_v40, %v2019_v14  ;;  %v2089_v20 = vrot.slane %v2088_v3, 1  ;;  %v5862_v47 = vpop.permute.xlu1 %2365  ;;  %3309 = vperm.xlu0 %4265, %v3882_v28   ;;  %v3888_v40 = vld [vmem:[%s7075_s3 + $0x458] sm:$0xff] }
 0x23e   : > { %3294 = vperm.xlu1 %4266, %v3879_v21  }
 0x23f   : > { %v2090_v62 = vadd.f32 %v2089_v20, %v2088_v3  ;;  %v5867_v35 = vmul.f32 0.00390625, %v2021_v39  ;;  %v3885_v20 = vld [vmem:[%s7075_s3 + $0x440] sm:$0xff] }
 0x240   : > { %v5872_v26 = vpop.permute.xlu0 %2435 }
 0x241   : > { %v2092_v46 = vmul.f32 0.00390625, %v2090_v62  ;;  %v2093_v61 = vmul.f32 %v5867_v35, %v5867_v35  ;;  %v2126_v34 = vsub.f32 %v5824_v36, %v5867_v35  ;;  %v5878_v16 = vpop.permute.xlu1 %2375  ;;  %3319 = vperm.xlu0 %4265, %v3884_v41   ;;  %v2125_v51 = vsub.f32 %v5815_v15, %v5867_v35 }
 0x242   : > { %3304 = vperm.xlu1 %4266, %v3881_v48   ;;  %v2111_v2 = vsub.f32 %v5616_v0, %v5867_v35  ;;  %v2100_v41 = vsub.f32 %v5475_v43, %v5867_v35  ;;  %v2110_v15 = vsub.f32 %v5600_v42, %v5867_v35 }
 0x243   : > { %v2094_v29 = vsub.f32 %v2092_v46, %v2093_v61  ;;  %v2095_v61 = vsub.f32 %v5424_v53, %v5867_v35 }
 0x244   : > { %v5890_v36 = vpop.permute.xlu0 %2445 }
 0x245   : > { %v2127_v14 = vadd.f32 1e-05, %v2094_v29  ;;  %v5898_v19 = vpop.permute.xlu1 %2385  ;;  %3329 = vperm.xlu0 %4265, %v3886_v5   ;;  %v2098_v29 = vsub.f32 %v5450_v59, %v5867_v35  ;;  %v3889_v59 = vld [vmem:[%s7075_s3 + $0x460] sm:$0xff] }
 0x246   : > { %3314 = vperm.xlu1 %4266, %v3883_v22   ;;  %v3890_v22 = vld [vmem:[%s7075_s3 + $0x468] sm:$0xff] }
 0x247   : > { %4459 = vrsqrt.f32 %v2127_v14  ;;  %v3887_v14 = vld [vmem:[%s7075_s3 + $0x450] sm:$0xff] }
 0x248   : > { %v5920_v48 = vpop.permute.xlu0 %2455 }
 0x249   : > { %v5926_v5 = vpop.permute.xlu1 %2440  ;;  %3339 = vperm.xlu0 %4265, %v3888_v40   ;;  %v2096_v40 = vsub.f32 %v5420_v37, %v5867_v35  ;;  %v2099_v37 = vsub.f32 %v5458_v24, %v5867_v35 }
 0x24a   : > { %3324 = vperm.xlu1 %4266, %v3885_v20   ;;  %v3892_v20 = vld [vmem:[%s7075_s3 + $0x478] sm:$0xff] }
 0x24c   : > { %v5936_v62 = vpop.permute.xlu0 %2465 }
 0x24d   : > { %v5938_v46 = vpop.permute.xlu1 %2450  ;;  %3349 = vperm.xlu0 %4265, %v3890_v22   ;;  %v2097_v22 = vsub.f32 %v5432_v63, %v5867_v35 }
 0x24e   : > { %3334 = vperm.xlu1 %4266, %v3887_v14   ;;  %v2101_v14 = vsub.f32 %v5488_v4, %v5867_v35  ;;  %v3894_v4 = vld [vmem:[%s7075_s3 + $0x488] sm:$0xff] }
 0x250   : > { %v5960_v39 = vpop.permute.xlu0 %2390 }
 0x251   : > { %v5968_v21 = vpop.eup %4459  ;;  %v5970_v24 = vpop.permute.xlu1 %2460  ;;  %3359 = vperm.xlu0 %4265, %v3892_v20  }
 0x252   : > { %v2160_v28 = vmul.f32 %v5968_v21, %v2126_v34  ;;  %v2130_v63 = vmul.f32 %v5968_v21, %v2096_v40  ;;  %v5983_v0 = vmul.f32 %v5968_v21, %v2125_v51  ;;  %v2132_v20 = vmul.f32 %v5968_v21, %v2098_v29  ;;  %3344 = vperm.xlu1 %4266, %v3889_v59   ;;  %v3891_v51 = vld [vmem:[%s7075_s3 + $0x470] sm:$0xff]  ;;  %v7116_v29 = vld [vmem:[#allocation7_spill] sm:$0xff] }
 0x253   : > { %v2129_v3 = vmul.f32 %v5968_v21, %v2095_v61  ;;  %v2134_v53 = vmul.f32 %v5968_v21, %v2100_v41  ;;  %v2131_v43 = vmul.f32 %v5968_v21, %v2097_v22  ;;  %v2145_v34 = vmul.f32 %v5968_v21, %v2111_v2  ;;  %v7117_v61 = vld [vmem:[#allocation6_spill] sm:$0xff] }
 0x254   : > { %7115 = vst [vmem:[#allocation39_spill] sm:$0xff] %v5983_v0  ;;  %v2322_v40 = vmul.f32 %v5223_v38, %v2130_v63  ;;  %v2324_v59 = vmul.f32 %v7116_v29, %v2132_v20  ;;  %v5998_v30 = vpop.permute.xlu0 %2480  ;;  %v2109_v41 = vsub.f32 %v5585_v13, %v5867_v35  ;;  %v7120_v0 = vld [vmem:[#allocation22_spill] sm:$0xff]  ;;  %v2133_v20 = vmul.f32 %v5968_v21, %v2099_v37 }
 0x255   : > { %v2321_v22 = vmul.f32 %v7117_v61, %v2129_v3  ;;  %v2326_v2 = vmul.f32 %v7118_v32, %v2134_v53  ;;  %v2323_v27 = vmul.f32 %v7119_v10, %v2131_v43  ;;  %v2337_v7 = vmul.f32 %v7120_v0, %v2145_v34  ;;  %v6008_v1 = vpop.permute.xlu1 %2470  ;;  %3369 = vperm.xlu0 %4265, %v3894_v4   ;;  %v3896_v10 = vld [vmem:[%s7075_s3 + $0x498] sm:$0xff]  ;;  %v7122_v43 = vld [vmem:[#allocation10_spill] sm:$0xff]  ;;  %v7123_v34 = vld [vmem:[#allocation24_spill] sm:$0xff] }
 0x256   : > { %v2514_v38 = vadd.f32 %v5840_v33, %v2322_v40  ;;  %v2516_v63 = vadd.f32 %v5850_v56, %v2324_v59  ;;  %v7121_v29 = vsub.f32 %v5644_v45, %v5867_v35  ;;  %3354 = vperm.xlu1 %4266, %v3891_v51   ;;  %v3893_v45 = vld [vmem:[%s7075_s3 + $0x480] sm:$0xff]  ;;  %v2325_v4 = vmul.f32 %v7122_v43, %v2133_v20 }
 0x257   : > { %v2513_v32 = vadd.f32 %v5852_v25, %v2321_v22  ;;  %v2518_v0 = vadd.f32 %v5860_v55, %v2326_v2  ;;  %v2515_v33 = vadd.f32 %v5862_v47, %v2323_v27  ;;  %v6024_v56 = vadd.f32 %v5872_v26, %v2337_v7 }
 0x258   : > { %v2147_v3 = vmul.f32 %v5968_v21, %v7121_v29  ;;  %v2546_v37 = vmax.f32 %v2514_v38, 0.0  ;;  %v2548_v53 = vmax.f32 %v2516_v63, 0.0  ;;  %v6031_v40 = vpop.permute.xlu0 %2400  ;;  %v6034_v25 = vmul.f32 %v5829_v11, %v2160_v28  ;;  %v3898_v11 = vld [vmem:[%s7075_s3 + $0x4a8] sm:$0xff]  ;;  %v3895_v63 = vld [vmem:[%s7075_s3 + $0x490] sm:$0xff] }
 0x259   : > { %v2545_v55 = vmax.f32 %v2513_v32, 0.0  ;;  %v2550_v27 = vmax.f32 %v2518_v0, 0.0  ;;  %v2547_v47 = vmax.f32 %v2515_v33, 0.0  ;;  %v6036_v7 = vpop.permute.xlu1 %2475  ;;  %3379 = vperm.xlu0 %4265, %v3896_v10   ;;  %v2517_v26 = vadd.f32 %v5878_v16, %v2325_v4  ;;  %v7128_v32 = vld [vmem:[#allocation26_spill] sm:$0xff] }
 0x25a   : > { %v2339_v51 = vmul.f32 %v7123_v34, %v2147_v3  ;;  %v2135_v61 = vmul.f32 %v5968_v21, %v2101_v14  ;;  %v7124_v22 = vsub.f32 %v5675_v17, %v5867_v35  ;;  %3364 = vperm.xlu1 %4266, %v3893_v45   ;;  %v7125_v16 = vsub.f32 %v5623_v9, %v5867_v35  ;;  %v7127_v3 = vld [vmem:[#allocation12_spill] sm:$0xff]  ;;  %v7129_v9 = vld [vmem:[#allocation21_spill] sm:$0xff] }
 0x25b   : > { %v6050_v28 = vpack.c.bf16 %v2546_v37, %v2545_v55  ;;  %v6052_v38 = vpack.c.bf16 %v2548_v53, %v2547_v47  ;;  %v7126_v14 = vsub.f32 %v5703_v8, %v5867_v35  ;;  %v2561_v20 = vmax.f32 %v6024_v56, 0.0  ;;  %v7130_v37 = vld [vmem:[#allocation28_spill] sm:$0xff] }
 0x25c   : > { %v6040_v59 = vadd.f32 %v5890_v36, %v2339_v51  ;;  %v2149_v2 = vmul.f32 %v5968_v21, %v7124_v22  ;;  %v2146_v36 = vmul.f32 %v5968_v21, %v7125_v16  ;;  %v2549_v29 = vmax.f32 %v2517_v26, 0.0  ;;  %v2491_v33 = vpop.permute.xlu0 %2490  ;;  %v7134_v22 = vld [vmem:[#allocation23_spill] sm:$0xff] }
 0x25d   : > { %v2151_v17 = vmul.f32 %v5968_v21, %v7126_v14  ;;  %v2327_v10 = vmul.f32 %v7127_v3, %v2135_v61  ;;  %v7131_v8 = vsub.f32 %v5653_v58, %v5867_v35  ;;  %v7132_v4 = vsub.f32 %v5503_v23, %v5867_v35  ;;  %v6078_v34 = vpop.permute.xlu1 %2395  ;;  %3389 = vperm.xlu0 %4265, %v3898_v11   ;;  %v3900_v23 = vld [vmem:[%s7075_s3 + $0x4b8] sm:$0xff] }
 0x25e   : > { %v2341_v0 = vmul.f32 %v7128_v32, %v2149_v2  ;;  %v2338_v45 = vmul.f32 %v7129_v9, %v2146_v36  ;;  %v6080_v51 = vpack.c.bf16 %v2550_v27, %v2549_v29  ;;  %v7133_v58 = vsub.f32 %v5682_v6, %v5867_v35  ;;  %3374 = vperm.xlu1 %4266, %v3895_v63   ;;  %v7136_v36 = vld [vmem:[#allocation25_spill] sm:$0xff] }
 0x25f   : > { %v2343_v53 = vmul.f32 %v7130_v37, %v2151_v17  ;;  %v2148_v43 = vmul.f32 %v5968_v21, %v7131_v8  ;;  %v2136_v56 = vmul.f32 %v5968_v21, %v7132_v4  ;;  %v2519_v55 = vadd.f32 %v5898_v19, %v2327_v10  ;;  %v7135_v19 = vld [vmem:[#allocation11_spill] sm:$0xff] }
 0x260   : > { %v6084_v47 = vadd.f32 %v5920_v48, %v2341_v0  ;;  %v2150_v26 = vmul.f32 %v5968_v21, %v7133_v58  ;;  %v2563_v61 = vmax.f32 %v6040_v59, 0.0  ;;  %v2530_v27 = vadd.f32 %v5926_v5, %v2338_v45  ;;  %v3897_v48 = vld [vmem:[%s7075_s3 + $0x4a0] sm:$0xff]  ;;  %v6108_v5 = vpop.permute.xlu0 %2410  ;;  %v7138_v0 = vld [vmem:[#allocation29_spill] sm:$0xff] }
 0x261   : > { %v2340_v2 = vmul.f32 %v7134_v22, %v2148_v43  ;;  %v2328_v11 = vmul.f32 %v7135_v19, %v2136_v56  ;;  %v2551_v6 = vmax.f32 %v2519_v55, 0.0  ;;  %v6101_v16 = vadd.f32 %v5936_v62, %v2343_v53  ;;  %v2486_v32 = vpop.permute.xlu1 %2485  ;;  %3399 = vperm.xlu0 %4265, %v3900_v23  }
 0x262   : > { %v2342_v14 = vmul.f32 %v7136_v36, %v2150_v26  ;;  %v7137_v17 = vsub.f32 %v5738_v18, %v5867_v35  ;;  %v2565_v63 = vmax.f32 %v6084_v47, 0.0  ;;  %v2562_v29 = vmax.f32 %v2530_v27, 0.0  ;;  %3384 = vperm.xlu1 %4266, %v3897_v48   ;;  %v7143_v47 = vld [vmem:[#allocation27_spill] sm:$0xff]  ;;  %v7144_v26 = vld [vmem:[#allocation13_spill] sm:$0xff] }
 0x263   : > { %v2532_v3 = vadd.f32 %v5938_v46, %v2340_v2  ;;  %v2520_v10 = vadd.f32 %v5960_v39, %v2328_v11  ;;  %v7139_v18 = vsub.f32 %v5712_v12, %v5867_v35  ;;  %v7140_v37 = vsub.f32 %v5524_v44, %v5867_v35  ;;  %v3902_v39 = vld [vmem:[%s7075_s3 + $0x4c8] sm:$0xff]  ;;  %v3899_v44 = vld [vmem:[%s7075_s3 + $0x4b0] sm:$0xff]  ;;  %v7145_v2 = vld [vmem:[#allocation30_spill] sm:$0xff] }
 0x264   : > { %v2154_v59 = vmul.f32 %v5968_v21, %v7137_v17  ;;  %v2534_v62 = vadd.f32 %v5970_v24, %v2342_v14  ;;  %v7141_v24 = vsub.f32 %v5731_v49, %v5867_v35  ;;  %v7142_v12 = vsub.f32 %v5768_v31, %v5867_v35  ;;  %v2501_v49 = vpop.permute.xlu0 %2500  ;;  %v7147_v36 = vld [vmem:[#allocation31_spill] sm:$0xff] }
 0x265   : > { %v2152_v45 = vmul.f32 %v5968_v21, %v7139_v18  ;;  %v2138_v53 = vmul.f32 %v5968_v21, %v7140_v37  ;;  %v2564_v46 = vmax.f32 %v2532_v3, 0.0  ;;  %v2552_v8 = vmax.f32 %v2520_v10, 0.0  ;;  %v2406_v48 = vpop.permute.xlu1 %2405  ;;  %3409 = vperm.xlu0 %4265, %v3902_v39  }
 0x266   : > { %v2346_v9 = vmul.f32 %v7138_v0, %v2154_v59  ;;  %v2153_v43 = vmul.f32 %v5968_v21, %v7141_v24  ;;  %v2156_v4 = vmul.f32 %v5968_v21, %v7142_v12  ;;  %v2567_v56 = vmax.f32 %v6101_v16, 0.0  ;;  %3394 = vperm.xlu1 %4266, %v3899_v44  }
 0x267   : > { %v2344_v58 = vmul.f32 %v7143_v47, %v2152_v45  ;;  %v2330_v23 = vmul.f32 %v7144_v26, %v2138_v53  ;;  %v6141_v27 = vpack.c.bf16 %v2552_v8, %v2551_v6  ;;  %v2566_v22 = vmax.f32 %v2534_v62, 0.0  ;;  %v3904_v6 = vld [vmem:[%s7075_s3 + $0x4d8] sm:$0xff]  ;;  %v7151_v53 = vld [vmem:[#allocation15_spill] sm:$0xff] }
 0x268   : > { %v2538_v55 = vadd.f32 %v5998_v30, %v2346_v9  ;;  %v2345_v31 = vmul.f32 %v7145_v2, %v2153_v43  ;;  %v7146_v19 = vsub.f32 %v5510_v54, %v5867_v35  ;;  %v2348_v14 = vmul.f32 %v7147_v36, %v2156_v4  ;;  %v7148_v54 = vld [vmem:[#allocation14_spill] sm:$0xff]  ;;  %v2421_v18 = vpop.permute.xlu0 %2420 }
 0x269   : > { %v2536_v16 = vadd.f32 %v6008_v1, %v2344_v58  ;;  %v2522_v30 = vadd.f32 %v6031_v40, %v2330_v23  ;;  %v2585_v17 = vpack.c.bf16 %v2562_v29, %v2561_v20  ;;  %v2586_v62 = vpack.c.bf16 %v2564_v46, %v2563_v61  ;;  %3419 = vperm.xlu0 %4265, %v3904_v6   ;;  %v7159_v23 = vld [vmem:[#allocation33_spill] sm:$0xff] }
 0x26a   : > { %v2137_v11 = vmul.f32 %v5968_v21, %v7146_v19  ;;  %v2570_v59 = vmax.f32 %v2538_v55, 0.0  ;;  %v2537_v3 = vadd.f32 %v6036_v7, %v2345_v31  ;;  %v2540_v9 = vadd.f32 %v2491_v33, %v2348_v14  ;;  %v3901_v7 = vld [vmem:[%s7075_s3 + $0x4c0] sm:$0xff]  ;;  %v7157_v55 = vld [vmem:[#allocation37_spill] sm:$0xff]  ;;  %v3903_v19 = vld [vmem:[%s7075_s3 + $0x4d0] sm:$0xff] }
 0x26b   : > { %v2568_v0 = vmax.f32 %v2536_v16, 0.0  ;;  %4076 = vmatprep.subr.bf16.mxu1 %v2585_v17  ;;  %v7149_v1 = vsub.f32 %v5552_v57, %v5867_v35  ;;  %v7150_v20 = vsub.f32 %v5759_v52, %v5867_v35  ;;  %v2554_v45 = vmax.f32 %v2522_v30, 0.0  ;;  %v2496_v57 = vpop.permute.xlu1 %2495  ;;  %v7152_v52 = vld [vmem:[#allocation32_spill] sm:$0xff]  ;;  %3404 = vperm.xlu1 %4266, %v3901_v7   ;;  %v7162_v16 = vld [vmem:[#allocation38_spill] sm:$0xff] }
 0x26c   : > { %v2329_v10 = vmul.f32 %v7148_v54, %v2137_v11  ;;  %v2569_v61 = vmax.f32 %v2537_v3, 0.0  ;;  %4077 = vmatpush3.bf16.msra.mxu1 %v6050_v28  ;;  %v2587_v37 = vpack.c.bf16 %v2566_v22, %v2565_v63  ;;  %v7153_v8 = vsub.f32 %v5794_v50, %v5867_v35  ;;  %v7155_v63 = vld [vmem:[#allocation36_spill] sm:$0xff]  ;;  %v3906_v50 = vld [vmem:[%s7075_s3 + $0x4e8] sm:$0xff]  ;;  %v2511_v31 = vpop.permute.xlu0 %2510  ;;  %v7163_v14 = vld [vmem:[#allocation34_spill] sm:$0xff] }
 0x26d   : > { %v2140_v40 = vmul.f32 %v5968_v21, %v7149_v1  ;;  %v2155_v29 = vmul.f32 %v5968_v21, %v7150_v20  ;;  %4078 = vmatprep.subr.bf16.mxu1 %v2586_v62  ;;  %v7154_v43 = vsub.f32 %v5536_v60, %v5867_v35  ;;  %v2588_v28 = vpack.c.bf16 %v2568_v0, %v2567_v56  ;;  %v7160_v22 = vld [vmem:[#allocation16_spill] sm:$0xff]  ;;  %v7161_v11 = vld [vmem:[#allocation39_spill] sm:$0xff]  ;;  %v7164_v0 = vld [vmem:[#allocation17_spill] sm:$0xff] }
 0x26e   : > { %v2521_v33 = vadd.f32 %v6078_v34, %v2329_v10  ;;  %v2158_v24 = vmul.f32 %v5968_v21, %v7153_v8  ;;  %v7156_v4 = vsub.f32 %v7155_v63, %v5867_v35  ;;  %v7158_v47 = vsub.f32 %v7157_v55, %v5867_v35  ;;  %3429 = vperm.xlu0 %4265, %v3906_v50   ;;  %v7165_v20 = vld [vmem:[#allocation35_spill] sm:$0xff]  ;;  %v7169_v55 = vld [vmem:[#allocation20_spill] sm:$0xff] }
 0x26f   : > { %v2332_v39 = vmul.f32 %v7151_v53, %v2140_v40  ;;  %v2347_v46 = vmul.f32 %v7152_v52, %v2155_v29  ;;  %v2139_v34 = vmul.f32 %v5968_v21, %v7154_v43  ;;  %v2351_v30 = vmul.f32 %v7162_v16, %v7161_v11  ;;  %3414 = vperm.xlu1 %4266, %v3903_v19   ;;  %v7168_v8 = vld [vmem:[#allocation19_spill] sm:$0xff]  ;;  %v3915_v19 = vld [vmem:[%s7075_s3 + $0x530] sm:$0xff]  ;;  %v3920_v16 = vld [vmem:[%s7075_s3 + $0x558] sm:$0xff] }
 0x270   : > { %v2553_v12 = vmax.f32 %v2521_v33, 0.0  ;;  %v2142_v44 = vmul.f32 %v5968_v21, %v7156_v4  ;;  %v2157_v58 = vmul.f32 %v5968_v21, %v7158_v47  ;;  %v2350_v56 = vmul.f32 %v7159_v23, %v2158_v24  ;;  %4079 = vmatpush3.bf16.msra.mxu1 %v6052_v38  ;;  %v3908_v38 = vld [vmem:[%s7075_s3 + $0x4f8] sm:$0xff]  ;;  %v3911_v23 = vld [vmem:[%s7075_s3 + $0x510] sm:$0xff] }
 0x271   : > { %v2524_v60 = vadd.f32 %v6108_v5, %v2332_v39  ;;  %v2539_v26 = vadd.f32 %v2486_v32, %v2347_v46  ;;  %v2331_v2 = vmul.f32 %v7160_v22, %v2139_v34  ;;  %v2589_v6 = vpack.c.bf16 %v2570_v59, %v2569_v61  ;;  %v2416_v5 = vpop.permute.xlu1 %2415  ;;  %4080 = vmatprep.subr.bf16.mxu1 %v2587_v37  ;;  %v3912_v47 = vld [vmem:[%s7075_s3 + $0x518] sm:$0xff]  ;;  %v3913_v22 = vld [vmem:[%s7075_s3 + $0x520] sm:$0xff] }
 0x272   : > { %v2581_v36 = vpack.c.bf16 %v2554_v45, %v2553_v12  ;;  %v2349_v17 = vmul.f32 %v7163_v14, %v2157_v58  ;;  %v2572_v32 = vmax.f32 %v2540_v9, 0.0  ;;  %v2542_v54 = vadd.f32 %v2501_v49, %v2350_v56  ;;  %v3905_v45 = vld [vmem:[%s7075_s3 + $0x4e0] sm:$0xff]  ;;  %3439 = vperm.xlu0 %4265, %v3908_v38   ;;  %v3907_v12 = vld [vmem:[%s7075_s3 + $0x4f0] sm:$0xff]  ;;  %v3916_v56 = vld [vmem:[%s7075_s3 + $0x538] sm:$0xff] }
 0x273   : > { %v2571_v3 = vmax.f32 %v2539_v26, 0.0  ;;  %v2523_v10 = vadd.f32 %v2406_v48, %v2331_v2  ;;  %v2556_v62 = vmax.f32 %v2524_v60, 0.0  ;;  %v2334_v1 = vmul.f32 %v7164_v0, %v2142_v44  ;;  %3424 = vperm.xlu1 %4266, %v3905_v45   ;;  %v3909_v58 = vld [vmem:[%s7075_s3 + $0x500] sm:$0xff]  ;;  %v3914_v26 = vld [vmem:[%s7075_s3 + $0x528] sm:$0xff]  ;;  %v4414_v11 = vld [vmem:[%s7074_s2 + $0x14] ss:$8 sps:$4 sm:$0xff]  }
 0x274   : > { %v2541_v40 = vadd.f32 %v2496_v57, %v2349_v17  ;;  %v7166_v29 = vsub.f32 %v7165_v20, %v5867_v35  ;;  %v2544_v9 = vadd.f32 %v2511_v31, %v6034_v25  ;;  %v2144_v48 = vmul.f32 %v5968_v21, %v2110_v15  ;;  %4081 = vmatpush3.bf16.msra.mxu1 %v6080_v51  ;;  %v7167_v57 = vld [vmem:[#allocation18_spill] sm:$0xff]  ;;  %v2431_v25 = vpop.permute.xlu0 %2430  ;;  %v3918_v2 = vld [vmem:[%s7075_s3 + $0x548] sm:$0xff]  ;;  %v4416_v14 = vld [vmem:[%s7074_s2 + $0x10] ss:$8 sps:$4 sm:$0xff]  }
 0x275   : > { %v2555_v59 = vmax.f32 %v2523_v10, 0.0  ;;  %v2590_v49 = vpack.c.bf16 %v2572_v32, %v2571_v3  ;;  %v2574_v61 = vmax.f32 %v2542_v54, 0.0  ;;  %v2526_v33 = vadd.f32 %v2421_v18, %v2334_v1  ;;  %v2506_v39 = vpop.permute.xlu1 %2505  ;;  %4082 = vmatprep.subr.bf16.mxu1 %v2588_v28  ;;  %v3910_v18 = vld [vmem:[%s7075_s3 + $0x508] sm:$0xff]  ;;  %v3919_v17 = vld [vmem:[%s7075_s3 + $0x550] sm:$0xff]  ;;  %v3921_v32 = vld [vmem:[%s7075_s3 + $0x560] sm:$0xff] }
 0x276   : > { %v2141_v7 = vmul.f32 %v5968_v21, %v7166_v29  ;;  %v2573_v37 = vmax.f32 %v2541_v40, 0.0  ;;  %v2543_v46 = vadd.f32 %v2506_v39, %v2351_v30  ;;  %v2336_v15 = vmul.f32 %v7168_v8, %v2144_v48  ;;  %3481 = vperm.xlu0 %4265, %v3910_v18   ;;  %v4411_v31 = vld [vmem:[%s7074_s2] ss:$8 sps:$4 sm:$0xff]   ;;  %v3923_v10 = vld [vmem:[%s7075_s3 + $0x570] sm:$0xff]  ;;  %v3928_v0 = vld [vmem:[%s7075_s3 + $0x598] sm:$0xff] }
 0x277   : > { %v2582_v52 = vpack.c.bf16 %v2556_v62, %v2555_v59  ;;  %v2143_v51 = vmul.f32 %v5968_v21, %v2109_v41  ;;  %v2576_v43 = vmax.f32 %v2544_v9, 0.0  ;;  %v2558_v28 = vmax.f32 %v2526_v33, 0.0  ;;  %3434 = vperm.xlu1 %4266, %v3907_v12   ;;  %v3917_v30 = vld [vmem:[%s7075_s3 + $0x540] sm:$0xff]  ;;  %v3926_v3 = vld [vmem:[%s7075_s3 + $0x588] sm:$0xff]  ;;  %v4420_v62 = vld [vmem:[%s7074_s2 + $0x34] ss:$8 sps:$4 sm:$0xff]  }
 0x278   : > { %v2333_v53 = vmul.f32 %v7167_v57, %v2141_v7  ;;  %v2591_v24 = vpack.c.bf16 %v2574_v61, %v2573_v37  ;;  %v2575_v34 = vmax.f32 %v2543_v46, 0.0  ;;  %4083 = vmatpush3.bf16.msra.mxu1 %v6141_v27  ;;  %v2528_v4 = vadd.f32 %v2431_v25, %v2336_v15  ;;  %v4419_v54 = vld [vmem:[%s7074_s2 + $0x20] ss:$8 sps:$4 sm:$0xff]   ;;  %v4422_v20 = vld [vmem:[%s7074_s2 + $0x30] ss:$8 sps:$4 sm:$0xff]  }
 0x279   : > { %v2426_v44 = vpop.permute.xlu1 %2425  ;;  %v2335_v13 = vmul.f32 %v7169_v55, %v2143_v51  ;;  %4084 = vmatprep.subr.bf16.mxu1 %v2589_v6  ;;  %v4417_v6 = vld [vmem:[%s7074_s2 + $0x24] ss:$8 sps:$4 sm:$0xff]   ;;  %v3927_v29 = vld [vmem:[%s7075_s3 + $0x590] sm:$0xff]  ;;  %v3932_v38 = vld [vmem:[%s7075_s3 + $0x5b8] sm:$0xff] }
 0x27a   : > { %v2525_v42 = vadd.f32 %v2416_v5, %v2333_v53  ;;  %v2592_v35 = vpack.c.bf16 %v2576_v43, %v2575_v34  ;;  %v2560_v27 = vmax.f32 %v2528_v4, 0.0  ;;  %3491 = vperm.xlu0 %4265, %v3912_v47   ;;  %v3924_v5 = vld [vmem:[%s7075_s3 + $0x578] sm:$0xff]  ;;  %v3925_v1 = vld [vmem:[%s7075_s3 + $0x580] sm:$0xff]  ;;  %v3930_v40 = vld [vmem:[%s7075_s3 + $0x5a8] sm:$0xff] }
 0x27b   : > { %v2527_v41 = vadd.f32 %v2426_v44, %v2335_v13  ;;  %3476 = vperm.xlu1 %4266, %v3909_v58   ;;  %v4423_v7 = vld [vmem:[%s7074_s2 + $0x44] ss:$8 sps:$4 sm:$0xff]   ;;  %v3931_v48 = vld [vmem:[%s7075_s3 + $0x5b0] sm:$0xff]  ;;  %v3936_v61 = vld [vmem:[%s7075_s3 + $0x5d8] sm:$0xff]  ;;  %v6402_v13 = vpop.permute.xlu0 %2600 }
 0x27c   : > { %v2557_v63 = vmax.f32 %v2525_v42, 0.0  ;;  %4085 = vmatpush3.bf16.msra.mxu1 %v2581_v36  ;;  %v3922_v36 = vld [vmem:[%s7075_s3 + $0x568] sm:$0xff]  ;;  %v3929_v59 = vld [vmem:[%s7075_s3 + $0x5a0] sm:$0xff]  ;;  %v4426_v45 = vld [vmem:[%s7074_s2 + $0x54] ss:$8 sps:$4 sm:$0xff]  }
 0x27d   : > { %v2559_v50 = vmax.f32 %v2527_v41, 0.0  ;;  %4086 = vmatprep.subr.bf16.mxu1 %v2590_v49  ;;  %v3934_v9 = vld [vmem:[%s7075_s3 + $0x5c8] sm:$0xff]  ;;  %v3933_v33 = vld [vmem:[%s7075_s3 + $0x5c0] sm:$0xff]  ;;  %v4428_v57 = vld [vmem:[%s7074_s2 + $0x50] ss:$8 sps:$4 sm:$0xff]  }
 0x27e   : > { %v2583_v21 = vpack.c.bf16 %v2558_v28, %v2557_v63  ;;  %3501 = vperm.xlu0 %4265, %v3914_v26   ;;  %v4425_v49 = vld [vmem:[%s7074_s2 + $0x40] ss:$8 sps:$4 sm:$0xff]   ;;  %v3935_v53 = vld [vmem:[%s7075_s3 + $0x5d0] sm:$0xff]  ;;  %v4429_v39 = vld [vmem:[%s7074_s2 + $0x64] ss:$8 sps:$4 sm:$0xff]  }
 0x27f   : > { %v2584_v60 = vpack.c.bf16 %v2560_v27, %v2559_v50  ;;  %3486 = vperm.xlu1 %4266, %v3911_v23   ;;  %v3938_v37 = vld [vmem:[%s7075_s3 + $0x5e8] sm:$0xff]  ;;  %v3937_v25 = vld [vmem:[%s7075_s3 + $0x5e0] sm:$0xff]  ;;  %v3939_v42 = vld [vmem:[%s7075_s3 + $0x5f0] sm:$0xff] }
 0x280   : > { %4087 = vmatpush3.bf16.msra.mxu1 %v2582_v52  ;;  %v3940_v52 = vld [vmem:[%s7075_s3 + $0x5f8] sm:$0xff]  ;;  %v4431_v46 = vld [vmem:[%s7074_s2 + $0x60] ss:$8 sps:$4 sm:$0xff]   ;;  %v4441_v34 = vld [vmem:[%s7074_s2 + $0xa4] ss:$8 sps:$4 sm:$0xff]  }
 0x281   : > { %4088 = vmatprep.subr.bf16.mxu1 %v2591_v24  ;;  %v4432_v8 = vld [vmem:[%s7074_s2 + $0x74] ss:$8 sps:$4 sm:$0xff]   ;;  %v4434_v15 = vld [vmem:[%s7074_s2 + $0x70] ss:$8 sps:$4 sm:$0xff]   ;;  %v4435_v24 = vld [vmem:[%s7074_s2 + $0x84] ss:$8 sps:$4 sm:$0xff]  }
 0x282   : > { %3511 = vperm.xlu0 %4265, %v3916_v56   ;;  %v4437_v51 = vld [vmem:[%s7074_s2 + $0x80] ss:$8 sps:$4 sm:$0xff]   ;;  %v4438_v18 = vld [vmem:[%s7074_s2 + $0x94] ss:$8 sps:$4 sm:$0xff]   ;;  %v4440_v43 = vld [vmem:[%s7074_s2 + $0x90] ss:$8 sps:$4 sm:$0xff]  }
 0x283   : > { %3496 = vperm.xlu1 %4266, %v3913_v22   ;;  %v4443_v12 = vld [vmem:[%s7074_s2 + $0xa0] ss:$8 sps:$4 sm:$0xff]   ;;  %v4444_v28 = vld [vmem:[%s7074_s2 + $0xb4] ss:$8 sps:$4 sm:$0xff]   ;;  %v4446_v63 = vld [vmem:[%s7074_s2 + $0xb0] ss:$8 sps:$4 sm:$0xff]  }
 0x284   : > { %4089 = vmatpush3.bf16.msra.mxu1 %v2583_v21  ;;  %v4447_v4 = vld [vmem:[%s7074_s2 + $0xc4] ss:$8 sps:$4 sm:$0xff]   ;;  %v4449_v44 = vld [vmem:[%s7074_s2 + $0xc0] ss:$8 sps:$4 sm:$0xff]   ;;  %v4450_v55 = vld [vmem:[%s7074_s2 + $0xd4] ss:$8 sps:$4 sm:$0xff]   ;;  %v6407_v21 = vpop.permute.xlu0 %2610 }
 0x285   : > { %4090 = vmatprep.subr.bf16.mxu1 %v2592_v35  ;;  %v4452_v35 = vld [vmem:[%s7074_s2 + $0xd0] ss:$8 sps:$4 sm:$0xff]   ;;  %v4453_v41 = vld [vmem:[%s7074_s2 + $0xe4] ss:$8 sps:$4 sm:$0xff]   ;;  %v4455_v58 = vld [vmem:[%s7074_s2 + $0xe0] ss:$8 sps:$4 sm:$0xff]  }
 0x286   : > { %3521 = vperm.xlu0 %4265, %v3918_v2   ;;  %v4456_v27 = vld [vmem:[%s7074_s2 + $0xf4] ss:$8 sps:$4 sm:$0xff]   ;;  %v4458_v26 = vld [vmem:[%s7074_s2 + $0xf0] ss:$8 sps:$4 sm:$0xff]  }
 0x287   : > { %3506 = vperm.xlu1 %4266, %v3915_v19  }
 0x288   : > { %4091 = vmatpush3.bf16.msra.mxu1 %v2584_v60  ;;  %v6412_v47 = vpop.permute.xlu0 %2620  ;;  %v6422_v60 = vpop.permute.xlu1 %2595 }
 0x28a   : > { %3531 = vperm.xlu0 %4265, %v3920_v16  }
 0x28b   : > { %2946 = vmatmul.mubr.bf16.vlgmr.msra.gmra.mrb[64].mxu1 %v4411_v31  ;;  %3516 = vperm.xlu1 %4266, %v3917_v30  }
 0x28c   : > { %2953 = vmatprep.mubr.bf16.mxu1 %v4414_v11  ;;  %v6420_v50 = vpop.permute.xlu0 %2630  ;;  %v2606_v56 = vpop.permute.xlu1 %2605 }
 0x28e   : > { %3541 = vperm.xlu0 %4265, %v3922_v36  }
 0x28f   : > { %3526 = vperm.xlu1 %4266, %v3919_v17  }
 0x290   : > { %v6427_v23 = vpop.permute.xlu0 %2640  ;;  %v2616_v2 = vpop.permute.xlu1 %2615 }
 0x292   : > { %3551 = vperm.xlu0 %4265, %v3924_v5  }
 0x293   : > { %2954 = vmatmul.mubr.bf16.gmra.mrb[68].mxu1 %v4416_v14  ;;  %3536 = vperm.xlu1 %4266, %v3921_v32  }
 0x294   : > { %2961 = vmatprep.mubr.bf16.mxu1 %v4417_v6  ;;  %v6429_v22 = vpop.permute.xlu0 %2650  ;;  %v6433_v19 = vpop.permute.xlu1 %2625 }
 0x296   : > { %3561 = vperm.xlu0 %4265, %v3926_v3  }
 0x297   : > { %3546 = vperm.xlu1 %4266, %v3923_v10  }
 0x298   : > { %v6431_v31 = vpop.permute.xlu0 %2660  ;;  %v6437_v16 = vpop.permute.xlu1 %2635 }
 0x29a   : > { %3571 = vperm.xlu0 %4265, %v3928_v0  }
 0x29b   : > { %2962 = vmatmul.mubr.bf16.gmra.mrb[72].mxu1 %v4419_v54  ;;  %3556 = vperm.xlu1 %4266, %v3925_v1  }
 0x29c   : > { %2969 = vmatprep.mubr.bf16.mxu1 %v4420_v62  ;;  %v6435_v11 = vpop.permute.xlu0 %2670  ;;  %v6441_v36 = vpop.permute.xlu1 %2645 }
 0x29e   : > { %3581 = vperm.xlu0 %4265, %v3930_v40  }
 0x29f   : > { %3566 = vperm.xlu1 %4266, %v3927_v29  }
 0x2a0   : > { %v6439_v30 = vpop.permute.xlu0 %2680  ;;  %v6445_v17 = vpop.permute.xlu1 %2655 }
 0x2a2   : > { %3591 = vperm.xlu0 %4265, %v3932_v38  }
 0x2a3   : > { %2970 = vmatmul.mubr.bf16.gmra.mrb[76].mxu1 %v4422_v20  ;;  %3576 = vperm.xlu1 %4266, %v3929_v59  }
 0x2a4   : > { %2977 = vmatprep.mubr.bf16.mxu1 %v4423_v7  ;;  %v6443_v14 = vpop.permute.xlu0 %2690  ;;  %v6449_v5 = vpop.permute.xlu1 %2665 }
 0x2a6   : > { %3601 = vperm.xlu0 %4265, %v3934_v9  }
 0x2a7   : > { %3586 = vperm.xlu1 %4266, %v3931_v48  }
 0x2a8   : > { %v6447_v6 = vpop.permute.xlu0 %2700  ;;  %v6453_v3 = vpop.permute.xlu1 %2675 }
 0x2aa   : > { %3611 = vperm.xlu0 %4265, %v3936_v61  }
 0x2ab   : > { %2978 = vmatmul.mubr.bf16.gmra.mrb[80].mxu1 %v4425_v49  ;;  %3596 = vperm.xlu1 %4266, %v3933_v33  }
 0x2ac   : > { %2985 = vmatprep.mubr.bf16.mxu1 %v4426_v45  ;;  %v6451_v32 = vpop.permute.xlu0 %2710  ;;  %v6457_v10 = vpop.permute.xlu1 %2685 }
 0x2ae   : > { %3621 = vperm.xlu0 %4265, %v3938_v37  }
 0x2af   : > { %3606 = vperm.xlu1 %4266, %v3935_v53  }
 0x2b0   : > { %v6455_v54 = vpop.permute.xlu0 %2720  ;;  %v6461_v0 = vpop.permute.xlu1 %2695 }
 0x2b2   : > { %3631 = vperm.xlu0 %4265, %v3940_v52  }
 0x2b3   : > { %2986 = vmatmul.mubr.bf16.gmra.mrb[84].mxu1 %v4428_v57  ;;  %3616 = vperm.xlu1 %4266, %v3937_v25  }
 0x2b4   : > { %2993 = vmatprep.mubr.bf16.mxu1 %v4429_v39  ;;  %v6459_v62 = vpop.permute.xlu0 %2730  ;;  %v6465_v40 = vpop.permute.xlu1 %2705 }
 0x2b7   : > { %3626 = vperm.xlu1 %4266, %v3939_v42  }
 0x2b8   : > { %v6463_v1 = vpop.permute.xlu0 %2740  ;;  %v6469_v29 = vpop.permute.xlu1 %2715 }
 0x2bb   : > { %2994 = vmatmul.mubr.bf16.gmra.mrb[88].mxu1 %v4431_v46 }
 0x2bc   : > { %3001 = vmatprep.mubr.bf16.mxu1 %v4432_v8  ;;  %v6467_v20 = vpop.permute.xlu0 %2750  ;;  %v6473_v38 = vpop.permute.xlu1 %2725 }
 0x2c0   : > { %v6471_v7 = vpop.permute.xlu0 %3289  ;;  %v6477_v9 = vpop.permute.xlu1 %2735 }
 0x2c3   : > { %3002 = vmatmul.mubr.bf16.gmra.mrb[92].mxu1 %v4434_v15 }
 0x2c4   : > { %3009 = vmatprep.mubr.bf16.mxu1 %v4435_v24  ;;  %v6475_v59 = vpop.permute.xlu0 %3299  ;;  %v6481_v48 = vpop.permute.xlu1 %2745 }
 0x2c8   : > { %v6479_v49 = vpop.permute.xlu0 %3309  ;;  %v6485_v61 = vpop.permute.xlu1 %3284 }
 0x2cb   : > { %3010 = vmatmul.mubr.bf16.gmra.mrb[96].mxu1 %v4437_v51 }
 0x2cc   : > { %3017 = vmatprep.mubr.bf16.mxu1 %v4438_v18  ;;  %v6483_v45 = vpop.permute.xlu0 %3319  ;;  %v6489_v46 = vpop.permute.xlu1 %3294 }
 0x2d0   : > { %v6487_v52 = vpop.permute.xlu0 %3329  ;;  %v6493_v18 = vpop.permute.xlu1 %3304 }
 0x2d3   : > { %3018 = vmatmul.mubr.bf16.gmra.mrb[100].mxu1 %v4440_v43 }
 0x2d4   : > { %3025 = vmatprep.mubr.bf16.mxu1 %v4441_v34  ;;  %v6491_v15 = vpop.permute.xlu0 %3339 }
 0x2d5   : > { %7170 = vst [vmem:[#allocation7_spill] sm:$0xff] %v6491_v15 }
 0x2db   : > { %3026 = vmatmul.mubr.bf16.gmra.mrb[104].mxu1 %v4443_v12 }
 0x2dc   : > { %3033 = vmatprep.mubr.bf16.mxu1 %v4444_v28  ;;  %v6495_v28 = vpop.permute.xlu0 %3349 }
 0x2dd   : > { %7171 = vst [vmem:[#allocation6_spill] sm:$0xff] %v6495_v28 }
 0x2e3   : > { %3034 = vmatmul.mubr.bf16.gmra.mrb[108].mxu1 %v4446_v63 }
 0x2e4   : > { %3041 = vmatprep.mubr.bf16.mxu1 %v4447_v4  ;;  %v6497_v4 = vpop.permute.xlu1 %3314 }
 0x2eb   : > { %3042 = vmatmul.mubr.bf16.gmra.mrb[112].mxu1 %v4449_v44 }
 0x2ec   : > { %3049 = vmatprep.mubr.bf16.mxu1 %v4450_v55 }
 0x2f3   : > { %3050 = vmatmul.mubr.bf16.gmra.mrb[116].mxu1 %v4452_v35 }
 0x2f4   : > { %3057 = vmatprep.mubr.bf16.mxu1 %v4453_v41 }
 0x2fb   : > { %3058 = vmatmul.mubr.bf16.gmra.mrb[120].mxu1 %v4455_v58 }
 0x2fc   : > { %3065 = vmatprep.mubr.bf16.mxu1 %v4456_v27 }
 0x303   : > { %3066 = vmatmul.mubr.bf16.gmra.mrb[124].mxu1 %v4458_v26 }
 0x35e   : > { %v4092_v33 = vpop.f32.mrb[64].mxu1 }
 0x35f   : > { %v4093_v37 = vpop.f32.mrb[65].mxu1 }
 0x360   : > { %v4094_v57 = vadd.f32 %v4093_v37, %v4092_v33  ;;  %v4095_v53 = vpop.f32.mrb[66].mxu1  ;;  %v6500_v33 = vpop.permute.xlu0 %3359 }
 0x361   : > { %v4096_v39 = vpop.f32.mrb[67].mxu1  ;;  %7172 = vst [vmem:[#allocation9_spill] sm:$0xff] %v6500_v33 }
 0x362   : > { %v4097_v25 = vadd.f32 %v4096_v39, %v4095_v53  ;;  %v2948_v37 = vadd.f32 %v4094_v57, %v6422_v60  ;;  %v4463_v39 = vld [vmem:[%s4660_s13 + $0x8] sm:$0xff] }
 0x364   : > { %v2951_v26 = vadd.f32 %v4097_v25, %v6402_v13 }
 0x366   : > { %v4098_v42 = vpop.f32.mrb[68].mxu1 }
 0x367   : > { %v4099_v8 = vpop.f32.mrb[69].mxu1 }
 0x368   : > { %v4100_v24 = vadd.f32 %v4099_v8, %v4098_v42  ;;  %v4101_v51 = vpop.f32.mrb[70].mxu1  ;;  %v6506_v42 = vadd.f32 %v4463_v39, %v2951_v26 }
 0x369   : > { %v4102_v43 = vpop.f32.mrb[71].mxu1 }
 0x36a   : > { %v2956_v34 = vadd.f32 %v4100_v24, %v2606_v56  ;;  %v4103_v12 = vadd.f32 %v4102_v43, %v4101_v51  ;;  %v6502_v56 = vpop.permute.xlu1 %3324  ;;  %v4464_v43 = vld [vmem:[%s4660_s13] sm:$0xff] }
 0x36c   : > { %v2959_v13 = vadd.f32 %v4103_v12, %v6407_v21  ;;  %v4466_v12 = vld [vmem:[%s4660_s13 + $0x18] sm:$0xff] }
 0x36e   : > { %v4104_v63 = vpop.f32.mrb[72].mxu1 }
 0x36f   : > { %v4105_v44 = vpop.f32.mrb[73].mxu1 }
 0x370   : > { %v4106_v55 = vadd.f32 %v4105_v44, %v4104_v63  ;;  %v4107_v35 = vpop.f32.mrb[74].mxu1  ;;  %v6509_v63 = vadd.f32 %v4464_v43, %v2948_v37  ;;  %v6529_v37 = vadd.f32 %v4466_v12, %v2959_v13 }
 0x371   : > { %v4108_v41 = vpop.f32.mrb[75].mxu1 }
 0x372   : > { %v2964_v58 = vadd.f32 %v4106_v55, %v2616_v2  ;;  %v4109_v27 = vadd.f32 %v4108_v41, %v4107_v35  ;;  %v4465_v2 = vld [vmem:[%s4660_s13 + $0x10] sm:$0xff]  ;;  %v6515_v55 = vpop.permute.xlu0 %3369  ;;  %v6518_v35 = vpop.permute.xlu1 %3334  ;;  %v3144_v41 = vmul.f32 %v6506_v42, %v6506_v42  ;;  %v3143_v26 = vmul.f32 %v6509_v63, %v6509_v63 }
 0x373   : > { %v6512_v44 = vadd.f32 %v4465_v2, %v2956_v34  ;;  %7173 = vst [vmem:[#allocation8_spill] sm:$0xff] %v6515_v55  ;;  %v3106_v34 = vadd.f32 %v6506_v42, %v6509_v63 }
 0x375   : > { %v3145_v21 = vmul.f32 %v6512_v44, %v6512_v44  ;;  %v3107_v39 = vadd.f32 %v3106_v34, %v6512_v44 }
 0x376   : > { %v4110_v53 = vpop.f32.mrb[76].mxu1  ;;  %v6536_v2 = vpop.permute.xlu0 %3379 }
 0x377   : > { %v4111_v8 = vpop.f32.mrb[77].mxu1  ;;  %7174 = vst [vmem:[#allocation22_spill] sm:$0xff] %v6536_v2  ;;  %v6538_v33 = vpop.permute.xlu1 %3344 }
 0x378   : > { %v4112_v24 = vadd.f32 %v4111_v8, %v4110_v53  ;;  %v4113_v51 = vpop.f32.mrb[78].mxu1  ;;  %v4467_v8 = vld [vmem:[%s4660_s13 + $0x20] sm:$0xff]  ;;  %7175 = vst [vmem:[#allocation10_spill] sm:$0xff] %v6538_v33 }
 0x379   : > { %v4114_v25 = vpop.f32.mrb[79].mxu1 }
 0x37a   : > { %v2972_v60 = vadd.f32 %v4112_v24, %v6433_v19  ;;  %v4115_v57 = vadd.f32 %v4114_v25, %v4113_v51  ;;  %v3175_v19 = vadd.f32 %v3144_v41, %v3143_v26  ;;  %v6533_v24 = vadd.f32 %v4467_v8, %v2964_v58  ;;  %v6554_v28 = vpop.permute.xlu0 %3389 }
 0x37b   : > { %v2967_v51 = vadd.f32 %v4109_v27, %v6412_v47  ;;  %v3146_v41 = vmul.f32 %v6529_v37, %v6529_v37  ;;  %v3108_v58 = vadd.f32 %v3107_v39, %v6529_v37  ;;  %v4468_v27 = vld [vmem:[%s4660_s13 + $0x28] sm:$0xff]  ;;  %7176 = vst [vmem:[#allocation24_spill] sm:$0xff] %v6554_v28 }
 0x37c   : > { %v3176_v13 = vadd.f32 %v3175_v19, %v3145_v21  ;;  %v3147_v47 = vmul.f32 %v6533_v24, %v6533_v24  ;;  %v4469_v21 = vld [vmem:[%s4660_s13 + $0x30] sm:$0xff]  ;;  %v2975_v2 = vadd.f32 %v4115_v57, %v6420_v50 }
 0x37d   : > { %v6547_v8 = vadd.f32 %v4468_v27, %v2967_v51  ;;  %v6551_v19 = vadd.f32 %v4469_v21, %v2972_v60 }
 0x37e   : > { %v4116_v53 = vpop.f32.mrb[80].mxu1  ;;  %v6568_v28 = vpop.permute.xlu0 %3399 }
 0x37f   : > { %v4117_v43 = vpop.f32.mrb[81].mxu1  ;;  %v3148_v51 = vmul.f32 %v6547_v8, %v6547_v8  ;;  %v3149_v60 = vmul.f32 %v6551_v19, %v6551_v19  ;;  %7178 = vst [vmem:[#allocation26_spill] sm:$0xff] %v6568_v28 }
 0x380   : > { %v4118_v25 = vadd.f32 %v4117_v43, %v4116_v53  ;;  %v4119_v55 = vpop.f32.mrb[82].mxu1  ;;  %v3177_v53 = vadd.f32 %v3176_v13, %v3146_v41  ;;  %v3109_v43 = vadd.f32 %v3108_v58, %v6533_v24  ;;  %v4470_v58 = vld [vmem:[%s4660_s13 + $0x38] sm:$0xff] }
 0x381   : > { %v4120_v26 = vpop.f32.mrb[83].mxu1  ;;  %v6564_v50 = vadd.f32 %v4470_v58, %v2975_v2 }
 0x382   : > { %v2980_v34 = vadd.f32 %v4118_v25, %v6437_v16  ;;  %v4121_v12 = vadd.f32 %v4120_v26, %v4119_v55  ;;  %v6556_v55 = vpop.permute.xlu1 %3354  ;;  %v3178_v39 = vadd.f32 %v3177_v53, %v3147_v47  ;;  %v3110_v41 = vadd.f32 %v3109_v43, %v6547_v8 }
 0x383   : > { %7177 = vst [vmem:[#allocation12_spill] sm:$0xff] %v6556_v55  ;;  %v3150_v58 = vmul.f32 %v6564_v50, %v6564_v50 }
 0x384   : > { %v3179_v47 = vadd.f32 %v3178_v39, %v3148_v51  ;;  %v3111_v53 = vadd.f32 %v3110_v41, %v6551_v19  ;;  %v2983_v43 = vadd.f32 %v4121_v12, %v6427_v23 }
 0x386   : > { %v4122_v16 = vpop.f32.mrb[84].mxu1  ;;  %v6574_v55 = vpop.permute.xlu1 %3364  ;;  %v3180_v2 = vadd.f32 %v3179_v47, %v3149_v60  ;;  %v4473_v47 = vld [vmem:[%s4660_s13 + $0x50] sm:$0xff] }
 0x387   : > { %v4123_v25 = vpop.f32.mrb[85].mxu1  ;;  %7179 = vst [vmem:[#allocation21_spill] sm:$0xff] %v6574_v55 }
 0x388   : > { %v4124_v26 = vadd.f32 %v4123_v25, %v4122_v16  ;;  %v4125_v13 = vpop.f32.mrb[86].mxu1  ;;  %v4471_v16 = vld [vmem:[%s4660_s13 + $0x40] sm:$0xff]  ;;  %v3181_v12 = vadd.f32 %v3180_v2, %v3150_v58 }
 0x389   : > { %v4126_v57 = vpop.f32.mrb[87].mxu1  ;;  %v6571_v25 = vadd.f32 %v4471_v16, %v2980_v34 }
 0x38a   : > { %v2988_v27 = vadd.f32 %v4124_v26, %v6441_v36  ;;  %v4127_v21 = vadd.f32 %v4126_v57, %v4125_v13  ;;  %v3112_v36 = vadd.f32 %v3111_v53, %v6564_v50  ;;  %v4472_v26 = vld [vmem:[%s4660_s13 + $0x48] sm:$0xff]  ;;  %v6585_v57 = vpop.permute.xlu0 %3409 }
 0x38b   : > { %v3151_v51 = vmul.f32 %v6571_v25, %v6571_v25  ;;  %v6582_v13 = vadd.f32 %v4472_v26, %v2983_v43  ;;  %7180 = vst [vmem:[#allocation28_spill] sm:$0xff] %v6585_v57  ;;  %v6592_v43 = vpop.permute.xlu1 %3374 }
 0x38c   : > { %v3113_v41 = vadd.f32 %v3112_v36, %v6571_v25  ;;  %v6588_v16 = vadd.f32 %v4473_v47, %v2988_v27  ;;  %v2991_v53 = vadd.f32 %v4127_v21, %v6429_v22  ;;  %7181 = vst [vmem:[#allocation23_spill] sm:$0xff] %v6592_v43 }
 0x38d   : > { %v3152_v2 = vmul.f32 %v6582_v13, %v6582_v13 }
 0x38e   : > { %v4128_v33 = vpop.f32.mrb[88].mxu1  ;;  %v3114_v58 = vadd.f32 %v3113_v41, %v6582_v13  ;;  %v3153_v36 = vmul.f32 %v6588_v16, %v6588_v16 }
 0x38f   : > { %v4129_v39 = vpop.f32.mrb[89].mxu1  ;;  %v6609_v47 = vpop.permute.xlu1 %3384 }
 0x390   : > { %v4130_v34 = vadd.f32 %v4129_v39, %v4128_v33  ;;  %v4131_v23 = vpop.f32.mrb[90].mxu1  ;;  %v3182_v33 = vadd.f32 %v3181_v12, %v3151_v51  ;;  %v4474_v39 = vld [vmem:[%s4660_s13 + $0x58] sm:$0xff]  ;;  %v3115_v22 = vadd.f32 %v3114_v58, %v6588_v16  ;;  %v4475_v51 = vld [vmem:[%s4660_s13 + $0x60] sm:$0xff]  ;;  %7183 = vst [vmem:[#allocation25_spill] sm:$0xff] %v6609_v47 }
 0x391   : > { %v4132_v60 = vpop.f32.mrb[91].mxu1  ;;  %v6600_v27 = vadd.f32 %v4474_v39, %v2991_v53 }
 0x392   : > { %v2996_v28 = vadd.f32 %v4130_v34, %v6445_v17  ;;  %v4133_v55 = vadd.f32 %v4132_v60, %v4131_v23  ;;  %v6603_v17 = vpop.permute.xlu0 %3419  ;;  %v3183_v34 = vadd.f32 %v3182_v33, %v3152_v2  ;;  %v4476_v2 = vld [vmem:[%s4660_s13 + $0x68] sm:$0xff] }
 0x393   : > { %7182 = vst [vmem:[#allocation11_spill] sm:$0xff] %v6603_v17  ;;  %v3154_v58 = vmul.f32 %v6600_v27, %v6600_v27  ;;  %v3116_v33 = vadd.f32 %v3115_v22, %v6600_v27 }
 0x394   : > { %v6606_v23 = vadd.f32 %v4475_v51, %v2996_v28  ;;  %v2999_v12 = vadd.f32 %v4133_v55, %v6431_v31  ;;  %v3184_v39 = vadd.f32 %v3183_v34, %v3153_v36 }
 0x396   : > { %v4134_v26 = vpop.f32.mrb[92].mxu1  ;;  %v3155_v28 = vmul.f32 %v6606_v23, %v6606_v23  ;;  %v6618_v31 = vadd.f32 %v4476_v2, %v2999_v12  ;;  %v3117_v55 = vadd.f32 %v3116_v33, %v6606_v23  ;;  %v3185_v36 = vadd.f32 %v3184_v39, %v3154_v58  ;;  %v4478_v39 = vld [vmem:[%s4660_s13 + $0x78] sm:$0xff] }
 0x397   : > { %v4135_v21 = vpop.f32.mrb[93].mxu1 }
 0x398   : > { %v4136_v41 = vadd.f32 %v4135_v21, %v4134_v26  ;;  %v4137_v60 = vpop.f32.mrb[94].mxu1  ;;  %v6621_v26 = vpop.permute.xlu0 %3429  ;;  %v4477_v21 = vld [vmem:[%s4660_s13 + $0x70] sm:$0xff]  ;;  %v3156_v12 = vmul.f32 %v6618_v31, %v6618_v31  ;;  %v3118_v2 = vadd.f32 %v3117_v55, %v6618_v31 }
 0x399   : > { %v4138_v53 = vpop.f32.mrb[95].mxu1  ;;  %7184 = vst [vmem:[#allocation29_spill] sm:$0xff] %v6621_v26 }
 0x39a   : > { %v3004_v57 = vadd.f32 %v4136_v41, %v6449_v5  ;;  %v4139_v43 = vadd.f32 %v4138_v53, %v4137_v60  ;;  %v6627_v41 = vpop.permute.xlu1 %3394  ;;  %v3186_v60 = vadd.f32 %v3185_v36, %v3155_v28 }
 0x39b   : > { %7185 = vst [vmem:[#allocation27_spill] sm:$0xff] %v6627_v41 }
 0x39c   : > { %v6624_v34 = vadd.f32 %v4477_v21, %v3004_v57  ;;  %v3007_v5 = vadd.f32 %v4139_v43, %v6435_v11  ;;  %v6638_v21 = vpop.permute.xlu0 %3439  ;;  %v3187_v28 = vadd.f32 %v3186_v60, %v3156_v12  ;;  %v4480_v60 = vld [vmem:[%s4660_s13 + $0x88] sm:$0xff] }
 0x39e   : > { %v4140_v51 = vpop.f32.mrb[96].mxu1  ;;  %v3157_v57 = vmul.f32 %v6624_v34, %v6624_v34  ;;  %v6635_v58 = vadd.f32 %v4478_v39, %v3007_v5  ;;  %v3119_v36 = vadd.f32 %v3118_v2, %v6624_v34  ;;  %v6645_v17 = vpop.permute.xlu1 %3404 }
 0x39f   : > { %v4141_v22 = vpop.f32.mrb[97].mxu1  ;;  %7186 = vst [vmem:[#allocation13_spill] sm:$0xff] %v6645_v17 }
 0x3a0   : > { %v4142_v53 = vadd.f32 %v4141_v22, %v4140_v51  ;;  %v4143_v33 = vpop.f32.mrb[98].mxu1  ;;  %v4479_v51 = vld [vmem:[%s4660_s13 + $0x80] sm:$0xff]  ;;  %v3188_v41 = vadd.f32 %v3187_v28, %v3157_v57  ;;  %v3158_v5 = vmul.f32 %v6635_v58, %v6635_v58  ;;  %v6655_v2 = vpop.permute.xlu0 %3481 }
 0x3a1   : > { %v4144_v26 = vpop.f32.mrb[99].mxu1  ;;  %7187 = vst [vmem:[#allocation30_spill] sm:$0xff] %v6655_v2 }
 0x3a2   : > { %v3012_v11 = vadd.f32 %v4142_v53, %v6453_v3  ;;  %v4145_v43 = vadd.f32 %v4144_v26, %v4143_v33  ;;  %v3120_v3 = vadd.f32 %v3119_v36, %v6635_v58  ;;  %v3189_v57 = vadd.f32 %v3188_v41, %v3158_v5  ;;  %v4482_v5 = vld [vmem:[%s4660_s13 + $0x98] sm:$0xff] }
 0x3a4   : > { %v6642_v22 = vadd.f32 %v4479_v51, %v3012_v11  ;;  %v3015_v55 = vadd.f32 %v4145_v43, %v6439_v30  ;;  %v6659_v51 = vpop.permute.xlu1 %3414 }
 0x3a5   : > { %7188 = vst [vmem:[#allocation31_spill] sm:$0xff] %v6659_v51  ;;  %v4483_v51 = vld [vmem:[%s4660_s13 + $0xa0] sm:$0xff] }
 0x3a6   : > { %v4146_v39 = vpop.f32.mrb[100].mxu1  ;;  %v3159_v26 = vmul.f32 %v6642_v22, %v6642_v22  ;;  %v6653_v12 = vadd.f32 %v4480_v60, %v3015_v55  ;;  %v3121_v11 = vadd.f32 %v3120_v3, %v6642_v22  ;;  %v4481_v55 = vld [vmem:[%s4660_s13 + $0x90] sm:$0xff] }
 0x3a7   : > { %v4147_v47 = vpop.f32.mrb[101].mxu1 }
 0x3a8   : > { %v4148_v53 = vadd.f32 %v4147_v47, %v4146_v39  ;;  %v4149_v30 = vpop.f32.mrb[102].mxu1  ;;  %v3190_v36 = vadd.f32 %v3189_v57, %v3159_v26  ;;  %v3160_v17 = vmul.f32 %v6653_v12, %v6653_v12  ;;  %v3122_v39 = vadd.f32 %v3121_v11, %v6653_v12  ;;  %v6673_v26 = vpop.permute.xlu0 %3491 }
 0x3a9   : > { %v4150_v33 = vpop.f32.mrb[103].mxu1  ;;  %7189 = vst [vmem:[#allocation14_spill] sm:$0xff] %v6673_v26 }
 0x3aa   : > { %v3020_v43 = vadd.f32 %v4148_v53, %v6457_v10  ;;  %v4151_v28 = vadd.f32 %v4150_v33, %v4149_v30  ;;  %v3191_v30 = vadd.f32 %v3190_v36, %v3160_v17 }
 0x3ac   : > { %v6664_v60 = vadd.f32 %v4481_v55, %v3020_v43  ;;  %v3023_v47 = vadd.f32 %v4151_v28, %v6443_v14  ;;  %v6676_v14 = vpop.permute.xlu1 %3424  ;;  %v6686_v36 = vpop.permute.xlu0 %3501 }
 0x3ad   : > { %7190 = vst [vmem:[#allocation15_spill] sm:$0xff] %v6676_v14  ;;  %7191 = vst [vmem:[#allocation32_spill] sm:$0xff] %v6686_v36 }
 0x3ae   : > { %v3161_v41 = vmul.f32 %v6664_v60, %v6664_v60  ;;  %v6671_v10 = vadd.f32 %v4482_v5, %v3023_v47  ;;  %v4152_v3 = vpop.f32.mrb[104].mxu1  ;;  %v3123_v33 = vadd.f32 %v3122_v39, %v6664_v60 }
 0x3af   : > { %v4153_v53 = vpop.f32.mrb[105].mxu1 }
 0x3b0   : > { %v4154_v57 = vadd.f32 %v4153_v53, %v4152_v3  ;;  %v4155_v43 = vpop.f32.mrb[106].mxu1  ;;  %v3192_v28 = vadd.f32 %v3191_v30, %v3161_v41  ;;  %v3162_v55 = vmul.f32 %v6671_v10, %v6671_v10  ;;  %v3124_v2 = vadd.f32 %v3123_v33, %v6671_v10  ;;  %v4484_v53 = vld [vmem:[%s4660_s13 + $0xa8] sm:$0xff] }
 0x3b1   : > { %v4156_v11 = vpop.f32.mrb[107].mxu1 }
 0x3b2   : > { %v3028_v47 = vadd.f32 %v4154_v57, %v6461_v0  ;;  %v4157_v5 = vadd.f32 %v4156_v11, %v4155_v43  ;;  %v3193_v39 = vadd.f32 %v3192_v28, %v3162_v55  ;;  %v6694_v57 = vpop.permute.xlu1 %3434 }
 0x3b3   : > { %7192 = vst [vmem:[#allocation36_spill] sm:$0xff] %v6694_v57 }
 0x3b4   : > { %v6683_v26 = vadd.f32 %v4483_v51, %v3028_v47  ;;  %v3031_v17 = vadd.f32 %v4157_v5, %v6447_v6 }
 0x3b6   : > { %v3125_v3 = vadd.f32 %v3124_v2, %v6683_v26  ;;  %v3163_v41 = vmul.f32 %v6683_v26, %v6683_v26  ;;  %v6692_v30 = vadd.f32 %v4484_v53, %v3031_v17  ;;  %v4158_v0 = vpop.f32.mrb[108].mxu1  ;;  %v6700_v17 = vpop.permute.xlu0 %3511  ;;  %v4485_v53 = vld [vmem:[%s4660_s13 + $0xb0] sm:$0xff] }
 0x3b7   : > { %v4159_v33 = vpop.f32.mrb[109].mxu1  ;;  %7193 = vst [vmem:[#allocation37_spill] sm:$0xff] %v6700_v17 }
 0x3b8   : > { %v3194_v51 = vadd.f32 %v3193_v39, %v3163_v41  ;;  %v3126_v6 = vadd.f32 %v3125_v3, %v6692_v30  ;;  %v3164_v43 = vmul.f32 %v6692_v30, %v6692_v30  ;;  %v4160_v11 = vadd.f32 %v4159_v33, %v4158_v0  ;;  %v4161_v2 = vpop.f32.mrb[110].mxu1  ;;  %v6706_v41 = vpop.permute.xlu1 %3476  ;;  %v4486_v33 = vld [vmem:[%s4660_s13 + $0xb8] sm:$0xff] }
 0x3b9   : > { %v4162_v28 = vpop.f32.mrb[111].mxu1  ;;  %7194 = vst [vmem:[#allocation33_spill] sm:$0xff] %v6706_v41 }
 0x3ba   : > { %v3195_v55 = vadd.f32 %v3194_v51, %v3164_v43  ;;  %v3036_v47 = vadd.f32 %v4160_v11, %v6465_v40  ;;  %v4163_v5 = vadd.f32 %v4162_v28, %v4161_v2 }
 0x3bc   : > { %v6703_v36 = vadd.f32 %v4485_v53, %v3036_v47  ;;  %v3039_v39 = vadd.f32 %v4163_v5, %v6451_v32 }
 0x3be   : > { %v3127_v3 = vadd.f32 %v3126_v6, %v6703_v36  ;;  %v3165_v0 = vmul.f32 %v6703_v36, %v6703_v36  ;;  %v6712_v51 = vadd.f32 %v4486_v33, %v3039_v39  ;;  %v4164_v40 = vpop.f32.mrb[112].mxu1  ;;  %v6717_v6 = vpop.permute.xlu0 %3521  ;;  %v4487_v33 = vld [vmem:[%s4660_s13 + $0xc0] sm:$0xff] }
 0x3bf   : > { %v4165_v43 = vpop.f32.mrb[113].mxu1  ;;  %7195 = vst [vmem:[#allocation16_spill] sm:$0xff] %v6717_v6  ;;  %v6720_v39 = vpop.permute.xlu1 %3486  ;;  %v4489_v6 = vld [vmem:[%s4660_s13 + $0xd0] sm:$0xff] }
 0x3c0   : > { %v3196_v11 = vadd.f32 %v3195_v55, %v3165_v0  ;;  %v3128_v2 = vadd.f32 %v3127_v3, %v6712_v51  ;;  %v3166_v32 = vmul.f32 %v6712_v51, %v6712_v51  ;;  %v4166_v28 = vadd.f32 %v4165_v43, %v4164_v40  ;;  %v4167_v47 = vpop.f32.mrb[114].mxu1  ;;  %7196 = vst [vmem:[#allocation39_spill] sm:$0xff] %v6720_v39  ;;  %v4488_v40 = vld [vmem:[%s4660_s13 + $0xc8] sm:$0xff] }
 0x3c1   : > { %v4168_v5 = vpop.f32.mrb[115].mxu1 }
 0x3c2   : > { %v3197_v53 = vadd.f32 %v3196_v11, %v3166_v32  ;;  %v3044_v17 = vadd.f32 %v4166_v28, %v6469_v29  ;;  %v4169_v41 = vadd.f32 %v4168_v5, %v4167_v47  ;;  %v6732_v29 = vpop.permute.xlu0 %3531 }
 0x3c3   : > { %7197 = vst [vmem:[#allocation38_spill] sm:$0xff] %v6732_v29  ;;  %v6737_v47 = vpop.permute.xlu1 %3496 }
 0x3c4   : > { %v6723_v57 = vadd.f32 %v4487_v33, %v3044_v17  ;;  %v3047_v55 = vadd.f32 %v4169_v41, %v6455_v54  ;;  %7198 = vst [vmem:[#allocation34_spill] sm:$0xff] %v6737_v47 }
 0x3c6   : > { %v3129_v3 = vadd.f32 %v3128_v2, %v6723_v57  ;;  %v3167_v0 = vmul.f32 %v6723_v57, %v6723_v57  ;;  %v6730_v43 = vadd.f32 %v4488_v40, %v3047_v55  ;;  %v4170_v11 = vpop.f32.mrb[116].mxu1 }
 0x3c7   : > { %v4171_v32 = vpop.f32.mrb[117].mxu1 }
 0x3c8   : > { %v3198_v28 = vadd.f32 %v3197_v53, %v3167_v0  ;;  %v3130_v17 = vadd.f32 %v3129_v3, %v6730_v43  ;;  %v3168_v54 = vmul.f32 %v6730_v43, %v6730_v43  ;;  %v4172_v41 = vadd.f32 %v4171_v32, %v4170_v11  ;;  %v4173_v2 = vpop.f32.mrb[118].mxu1  ;;  %v6744_v0 = vpop.permute.xlu0 %3541  ;;  %v4490_v32 = vld [vmem:[%s4660_s13 + $0xd8] sm:$0xff] }
 0x3c9   : > { %v4174_v5 = vpop.f32.mrb[119].mxu1  ;;  %7199 = vst [vmem:[#allocation17_spill] sm:$0xff] %v6744_v0 }
 0x3ca   : > { %v3199_v33 = vadd.f32 %v3198_v28, %v3168_v54  ;;  %v3052_v55 = vadd.f32 %v4172_v41, %v6473_v38  ;;  %v4175_v40 = vadd.f32 %v4174_v5, %v4173_v2  ;;  %v6752_v54 = vpop.permute.xlu1 %3506 }
 0x3cb   : > { %7200 = vst [vmem:[#allocation35_spill] sm:$0xff] %v6752_v54 }
 0x3cc   : > { %v6741_v39 = vadd.f32 %v4489_v6, %v3052_v55  ;;  %v3055_v53 = vadd.f32 %v4175_v40, %v6459_v62 }
 0x3ce   : > { %v3131_v3 = vadd.f32 %v3130_v17, %v6741_v39  ;;  %v3169_v11 = vmul.f32 %v6741_v39, %v6741_v39  ;;  %v6750_v29 = vadd.f32 %v4490_v32, %v3055_v53  ;;  %v4176_v28 = vpop.f32.mrb[120].mxu1  ;;  %v6758_v53 = vpop.permute.xlu0 %3551  ;;  %v4491_v32 = vld [vmem:[%s4660_s13 + $0xe0] sm:$0xff] }
 0x3cf   : > { %v4177_v38 = vpop.f32.mrb[121].mxu1  ;;  %7201 = vst [vmem:[#allocation18_spill] sm:$0xff] %v6758_v53 }
 0x3d0   : > { %v3200_v41 = vadd.f32 %v3199_v33, %v3169_v11  ;;  %v3132_v6 = vadd.f32 %v3131_v3, %v6750_v29  ;;  %v3170_v62 = vmul.f32 %v6750_v29, %v6750_v29  ;;  %v4178_v2 = vadd.f32 %v4177_v38, %v4176_v28  ;;  %v4179_v17 = vpop.f32.mrb[122].mxu1  ;;  %v6764_v11 = vpop.permute.xlu1 %3516  ;;  %v4492_v38 = vld [vmem:[%s4660_s13 + $0xe8] sm:$0xff] }
 0x3d1   : > { %v4180_v5 = vpop.f32.mrb[123].mxu1  ;;  %7202 = vst [vmem:[#allocation19_spill] sm:$0xff] %v6764_v11 }
 0x3d2   : > { %v3201_v55 = vadd.f32 %v3200_v41, %v3170_v62  ;;  %v3060_v40 = vadd.f32 %v4178_v2, %v6477_v9  ;;  %v4181_v0 = vadd.f32 %v4180_v5, %v4179_v17 }
 0x3d4   : > { %v6761_v47 = vadd.f32 %v4491_v32, %v3060_v40  ;;  %v3063_v33 = vadd.f32 %v4181_v0, %v6463_v1 }
 0x3d6   : > { %v3133_v3 = vadd.f32 %v3132_v6, %v6761_v47  ;;  %v3171_v28 = vmul.f32 %v6761_v47, %v6761_v47  ;;  %v6770_v41 = vadd.f32 %v4492_v38, %v3063_v33  ;;  %v4182_v9 = vpop.f32.mrb[124].mxu1  ;;  %v6775_v6 = vpop.permute.xlu0 %3561  ;;  %v4493_v38 = vld [vmem:[%s4660_s13 + $0xf0] sm:$0xff] }
 0x3d7   : > { %v4183_v62 = vpop.f32.mrb[125].mxu1  ;;  %7203 = vst [vmem:[#allocation20_spill] sm:$0xff] %v6775_v6  ;;  %v6778_v33 = vpop.permute.xlu1 %3526 }
 0x3d8   : > { %v3202_v2 = vadd.f32 %v3201_v55, %v3171_v28  ;;  %v3134_v17 = vadd.f32 %v3133_v3, %v6770_v41  ;;  %v3172_v1 = vmul.f32 %v6770_v41, %v6770_v41  ;;  %v4184_v0 = vadd.f32 %v4183_v62, %v4182_v9  ;;  %v4185_v5 = vpop.f32.mrb[126].mxu1  ;;  %7204 = vst [vmem:[#allocation40_spill] sm:$0xff] %v6778_v33  ;;  %v4494_v9 = vld [vmem:[%s4660_s13 + $0xf8] sm:$0xff]  ;;  %s188_s13 = sand.u32 1, %s4549_s16  }
 0x3d9   : > { %v4186_v40 = vpop.f32.mrb[127].mxu1  ;;  %s3778_s8 = sshll.u32 %s188_s13, 8  ;;  %s7031_s14 = scalar_lea.sflag [#allocation4], %s188_s13 }
 0x3da   : > { %v3203_v32 = vadd.f32 %v3202_v2, %v3172_v1  ;;  %v3068_v53 = vadd.f32 %v4184_v0, %v6481_v48  ;;  %v4187_v11 = vadd.f32 %v4186_v40, %v4185_v5  ;;  %v6790_v6 = vpop.permute.xlu0 %3571  ;;  %s6894_s9 = scalar_lea.vmem [#allocation3], %s3778_s8 }
 0x3db   : > { %7205 = vst [vmem:[#allocation41_spill] sm:$0xff] %v6790_v6  ;;  %s3712_s30 = sshll.u32 %s6894_s9, 4  ;;  %s7013_s30 = int_to_ptr.vmem [resolvable:$true] %s3712_s30 }
 0x3dc   : > { %v6781_v54 = vadd.f32 %v4493_v38, %v3068_v53  ;;  %v3071_v55 = vadd.f32 %v4187_v11, %v6467_v20  ;;  %v6795_v53 = vpop.permute.xlu1 %3536  ;;  %s4495_s20 = scalar_lea.vmem %s7013_s30, 4096  ;;  %p4502_p0 = scmp.lt.s32.totalorder %s7013_s30, %s4500_s27 }
 0x3dd   : > { %7206 = vst [vmem:[#allocation42_spill] sm:$0xff] %v6795_v53  ;;  %p4496_p11 = scmp.ne.s32.totalorder %s7013_s30, %s4495_s20  ;;  %p4503_p1 = scmp.lt.s32.totalorder %s4501_s28, %s4495_s20 }
 0x3de   : > { %v3135_v3 = vadd.f32 %v3134_v17, %v6781_v54  ;;  %v3173_v28 = vmul.f32 %v6781_v54, %v6781_v54  ;;  %v6788_v62 = vadd.f32 %v4494_v9, %v3071_v55  ;;  %v6797_v5 = vpop.permute.xlu0 %3581 }
 0x3df   : > { %7207 = vst [vmem:[#allocation43_spill] sm:$0xff] %v6797_v5  ;;  %p4497_p12 = pnand %p4496_p11, %p4629_p5  ;;  %p4504_p2 = por %p4503_p1, %p4502_p0 }
 0x3e0   : > { %v3204_v2 = vadd.f32 %v3203_v32, %v3173_v28  ;;  %v3136_v48 = vadd.f32 %v3135_v3, %v6788_v62  ;;  %v3174_v1 = vmul.f32 %v6788_v62, %v6788_v62  ;;  %v6799_v55 = vpop.permute.xlu1 %3546 }
 0x3e1   : > { %7208 = vst [vmem:[#allocation44_spill] sm:$0xff] %v6799_v55  ;;  %p4498_p13 = pneg %p4497_p12 }
 0x3e2   : > { %v3137_v0 = vrot.slane %v3136_v48, 4  ;;  %v3205_v20 = vadd.f32 %v3204_v2, %v3174_v1  ;;  %v6801_v3 = vpop.permute.xlu0 %3591 }
 0x3e3   : > { %7209 = vst [vmem:[#allocation45_spill] sm:$0xff] %v6801_v3  ;;  %p4505_p3 = pnand %p4504_p2, %p4498_p13 }
 0x3e4   : > { %v3138_v11 = vadd.f32 %v3137_v0, %v3136_v48  ;;  %v3206_v17 = vrot.slane %v3205_v20, 4  ;;  %v6803_v15 = vpop.permute.xlu1 %3556 }
 0x3e5   : > { %7210 = vst [vmem:[#allocation46_spill] sm:$0xff] %v6803_v15 }
 0x3e6   : > { %v3139_v40 = vrot.slane %v3138_v11, 2  ;;  %v3207_v38 = vadd.f32 %v3206_v17, %v3205_v20  ;;  %v6811_v20 = vpop.permute.xlu0 %3601 }
 0x3e7   : > { %7211 = vst [vmem:[#allocation47_spill] sm:$0xff] %v6811_v20 }
 0x3e8   : > { %v3140_v9 = vadd.f32 %v3139_v40, %v3138_v11  ;;  %v3208_v6 = vrot.slane %v3207_v38, 2 }
 0x3ea   : > { %v3141_v32 = vrot.slane %v3140_v9, 1  ;;  %v3209_v28 = vadd.f32 %v3208_v6, %v3207_v38  ;;  %v6813_v6 = vpop.permute.xlu1 %3566 }
 0x3eb   : > { %7212 = vst [vmem:[#allocation48_spill] sm:$0xff] %v6813_v6 }
 0x3ec   : > { %v3142_v33 = vadd.f32 %v3141_v32, %v3140_v9  ;;  %v3210_v14 = vrot.slane %v3209_v28, 1  ;;  %v6827_v9 = vpop.permute.xlu0 %3611 }
 0x3ed   : > { %7213 = vst [vmem:[#allocation49_spill] sm:$0xff] %v6827_v9 }
 0x3ee   : > { %v3211_v53 = vadd.f32 %v3210_v14, %v3209_v28  ;;  %v6805_v2 = vmul.f32 0.00390625, %v3142_v33 }
 0x3f0   : > { %v3213_v48 = vmul.f32 0.00390625, %v3211_v53  ;;  %v3214_v1 = vmul.f32 %v6805_v2, %v6805_v2  ;;  %v3247_v0 = vsub.f32 %v6788_v62, %v6805_v2  ;;  %v3216_v38 = vsub.f32 %v6509_v63, %v6805_v2  ;;  %v6857_v53 = vpop.permute.xlu0 %3621 }
 0x3f1   : > { %v3217_v32 = vsub.f32 %v6506_v42, %v6805_v2  ;;  %v3218_v28 = vsub.f32 %v6512_v44, %v6805_v2  ;;  %v3221_v62 = vsub.f32 %v6547_v8, %v6805_v2  ;;  %v3223_v63 = vsub.f32 %v6564_v50, %v6805_v2  ;;  %7215 = vst [vmem:[#allocation51_spill] sm:$0xff] %v6857_v53 }
 0x3f2   : > { %v3215_v11 = vsub.f32 %v3213_v48, %v3214_v1  ;;  %v3219_v48 = vsub.f32 %v6529_v37, %v6805_v2  ;;  %v3220_v1 = vsub.f32 %v6533_v24, %v6805_v2  ;;  %v3224_v42 = vsub.f32 %v6571_v25, %v6805_v2 }
 0x3f3   : > { %v3225_v44 = vsub.f32 %v6582_v13, %v6805_v2  ;;  %v3226_v37 = vsub.f32 %v6588_v16, %v6805_v2  ;;  %v3227_v24 = vsub.f32 %v6600_v27, %v6805_v2  ;;  %v3229_v50 = vsub.f32 %v6618_v31, %v6805_v2 }
 0x3f4   : > { %v3248_v17 = vadd.f32 1e-05, %v3215_v11  ;;  %v6837_v11 = vpop.permute.xlu1 %3576  ;;  %v3230_v25 = vsub.f32 %v6624_v34, %v6805_v2  ;;  %v3231_v13 = vsub.f32 %v6635_v58, %v6805_v2  ;;  %v3232_v16 = vsub.f32 %v6642_v22, %v6805_v2 }
 0x3f5   : > { %7214 = vst [vmem:[#allocation50_spill] sm:$0xff] %v6837_v11  ;;  %v3233_v27 = vsub.f32 %v6653_v12, %v6805_v2  ;;  %v3234_v14 = vsub.f32 %v6664_v60, %v6805_v2  ;;  %v3632_v11 = vpop.permute.xlu0 %3631 }
 0x3f6   : > { %4461 = vrsqrt.f32 %v3248_v17  ;;  %v3222_v17 = vsub.f32 %v6551_v19, %v6805_v2  ;;  %v3228_v19 = vsub.f32 %v6606_v23, %v6805_v2  ;;  %v3235_v23 = vsub.f32 %v6671_v10, %v6805_v2 }
 0x3f8   : > { %v6868_v8 = vpop.permute.xlu1 %3586 }
 0x3f9   : > { %7216 = vst [vmem:[#allocation52_spill] sm:$0xff] %v6868_v8 }
 0x3fc   : > { %v6889_v55 = vpop.permute.xlu1 %3596 }
 0x400   : > { %v4462_v33 = vpop.eup %4461 }
 0x401   : > { %v3281_v31 = vmul.f32 %v4462_v33, %v3247_v0  ;;  %v3250_v34 = vmul.f32 %v4462_v33, %v3216_v38  ;;  %v3251_v40 = vmul.f32 %v4462_v33, %v3217_v32  ;;  %v3252_v53 = vmul.f32 %v4462_v33, %v3218_v28 }
 0x402   : > { %v3253_v58 = vmul.f32 %v4462_v33, %v3219_v48  ;;  %v3254_v9 = vmul.f32 %v4462_v33, %v3220_v1  ;;  %v3255_v20 = vmul.f32 %v4462_v33, %v3221_v62  ;;  %v3256_v3 = vmul.f32 %v4462_v33, %v3222_v17 }
 0x403   : > { %v3473_v22 = vmul.f32 %v6638_v21, %v3281_v31  ;;  %v3257_v8 = vmul.f32 %v4462_v33, %v3223_v63  ;;  %v3258_v12 = vmul.f32 %v4462_v33, %v3224_v42  ;;  %v3259_v5 = vmul.f32 %v4462_v33, %v3225_v44 }
 0x404   : > { %v3260_v60 = vmul.f32 %v4462_v33, %v3226_v37  ;;  %v3261_v6 = vmul.f32 %v4462_v33, %v3227_v24  ;;  %v3262_v15 = vmul.f32 %v4462_v33, %v3228_v19  ;;  %v3263_v10 = vmul.f32 %v4462_v33, %v3229_v50 }
 0x405   : > { %v3665_v0 = vadd.f32 %v3632_v11, %v3473_v22  ;;  %v3264_v38 = vmul.f32 %v4462_v33, %v3230_v25  ;;  %v3265_v32 = vmul.f32 %v4462_v33, %v3231_v13  ;;  %v3266_v28 = vmul.f32 %v4462_v33, %v3232_v16 }
 0x406   : > { %v3267_v48 = vmul.f32 %v4462_v33, %v3233_v27  ;;  %v3268_v1 = vmul.f32 %v4462_v33, %v3234_v14  ;;  %v3269_v62 = vmul.f32 %v4462_v33, %v3235_v23  ;;  %v7217_v21 = vsub.f32 %v6683_v26, %v6805_v2 }
 0x407   : > { %3697 = vst [vmem:[%s6894_s9 + $0xf8] sm:$0xff] %v3665_v0  ;;  %v7218_v63 = vsub.f32 %v6692_v30, %v6805_v2  ;;  %v7219_v11 = vsub.f32 %v6703_v36, %v6805_v2  ;;  %v7220_v14 = vsub.f32 %v6712_v51, %v6805_v2  ;;  %v7221_v26 = vsub.f32 %v6723_v57, %v6805_v2 }
 0x408   : > { %v3270_v17 = vmul.f32 %v4462_v33, %v7217_v21  ;;  %v7222_v19 = vsub.f32 %v6730_v43, %v6805_v2  ;;  %v7223_v30 = vsub.f32 %v6741_v39, %v6805_v2  ;;  %v7224_v36 = vsub.f32 %v6750_v29, %v6805_v2  ;;  %v6933_v21 = vpop.permute.xlu1 %3606 }
 0x409   : > { %v3271_v42 = vmul.f32 %v4462_v33, %v7218_v63  ;;  %v3272_v44 = vmul.f32 %v4462_v33, %v7219_v11  ;;  %v3273_v37 = vmul.f32 %v4462_v33, %v7220_v14  ;;  %v3274_v24 = vmul.f32 %v4462_v33, %v7221_v26  ;;  %v7240_v11 = vld [vmem:[#allocation26_spill] sm:$0xff]  ;;  %v7241_v14 = vld [vmem:[#allocation13_spill] sm:$0xff]  ;;  %v7242_v26 = vld [vmem:[#allocation28_spill] sm:$0xff] }
 0x40a   : > { %v3275_v50 = vmul.f32 %v4462_v33, %v7222_v19  ;;  %v3276_v25 = vmul.f32 %v4462_v33, %v7223_v30  ;;  %v3277_v13 = vmul.f32 %v4462_v33, %v7224_v36  ;;  %v7225_v51 = vsub.f32 %v6761_v47, %v6805_v2  ;;  %v7243_v19 = vld [vmem:[#allocation31_spill] sm:$0xff] }
 0x40b   : > { %v7226_v57 = vsub.f32 %v6770_v41, %v6805_v2  ;;  %v7227_v43 = vsub.f32 %v6781_v54, %v6805_v2  ;;  %v3442_v31 = vmul.f32 %v6485_v61, %v3250_v34  ;;  %v3443_v39 = vmul.f32 %v6471_v7, %v3251_v40  ;;  %v7228_v2 = vld [vmem:[#allocation7_spill] sm:$0xff]  ;;  %v7229_v40 = vld [vmem:[#allocation10_spill] sm:$0xff]  ;;  %v7233_v34 = vld [vmem:[#allocation21_spill] sm:$0xff] }
 0x40c   : > { %v3278_v16 = vmul.f32 %v4462_v33, %v7225_v51  ;;  %v3444_v22 = vmul.f32 %v6489_v46, %v3252_v53  ;;  %v3445_v29 = vmul.f32 %v6475_v59, %v3253_v58  ;;  %v3446_v0 = vmul.f32 %v6493_v18, %v3254_v9  ;;  %v7231_v53 = vld [vmem:[#allocation12_spill] sm:$0xff]  ;;  %v7236_v58 = vld [vmem:[#allocation22_spill] sm:$0xff]  ;;  %v7244_v30 = vld [vmem:[#allocation11_spill] sm:$0xff] }
 0x40d   : > { %v3279_v27 = vmul.f32 %v4462_v33, %v7226_v57  ;;  %v3280_v23 = vmul.f32 %v4462_v33, %v7227_v43  ;;  %v3447_v47 = vmul.f32 %v6479_v49, %v3255_v20  ;;  %v3448_v41 = vmul.f32 %v6497_v4, %v3256_v3  ;;  %v7230_v33 = vld [vmem:[#allocation6_spill] sm:$0xff]  ;;  %v7232_v20 = vld [vmem:[#allocation9_spill] sm:$0xff]  ;;  %v7234_v3 = vld [vmem:[#allocation8_spill] sm:$0xff] }
 0x40e   : > { %v3449_v63 = vmul.f32 %v6483_v45, %v3257_v8  ;;  %v3450_v54 = vmul.f32 %v6502_v56, %v3258_v12  ;;  %v3451_v61 = vmul.f32 %v6487_v52, %v3259_v5  ;;  %v3452_v7 = vmul.f32 %v6518_v35, %v3260_v60  ;;  %v7235_v8 = vld [vmem:[#allocation23_spill] sm:$0xff]  ;;  %v7237_v5 = vld [vmem:[#allocation25_spill] sm:$0xff]  ;;  %v7238_v12 = vld [vmem:[#allocation24_spill] sm:$0xff] }
 0x40f   : > { %v3453_v46 = vmul.f32 %v7228_v2, %v3261_v6  ;;  %v3454_v59 = vmul.f32 %v7229_v40, %v3262_v15  ;;  %v3455_v18 = vmul.f32 %v7230_v33, %v3263_v10  ;;  %v3456_v49 = vmul.f32 %v7231_v53, %v3264_v38  ;;  %v7239_v60 = vld [vmem:[#allocation27_spill] sm:$0xff]  ;;  %v7247_v51 = vld [vmem:[#allocation36_spill] sm:$0xff]  ;;  %v7248_v57 = vld [vmem:[#allocation33_spill] sm:$0xff] }
 0x410   : > { %v3457_v9 = vmul.f32 %v7232_v20, %v3265_v32  ;;  %v3458_v4 = vmul.f32 %v7233_v34, %v3266_v28  ;;  %v3459_v45 = vmul.f32 %v7234_v3, %v3267_v48  ;;  %v3460_v56 = vmul.f32 %v7235_v8, %v3268_v1  ;;  %v7245_v36 = vld [vmem:[#allocation15_spill] sm:$0xff]  ;;  %v7249_v43 = vld [vmem:[#allocation30_spill] sm:$0xff]  ;;  %v7255_v34 = vld [vmem:[#allocation37_spill] sm:$0xff] }
 0x411   : > { %v3461_v52 = vmul.f32 %v7236_v58, %v3269_v62  ;;  %v3462_v35 = vmul.f32 %v7237_v5, %v3270_v17  ;;  %v3463_v6 = vmul.f32 %v7238_v12, %v3271_v42  ;;  %v3464_v15 = vmul.f32 %v7239_v60, %v3272_v44  ;;  %v7246_v62 = vld [vmem:[#allocation29_spill] sm:$0xff]  ;;  %v3617_v42 = vpop.permute.xlu1 %3616  ;;  %v7250_v2 = vld [vmem:[#allocation39_spill] sm:$0xff]  ;;  %v7251_v40 = vld [vmem:[#allocation14_spill] sm:$0xff] }
 0x412   : > { %v3465_v10 = vmul.f32 %v7240_v11, %v3273_v37  ;;  %v3466_v38 = vmul.f32 %v7241_v14, %v3274_v24  ;;  %v3467_v32 = vmul.f32 %v7242_v26, %v3275_v50  ;;  %v3468_v28 = vmul.f32 %v7243_v19, %v3276_v25  ;;  %v7257_v3 = vld [vmem:[#allocation16_spill] sm:$0xff]  ;;  %v7261_v5 = vld [vmem:[#allocation17_spill] sm:$0xff]  ;;  %v7268_v19 = vld [vmem:[#allocation50_spill] sm:$0xff] }
 0x413   : > { %v3469_v48 = vmul.f32 %v7244_v30, %v3277_v13  ;;  %v3470_v1 = vmul.f32 %v7245_v36, %v3278_v16  ;;  %v3471_v17 = vmul.f32 %v7246_v62, %v3279_v27  ;;  %v3472_v44 = vmul.f32 %v7247_v51, %v3280_v23  ;;  %v7252_v13 = vld [vmem:[#allocation34_spill] sm:$0xff]  ;;  %v7253_v16 = vld [vmem:[#allocation32_spill] sm:$0xff]  ;;  %v7254_v27 = vld [vmem:[#allocation35_spill] sm:$0xff] }
 0x414   : > { %v3634_v37 = vadd.f32 %v7248_v57, %v3442_v31  ;;  %v3635_v24 = vadd.f32 %v7249_v43, %v3443_v39  ;;  %v3636_v50 = vadd.f32 %v7250_v2, %v3444_v22  ;;  %v3637_v25 = vadd.f32 %v7251_v40, %v3445_v29  ;;  %v7256_v31 = vld [vmem:[#allocation19_spill] sm:$0xff]  ;;  %v7258_v8 = vld [vmem:[#allocation40_spill] sm:$0xff]  ;;  %v7259_v29 = vld [vmem:[#allocation38_spill] sm:$0xff] }
 0x415   : > { %v3638_v33 = vadd.f32 %v7252_v13, %v3446_v0  ;;  %v3639_v53 = vadd.f32 %v7253_v16, %v3447_v47  ;;  %v3640_v20 = vadd.f32 %v7254_v27, %v3448_v41  ;;  %v3641_v23 = vadd.f32 %v7255_v34, %v3449_v63  ;;  %v7260_v47 = vld [vmem:[#allocation42_spill] sm:$0xff]  ;;  %v7262_v12 = vld [vmem:[#allocation44_spill] sm:$0xff]  ;;  %v7269_v36 = vld [vmem:[#allocation43_spill] sm:$0xff] }
 0x416   : > { %v3642_v39 = vadd.f32 %v7256_v31, %v3450_v54  ;;  %v3643_v22 = vadd.f32 %v7257_v3, %v3451_v61  ;;  %v3644_v58 = vadd.f32 %v7258_v8, %v3452_v7  ;;  %3666 = vst [vmem:[%s6894_s9] sm:$0xff] %v3634_v37  ;;  %3667 = vst [vmem:[%s6894_s9 + $0x8] sm:$0xff] %v3635_v24  ;;  %v7263_v54 = vld [vmem:[#allocation18_spill] sm:$0xff]  ;;  %v7266_v14 = vld [vmem:[#allocation48_spill] sm:$0xff] }
 0x417   : > { %3668 = vst [vmem:[%s6894_s9 + $0x10] sm:$0xff] %v3636_v50  ;;  %v3645_v0 = vadd.f32 %v7259_v29, %v3453_v46  ;;  %v3646_v41 = vadd.f32 %v7260_v47, %v3454_v59  ;;  %v3647_v63 = vadd.f32 %v7261_v5, %v3455_v18  ;;  %v3648_v60 = vadd.f32 %v7262_v12, %v3456_v49  ;;  %v7264_v7 = vld [vmem:[#allocation46_spill] sm:$0xff]  ;;  %v7265_v59 = vld [vmem:[#allocation20_spill] sm:$0xff]  ;;  %v7267_v49 = vld [vmem:[#allocation41_spill] sm:$0xff] }
 0x418   : > { %3669 = vst [vmem:[%s6894_s9 + $0x18] sm:$0xff] %v3637_v25  ;;  %3670 = vst [vmem:[%s6894_s9 + $0x20] sm:$0xff] %v3638_v33  ;;  %v3649_v61 = vadd.f32 %v7263_v54, %v3457_v9  ;;  %v3650_v46 = vadd.f32 %v7264_v7, %v3458_v4  ;;  %v3651_v11 = vadd.f32 %v7265_v59, %v3459_v45  ;;  %v7270_v62 = vld [vmem:[#allocation52_spill] sm:$0xff]  ;;  %v3627_v45 = vpop.permute.xlu1 %3626 }
 0x419   : > { %3671 = vst [vmem:[%s6894_s9 + $0x28] sm:$0xff] %v3639_v53  ;;  %3672 = vst [vmem:[%s6894_s9 + $0x30] sm:$0xff] %v3640_v20  ;;  %v3652_v18 = vadd.f32 %v7266_v14, %v3460_v56  ;;  %v3653_v26 = vadd.f32 %v7267_v49, %v3461_v52  ;;  %v3654_v30 = vadd.f32 %v7268_v19, %v3462_v35  ;;  %v7271_v56 = vld [vmem:[#allocation45_spill] sm:$0xff]  ;;  %v7272_v52 = vld [vmem:[#allocation47_spill] sm:$0xff] }
 0x41a   : > { %3673 = vst [vmem:[%s6894_s9 + $0x38] sm:$0xff] %v3641_v23  ;;  %3674 = vst [vmem:[%s6894_s9 + $0x40] sm:$0xff] %v3642_v39  ;;  %v3655_v9 = vadd.f32 %v7269_v36, %v3463_v6  ;;  %v3656_v4 = vadd.f32 %v7270_v62, %v3464_v15  ;;  %v3657_v51 = vadd.f32 %v7271_v56, %v3465_v10  ;;  %v7274_v15 = vld [vmem:[#allocation51_spill] sm:$0xff] }
 0x41b   : > { %3675 = vst [vmem:[%s6894_s9 + $0x48] sm:$0xff] %v3643_v22  ;;  %3676 = vst [vmem:[%s6894_s9 + $0x50] sm:$0xff] %v3644_v58  ;;  %v3658_v57 = vadd.f32 %v6889_v55, %v3466_v38  ;;  %v3659_v37 = vadd.f32 %v7272_v52, %v3467_v32  ;;  %v3660_v35 = vadd.f32 %v6933_v21, %v3468_v28  ;;  %v7273_v55 = vld [vmem:[#allocation49_spill] sm:$0xff] }
 0x41c   : > { %3677 = vst [vmem:[%s6894_s9 + $0x58] sm:$0xff] %v3645_v0  ;;  %3678 = vst [vmem:[%s6894_s9 + $0x60] sm:$0xff] %v3646_v41  ;;  %v3661_v21 = vadd.f32 %v7273_v55, %v3469_v48  ;;  %v3662_v6 = vadd.f32 %v3617_v42, %v3470_v1  ;;  %v3663_v10 = vadd.f32 %v7274_v15, %v3471_v17 }
 0x41d   : > { %3679 = vst [vmem:[%s6894_s9 + $0x68] sm:$0xff] %v3647_v63  ;;  %3680 = vst [vmem:[%s6894_s9 + $0x70] sm:$0xff] %v3648_v60  ;;  %v3664_v38 = vadd.f32 %v3627_v45, %v3472_v44 }
 0x41e   : > { %3681 = vst [vmem:[%s6894_s9 + $0x78] sm:$0xff] %v3649_v61  ;;  %3682 = vst [vmem:[%s6894_s9 + $0x80] sm:$0xff] %v3650_v46 }
 0x41f   : > { %3683 = vst [vmem:[%s6894_s9 + $0x88] sm:$0xff] %v3651_v11  ;;  %3684 = vst [vmem:[%s6894_s9 + $0x90] sm:$0xff] %v3652_v18 }
 0x420   : > { %3685 = vst [vmem:[%s6894_s9 + $0x98] sm:$0xff] %v3653_v26  ;;  %3686 = vst [vmem:[%s6894_s9 + $0xa0] sm:$0xff] %v3654_v30 }
 0x421   : > { %3687 = vst [vmem:[%s6894_s9 + $0xa8] sm:$0xff] %v3655_v9  ;;  %3688 = vst [vmem:[%s6894_s9 + $0xb0] sm:$0xff] %v3656_v4 }
 0x422   : > { %3689 = vst [vmem:[%s6894_s9 + $0xb8] sm:$0xff] %v3657_v51  ;;  %3690 = vst [vmem:[%s6894_s9 + $0xc0] sm:$0xff] %v3658_v57 }
 0x423   : > { %3691 = vst [vmem:[%s6894_s9 + $0xc8] sm:$0xff] %v3659_v37  ;;  %3692 = vst [vmem:[%s6894_s9 + $0xd0] sm:$0xff] %v3660_v35 }
 0x424   : > { %3693 = vst [vmem:[%s6894_s9 + $0xd8] sm:$0xff] %v3661_v21  ;;  %3694 = vst [vmem:[%s6894_s9 + $0xe0] sm:$0xff] %v3662_v6 }
 0x425   : > { %3695 = vst [vmem:[%s6894_s9 + $0xe8] sm:$0xff] %v3663_v10  ;;  %3696 = vst [vmem:[%s6894_s9 + $0xf0] sm:$0xff] %v3664_v38 }
 0x426   : > { %4508 = shalt.err (!%p4505_p3)
}
 0x427   : > { %s4509_s29 = scalar_lea.hbm %s7011_s12, 4096  ;;  %s4513_s22 = scalar_lea.hbm %s7076_s4, 8192 }
 0x428   : > { %p4510_p4 = scmp.ne.s32.totalorder %s7011_s12, %s4509_s29  ;;  %p4514_p9 = scmp.lt.u32.totalorder %s7011_s12, %s7076_s4 }
 0x429   : > { %p4515_p10 = scmp.lt.u32.totalorder %s4513_s22, %s4509_s29  ;;  %p4517_p12 = scmp.lt.u32.totalorder %s4509_s29, %s7011_s12 }
 0x42a   : > { %p4511_p7 = pnand %p4510_p4, %p4629_p5 }
 0x42b   : > { %p4516_p11 = por %p4515_p10, %p4514_p9 }
 0x42c   : > { %p4512_p8 = pneg %p4511_p7 }
 0x42d   : > { %p4518_p13 = por %p4517_p12, %p4516_p11 }
 0x42f   : > { %p4519_p0 = pnand %p4518_p13, %p4512_p8 }
 0x431   : > { %4522 = shalt.err (!%p4519_p0)
}
 0x432   : > { %s4564_s8 = smov 128   ;;  %s4565_s9 = smov 8  }
 0x433   : > { %4220 = dma.vmem_to_hbm [thread:$0]  (%p4629_p5), %s7013_s30, 4096, %s7011_s12, %s7031_s14, %s4564_s8, %s4564_s8, %s4565_s9  }
 0x434 PF: > { %p4226_p1 = scmp.ge.s32.totalorder %s4557_s18, 2  ;;  %s3727_s10 = sand.u32 1, %s4545_s15  }
 0x435   : > { %s3728_s19 = scalar_lea.sflag [#allocation4], %s3727_s10 }
 0x436   : > { %p4223_p2 = pnand %p4226_p1, %p4633_p6 }
 0x438   : > { %4540 = dma.done.wait (!%p4223_p2), %s3728_s19, 4096  }
 0x439   : > { %4542 = vsyncadd (!%p4223_p2), %s3728_s19, 4294963200  ;;  %p14_p3 = scmp.ge.s32.totalorder %s4616_s21, 4   ;;  %s7275_s15 = smov %s4549_s16 }
 0x43a   : > { %s7276_s16 = smov %s4553_s17  ;;  %s7277_s17 = smov %s4627_s24 }
 0x43b   : > { %s7278_s18 = smov %s4616_s21  ;;  %16 = sbr.rel (!%p14_p3) target bundleno = 3 (0x3), region = 76 }
 0x442   :  { %3733 = vsyncpa [#allocation4], 1 }
 0x443   :  { %3735 = vsyncpa [#allocation4 + $0x1], 1 }

</bundles_post_ra>
